<compile_context>
chip_gen: v7x
topology: tpu7x:2x2x1
jax: 0.10.0
libtpu: 0.0.40
codegen_flags: <defaults>
</compile_context>

<pallas_src>
import functools

import jax
import jax.numpy as jnp
from jax.experimental import pallas as pl
from jax.experimental.pallas import tpu as pltpu

LANES = 128  # lane-dense head-output width (K heatmap + 2 regression + zero pad)


# ----------------------------------------------------------------------------
# Fused kernel: conv1 + conv2 + fused heads for one image per grid step.
# ----------------------------------------------------------------------------
def fused_detector_kernel(p1_ref, w1_ref, b1_ref, w2_ref, b2_ref,
                          whr_ref, bhr_ref, out_ref, p3_ref, *, num_heat):
    # p1_ref : (1, H*W, 9*Cin) bf16   conv1 im2col patches (built in wrapper)
    # w1_ref : (9*Cin, C1) bf16, b1_ref: (1, C1) f32
    # w2_ref : (9*C1,  C2) bf16, b2_ref: (1, C2) f32
    # whr_ref: (C2, 128)   bf16, bhr_ref:(1, 128) f32   fused, lane-padded heads
    # out_ref: (1, H*W, 128) f32
    # p3_ref : VMEM (H, W, 9*C1) bf16  conv2 patch scratch (store-side im2col)
    HW = p1_ref.shape[1]
    C1 = w1_ref.shape[1]
    H, W, _ = p3_ref.shape
    cdt = p3_ref.dtype  # bf16 compute dtype for MXU operands

    # ---- conv1 (3x3, pad 1) + ReLU: one deep im2col matmul, K = 9*Cin ----
    a1 = jnp.dot(p1_ref[0], w1_ref[...], preferred_element_type=jnp.float32)
    f1 = jnp.maximum(a1 + b1_ref[...], 0.0).astype(cdt).reshape(H, W, C1)

    # ---- build conv2 patches: scatter f1 into the patch scratch ----
    # For every tap (dy, dx), patches[y, x, t*C1+c] = f1_padded[y+dy, x+dx, c].
    # The valid interior is a direct block store of f1; the 1-wide halo strips
    # (rows for dy!=1, cols for dx!=1) are re-zeroed every step (cheap, O(H+W),
    # and independent of scratch persistence across grid steps / cores).
    zrow = jnp.zeros((1, W, C1), cdt)
    zcol = jnp.zeros((H, 1, C1), cdt)
    for dy in range(3):
        for dx in range(3):
            t = dy * 3 + dx
            lo, hi = t * C1, (t + 1) * C1
            if dy == 0:
                p3_ref[0:1, :, lo:hi] = zrow
            if dy == 2:
                p3_ref[H - 1:H, :, lo:hi] = zrow
            if dx == 0:
                p3_ref[:, 0:1, lo:hi] = zcol
            if dx == 2:
                p3_ref[:, W - 1:W, lo:hi] = zcol
            y0, y1 = max(0, 1 - dy), min(H, H + 1 - dy)
            x0, x1 = max(0, 1 - dx), min(W, W + 1 - dx)
            p3_ref[y0:y1, x0:x1, lo:hi] = (
                f1[y0 + dy - 1:y1 + dy - 1, x0 + dx - 1:x1 + dx - 1, :])

    # ---- conv2 (3x3, pad 1) + ReLU: one deep matmul, K = 9*C1 ----
    a2 = jnp.dot(p3_ref[...].reshape(HW, 9 * C1), w2_ref[...],
                 preferred_element_type=jnp.float32)
    f2 = jnp.maximum(a2 + b2_ref[...], 0.0).astype(cdt)

    # ---- fused heads: one lane-dense (C2, 128) matmul ----
    o = jnp.dot(f2, whr_ref[...], preferred_element_type=jnp.float32)
    o = o + bhr_ref[...]
    # sigmoid only on heatmap columns; regression + zero-pad columns stay linear.
    col = jax.lax.broadcasted_iota(jnp.int32, o.shape, 1)
    o = jnp.where(col < num_heat, jax.nn.sigmoid(o), o)
    out_ref[0] = o.astype(out_ref.dtype)


# ----------------------------------------------------------------------------
# Wrapper: single pallas_call; XLA only does the NCHW->NHWC transpose, the
# (cheap) conv1 im2col patch build and the final slice/reshape of the output.
# ----------------------------------------------------------------------------
def keypoint_detector_forward(images_nchw, params, k_classes):
    """Eval-mode forward of KeypointDetector.

    images_nchw: (B, Cin, H, W) -- PyTorch layout.
    Returns (result, eval_utils, visualize_preds); result = (heatmap (B,H,W,K),
    regression (B,H,W,2)).
    """
    x = jnp.transpose(images_nchw, (0, 2, 3, 1)).astype(jnp.float32)  # NHWC
    B, H, W, Cin = x.shape
    C1 = params["w1"].shape[1]
    C2 = params["w2"].shape[1]
    lanes = params["whr"].shape[1]
    K = k_classes

    # conv1 im2col patches in XLA (9*Cin*H*W*2B per image -> negligible HBM),
    # shipped to the kernel in bf16.
    xpad = jnp.pad(x, ((0, 0), (1, 1), (1, 1), (0, 0)))
    taps = [xpad[:, dy:dy + H, dx:dx + W, :]
            for dy in range(3) for dx in range(3)]
    patches1 = jnp.concatenate(taps, axis=-1).reshape(B, H * W, 9 * Cin)
    patches1 = patches1.astype(jnp.bfloat16)

    kernel = functools.partial(fused_detector_kernel, num_heat=K)
    out = pl.pallas_call(
        kernel,
        out_shape=jax.ShapeDtypeStruct((B, H * W, lanes), jnp.float32),
        grid_spec=pltpu.PrefetchScalarGridSpec(
            num_scalar_prefetch=0,
            grid=(B,),
            in_specs=[
                pl.BlockSpec((1, H * W, 9 * Cin), lambda b: (b, 0, 0)),
                pl.BlockSpec((9 * Cin, C1), lambda b: (0, 0)),
                pl.BlockSpec((1, C1), lambda b: (0, 0)),
                pl.BlockSpec((9 * C1, C2), lambda b: (0, 0)),
                pl.BlockSpec((1, C2), lambda b: (0, 0)),
                pl.BlockSpec((C2, lanes), lambda b: (0, 0)),
                pl.BlockSpec((1, lanes), lambda b: (0, 0)),
            ],
            out_specs=pl.BlockSpec((1, H * W, lanes), lambda b: (b, 0, 0)),
            scratch_shapes=[pltpu.VMEM((H, W, 9 * C1), jnp.bfloat16)],
        ),
        compiler_params=pltpu.CompilerParams(
            dimension_semantics=("parallel",)),
    )(patches1, params["w1"], params["b1"], params["w2"], params["b2"],
      params["whr"], params["bhr"])

    heatmap = out[:, :, :K].reshape(B, H, W, K)
    regression = out[:, :, K:K + 2].reshape(B, H, W, 2)

    result = (heatmap, regression)
    eval_utils = {"num_keypoint_classes": K}
    visualize_preds = {"heatmap": heatmap}
    return result, eval_utils, visualize_preds


# ----------------------------------------------------------------------------
# Deterministic parameter init + plain-JAX (torch-semantics) reference.
# ----------------------------------------------------------------------------
def init_params(key, cin, c1, c2, k_classes):
    ks = jax.random.split(key, 8)
    w1_t = 0.1 * jax.random.normal(ks[0], (c1, cin, 3, 3), jnp.float32)
    w2_t = 0.1 * jax.random.normal(ks[1], (c2, c1, 3, 3), jnp.float32)
    b1 = 0.1 * jax.random.normal(ks[2], (1, c1), jnp.float32)
    b2 = 0.1 * jax.random.normal(ks[3], (1, c2), jnp.float32)
    wh = 0.1 * jax.random.normal(ks[4], (c2, k_classes), jnp.float32)
    bh = 0.1 * jax.random.normal(ks[5], (1, k_classes), jnp.float32)
    wr = 0.1 * jax.random.normal(ks[6], (c2, 2), jnp.float32)
    br = 0.1 * jax.random.normal(ks[7], (1, 2), jnp.float32)

    def pack_conv(w_t, cin_, cout_):
        # torch (Cout,Cin,kh,kw) -> im2col weight (9*Cin, Cout);
        # row index = (dy*3+dx)*Cin + c, matching the patch layouts above.
        return jnp.transpose(w_t, (2, 3, 1, 0)).reshape(9 * cin_, cout_)

    ktot = k_classes + 2
    assert ktot <= LANES
    whr = jnp.concatenate([wh, wr], axis=1)          # (C2, K+2)
    bhr = jnp.concatenate([bh, br], axis=1)          # (1,  K+2)
    whr_pad = jnp.zeros((c2, LANES), jnp.float32).at[:, :ktot].set(whr)
    bhr_pad = jnp.zeros((1, LANES), jnp.float32).at[:, :ktot].set(bhr)

    params = {
        "w1": pack_conv(w1_t, cin, c1).astype(jnp.bfloat16), "b1": b1,
        "w2": pack_conv(w2_t, c1, c2).astype(jnp.bfloat16), "b2": b2,
        "whr": whr_pad.astype(jnp.bfloat16),     # lane-padded fused head weight
        "bhr": bhr_pad,                          # lane-padded fused head bias
    }
    torch_style = {"w1_t": w1_t, "w2_t": w2_t, "b1": b1, "b2": b2,
                   "wh": wh, "bh": bh, "wr": wr, "br": br}
    return params, torch_style


def reference_forward(images_nchw, torch_style, k_classes):
    """Plain-JAX f32 reference with torch NCHW conv semantics."""
    def conv(x, w, b):
        y = jax.lax.conv_general_dilated(
            x, w, window_strides=(1, 1), padding=((1, 1), (1, 1)),
            dimension_numbers=("NCHW", "OIHW", "NCHW"))
        return jnp.maximum(y + b.reshape(1, -1, 1, 1), 0.0)

    f1 = conv(images_nchw, torch_style["w1_t"], torch_style["b1"])
    f2 = conv(f1, torch_style["w2_t"], torch_style["b2"])
    f2_nhwc = jnp.transpose(f2, (0, 2, 3, 1))
    hm = jax.nn.sigmoid(
        jnp.einsum("bhwc,ck->bhwk", f2_nhwc, torch_style["wh"]) + torch_style["bh"])
    rg = jnp.einsum("bhwc,ck->bhwk", f2_nhwc, torch_style["wr"]) + torch_style["br"]
    return hm, rg


if __name__ == "__main__":
    B, Cin, H, W = 2, 4, 16, 16
    C1, C2, K = 16, 32, 3

    key = jax.random.PRNGKey(0)
    k_img, k_par = jax.random.split(key)
    images = jax.random.normal(k_img, (B, Cin, H, W), jnp.float32)
    params, torch_style = init_params(k_par, Cin, C1, C2, K)

    (heatmap, regression), eval_utils, vis = keypoint_detector_forward(
        images, params, K)
    jax.block_until_ready((heatmap, regression))

    # Numerical check against the f32 reference (bf16 MXU operands -> relaxed tol).
    ref_hm, ref_rg = reference_forward(images, torch_style, K)
    assert heatmap.shape == (B, H, W, K) and regression.shape == (B, H, W, 2)
    assert jnp.allclose(heatmap, ref_hm, atol=3e-2, rtol=3e-2), (
        float(jnp.max(jnp.abs(heatmap - ref_hm))))
    assert jnp.allclose(regression, ref_rg, atol=3e-2, rtol=3e-2), (
        float(jnp.max(jnp.abs(regression - ref_rg))))

    print("KERNEL_OK")
</pallas_src>

<mosaic_0001>
module attributes {stable_mosaic.version = 11 : i64} {
  func.func @fused_detector_kernel(%arg0: i32, %arg1: memref<1x256x36xbf16, #tpu.memory_space<vmem>>, %arg2: memref<36x16xbf16, #tpu.memory_space<vmem>>, %arg3: memref<1x16xf32, #tpu.memory_space<vmem>>, %arg4: memref<144x32xbf16, #tpu.memory_space<vmem>>, %arg5: memref<1x32xf32, #tpu.memory_space<vmem>>, %arg6: memref<32x128xbf16, #tpu.memory_space<vmem>>, %arg7: memref<1x128xf32, #tpu.memory_space<vmem>>, %arg8: memref<1x256x128xf32, #tpu.memory_space<vmem>>, %arg9: memref<16x16x144xbf16, #tpu.memory_space<vmem>>) attributes {dimension_semantics = [#tpu.dimension_semantics<parallel>], iteration_bounds = array<i64: 2>, scalar_prefetch = 0 : i64, scratch_operands = 1 : i64, tpu.core_type = #tpu.core_type<tc>, window_params = [{transform_indices = @transform_0, window_bounds = array<i64: 1, 256, 36>}, {pipeline_mode = #tpu.pipeline_mode<synchronous>, transform_indices = @transform_1, window_bounds = array<i64: 36, 16>}, {pipeline_mode = #tpu.pipeline_mode<synchronous>, transform_indices = @transform_2, window_bounds = array<i64: 1, 16>}, {pipeline_mode = #tpu.pipeline_mode<synchronous>, transform_indices = @transform_3, window_bounds = array<i64: 144, 32>}, {pipeline_mode = #tpu.pipeline_mode<synchronous>, transform_indices = @transform_4, window_bounds = array<i64: 1, 32>}, {pipeline_mode = #tpu.pipeline_mode<synchronous>, transform_indices = @transform_5, window_bounds = array<i64: 32, 128>}, {pipeline_mode = #tpu.pipeline_mode<synchronous>, transform_indices = @transform_6, window_bounds = array<i64: 1, 128>}, {transform_indices = @transform_7, window_bounds = array<i64: 1, 256, 128>}]} {
    %c0 = arith.constant 0 : index
    %c0_0 = arith.constant 0 : index
    %c0_1 = arith.constant 0 : index
    %0 = vector.load %arg1[%c0, %c0_0, %c0_1] : memref<1x256x36xbf16, #tpu.memory_space<vmem>>, vector<1x256x36xbf16>
    %1 = vector.shape_cast %0 : vector<1x256x36xbf16> to vector<256x36xbf16>
    %c0_2 = arith.constant 0 : index
    %c0_3 = arith.constant 0 : index
    %2 = vector.load %arg2[%c0_2, %c0_3] : memref<36x16xbf16, #tpu.memory_space<vmem>>, vector<36x16xbf16>
    %cst = arith.constant dense<0.000000e+00> : vector<256x16xf32>
    %3 = tpu.matmul %1, %2, %cst {dimension_numbers = #tpu.dot_dimension_numbers<[1], [0], [0], [1], [0, 0, 1, 1], [], []>} : vector<256x36xbf16>, vector<36x16xbf16>, vector<256x16xf32> -> vector<256x16xf32>
    %c0_4 = arith.constant 0 : index
    %c0_5 = arith.constant 0 : index
    %4 = vector.load %arg3[%c0_4, %c0_5] : memref<1x16xf32, #tpu.memory_space<vmem>>, vector<1x16xf32>
    %5 = vector.broadcast %4 : vector<1x16xf32> to vector<256x16xf32>
    %6 = arith.addf %3, %5 : vector<256x16xf32>
    %cst_6 = arith.constant 0.000000e+00 : f32
    %7 = vector.broadcast %cst_6 : f32 to vector<256x16xf32>
    %8 = arith.maximumf %6, %7 : vector<256x16xf32>
    %9 = arith.truncf %8 : vector<256x16xf32> to vector<256x16xbf16>
    %10 = vector.shape_cast %9 : vector<256x16xbf16> to vector<16x16x16xbf16>
    %cst_7 = arith.constant 0.000000e+00 : bf16
    %11 = vector.broadcast %cst_7 : bf16 to vector<1x16x16xbf16>
    %cst_8 = arith.constant 0.000000e+00 : bf16
    %12 = vector.broadcast %cst_8 : bf16 to vector<16x1x16xbf16>
    %c0_9 = arith.constant 0 : index
    %c0_10 = arith.constant 0 : index
    %c0_11 = arith.constant 0 : index
    %13 = vector.load %arg9[%c0_9, %c0_10, %c0_11] : memref<16x16x144xbf16, #tpu.memory_space<vmem>>, vector<1x16x16xbf16>
    tpu.vector_store %arg9[%c0_9, %c0_10, %c0_11], %11 {strides = array<i32>} : memref<16x16x144xbf16, #tpu.memory_space<vmem>>, vector<1x16x16xbf16>,
    %c0_12 = arith.constant 0 : index
    %c0_13 = arith.constant 0 : index
    %c0_14 = arith.constant 0 : index
    %14 = vector.load %arg9[%c0_12, %c0_13, %c0_14] : memref<16x16x144xbf16, #tpu.memory_space<vmem>>, vector<16x1x16xbf16>
    tpu.vector_store %arg9[%c0_12, %c0_13, %c0_14], %12 {strides = array<i32>} : memref<16x16x144xbf16, #tpu.memory_space<vmem>>, vector<16x1x16xbf16>,
    %15 = vector.extract_strided_slice %10 {offsets = [0, 0, 0], sizes = [15, 15, 16], strides = [1, 1, 1]} : vector<16x16x16xbf16> to vector<15x15x16xbf16>
    %c1 = arith.constant 1 : index
    %c1_15 = arith.constant 1 : index
    %c0_16 = arith.constant 0 : index
    %16 = vector.load %arg9[%c1, %c1_15, %c0_16] : memref<16x16x144xbf16, #tpu.memory_space<vmem>>, vector<15x15x16xbf16>
    tpu.vector_store %arg9[%c1, %c1_15, %c0_16], %15 {strides = array<i32>} : memref<16x16x144xbf16, #tpu.memory_space<vmem>>, vector<15x15x16xbf16>,
    %c0_17 = arith.constant 0 : index
    %c0_18 = arith.constant 0 : index
    %c16 = arith.constant 16 : index
    %17 = vector.load %arg9[%c0_17, %c0_18, %c16] : memref<16x16x144xbf16, #tpu.memory_space<vmem>>, vector<1x16x16xbf16>
    tpu.vector_store %arg9[%c0_17, %c0_18, %c16], %11 {strides = array<i32>} : memref<16x16x144xbf16, #tpu.memory_space<vmem>>, vector<1x16x16xbf16>,
    %18 = vector.extract_strided_slice %10 {offsets = [0, 0, 0], sizes = [15, 16, 16], strides = [1, 1, 1]} : vector<16x16x16xbf16> to vector<15x16x16xbf16>
    %c1_19 = arith.constant 1 : index
    %c0_20 = arith.constant 0 : index
    %c16_21 = arith.constant 16 : index
    %19 = vector.load %arg9[%c1_19, %c0_20, %c16_21] : memref<16x16x144xbf16, #tpu.memory_space<vmem>>, vector<15x16x16xbf16>
    tpu.vector_store %arg9[%c1_19, %c0_20, %c16_21], %18 {strides = array<i32>} : memref<16x16x144xbf16, #tpu.memory_space<vmem>>, vector<15x16x16xbf16>,
    %c0_22 = arith.constant 0 : index
    %c0_23 = arith.constant 0 : index
    %c32 = arith.constant 32 : index
    %20 = vector.load %arg9[%c0_22, %c0_23, %c32] : memref<16x16x144xbf16, #tpu.memory_space<vmem>>, vector<1x16x16xbf16>
    tpu.vector_store %arg9[%c0_22, %c0_23, %c32], %11 {strides = array<i32>} : memref<16x16x144xbf16, #tpu.memory_space<vmem>>, vector<1x16x16xbf16>,
    %c0_24 = arith.constant 0 : index
    %c15 = arith.constant 15 : index
    %c32_25 = arith.constant 32 : index
    %21 = vector.load %arg9[%c0_24, %c15, %c32_25] : memref<16x16x144xbf16, #tpu.memory_space<vmem>>, vector<16x1x16xbf16>
    tpu.vector_store %arg9[%c0_24, %c15, %c32_25], %12 {strides = array<i32>} : memref<16x16x144xbf16, #tpu.memory_space<vmem>>, vector<16x1x16xbf16>,
    %22 = vector.extract_strided_slice %10 {offsets = [0, 1, 0], sizes = [15, 15, 16], strides = [1, 1, 1]} : vector<16x16x16xbf16> to vector<15x15x16xbf16>
    %c1_26 = arith.constant 1 : index
    %c0_27 = arith.constant 0 : index
    %c32_28 = arith.constant 32 : index
    %23 = vector.load %arg9[%c1_26, %c0_27, %c32_28] : memref<16x16x144xbf16, #tpu.memory_space<vmem>>, vector<15x15x16xbf16>
    tpu.vector_store %arg9[%c1_26, %c0_27, %c32_28], %22 {strides = array<i32>} : memref<16x16x144xbf16, #tpu.memory_space<vmem>>, vector<15x15x16xbf16>,
    %c0_29 = arith.constant 0 : index
    %c0_30 = arith.constant 0 : index
    %c48 = arith.constant 48 : index
    %24 = vector.load %arg9[%c0_29, %c0_30, %c48] : memref<16x16x144xbf16, #tpu.memory_space<vmem>>, vector<16x1x16xbf16>
    tpu.vector_store %arg9[%c0_29, %c0_30, %c48], %12 {strides = array<i32>} : memref<16x16x144xbf16, #tpu.memory_space<vmem>>, vector<16x1x16xbf16>,
    %25 = vector.extract_strided_slice %10 {offsets = [0, 0, 0], sizes = [16, 15, 16], strides = [1, 1, 1]} : vector<16x16x16xbf16> to vector<16x15x16xbf16>
    %c0_31 = arith.constant 0 : index
    %c1_32 = arith.constant 1 : index
    %c48_33 = arith.constant 48 : index
    %26 = vector.load %arg9[%c0_31, %c1_32, %c48_33] : memref<16x16x144xbf16, #tpu.memory_space<vmem>>, vector<16x15x16xbf16>
    tpu.vector_store %arg9[%c0_31, %c1_32, %c48_33], %25 {strides = array<i32>} : memref<16x16x144xbf16, #tpu.memory_space<vmem>>, vector<16x15x16xbf16>,
    %c0_34 = arith.constant 0 : index
    %c0_35 = arith.constant 0 : index
    %c64 = arith.constant 64 : index
    %27 = vector.load %arg9[%c0_34, %c0_35, %c64] : memref<16x16x144xbf16, #tpu.memory_space<vmem>>, vector<16x16x16xbf16>
    tpu.vector_store %arg9[%c0_34, %c0_35, %c64], %10 {strides = array<i32>} : memref<16x16x144xbf16, #tpu.memory_space<vmem>>, vector<16x16x16xbf16>,
    %c0_36 = arith.constant 0 : index
    %c15_37 = arith.constant 15 : index
    %c80 = arith.constant 80 : index
    %28 = vector.load %arg9[%c0_36, %c15_37, %c80] : memref<16x16x144xbf16, #tpu.memory_space<vmem>>, vector<16x1x16xbf16>
    tpu.vector_store %arg9[%c0_36, %c15_37, %c80], %12 {strides = array<i32>} : memref<16x16x144xbf16, #tpu.memory_space<vmem>>, vector<16x1x16xbf16>,
    %29 = vector.extract_strided_slice %10 {offsets = [0, 1, 0], sizes = [16, 15, 16], strides = [1, 1, 1]} : vector<16x16x16xbf16> to vector<16x15x16xbf16>
    %c0_38 = arith.constant 0 : index
    %c0_39 = arith.constant 0 : index
    %c80_40 = arith.constant 80 : index
    %30 = vector.load %arg9[%c0_38, %c0_39, %c80_40] : memref<16x16x144xbf16, #tpu.memory_space<vmem>>, vector<16x15x16xbf16>
    tpu.vector_store %arg9[%c0_38, %c0_39, %c80_40], %29 {strides = array<i32>} : memref<16x16x144xbf16, #tpu.memory_space<vmem>>, vector<16x15x16xbf16>,
    %c15_41 = arith.constant 15 : index
    %c0_42 = arith.constant 0 : index
    %c96 = arith.constant 96 : index
    %31 = vector.load %arg9[%c15_41, %c0_42, %c96] : memref<16x16x144xbf16, #tpu.memory_space<vmem>>, vector<1x16x16xbf16>
    tpu.vector_store %arg9[%c15_41, %c0_42, %c96], %11 {strides = array<i32>} : memref<16x16x144xbf16, #tpu.memory_space<vmem>>, vector<1x16x16xbf16>,
    %c0_43 = arith.constant 0 : index
    %c0_44 = arith.constant 0 : index
    %c96_45 = arith.constant 96 : index
    %32 = vector.load %arg9[%c0_43, %c0_44, %c96_45] : memref<16x16x144xbf16, #tpu.memory_space<vmem>>, vector<16x1x16xbf16>
    tpu.vector_store %arg9[%c0_43, %c0_44, %c96_45], %12 {strides = array<i32>} : memref<16x16x144xbf16, #tpu.memory_space<vmem>>, vector<16x1x16xbf16>,
    %33 = vector.extract_strided_slice %10 {offsets = [1, 0, 0], sizes = [15, 15, 16], strides = [1, 1, 1]} : vector<16x16x16xbf16> to vector<15x15x16xbf16>
    %c0_46 = arith.constant 0 : index
    %c1_47 = arith.constant 1 : index
    %c96_48 = arith.constant 96 : index
    %34 = vector.load %arg9[%c0_46, %c1_47, %c96_48] : memref<16x16x144xbf16, #tpu.memory_space<vmem>>, vector<15x15x16xbf16>
    tpu.vector_store %arg9[%c0_46, %c1_47, %c96_48], %33 {strides = array<i32>} : memref<16x16x144xbf16, #tpu.memory_space<vmem>>, vector<15x15x16xbf16>,
    %c15_49 = arith.constant 15 : index
    %c0_50 = arith.constant 0 : index
    %c112 = arith.constant 112 : index
    %35 = vector.load %arg9[%c15_49, %c0_50, %c112] : memref<16x16x144xbf16, #tpu.memory_space<vmem>>, vector<1x16x16xbf16>
    tpu.vector_store %arg9[%c15_49, %c0_50, %c112], %11 {strides = array<i32>} : memref<16x16x144xbf16, #tpu.memory_space<vmem>>, vector<1x16x16xbf16>,
    %36 = vector.extract_strided_slice %10 {offsets = [1, 0, 0], sizes = [15, 16, 16], strides = [1, 1, 1]} : vector<16x16x16xbf16> to vector<15x16x16xbf16>
    %c0_51 = arith.constant 0 : index
    %c0_52 = arith.constant 0 : index
    %c112_53 = arith.constant 112 : index
    %37 = vector.load %arg9[%c0_51, %c0_52, %c112_53] : memref<16x16x144xbf16, #tpu.memory_space<vmem>>, vector<15x16x16xbf16>
    tpu.vector_store %arg9[%c0_51, %c0_52, %c112_53], %36 {strides = array<i32>} : memref<16x16x144xbf16, #tpu.memory_space<vmem>>, vector<15x16x16xbf16>,
    %c15_54 = arith.constant 15 : index
    %c0_55 = arith.constant 0 : index
    %c128 = arith.constant 128 : index
    %38 = vector.load %arg9[%c15_54, %c0_55, %c128] : memref<16x16x144xbf16, #tpu.memory_space<vmem>>, vector<1x16x16xbf16>
    tpu.vector_store %arg9[%c15_54, %c0_55, %c128], %11 {strides = array<i32>} : memref<16x16x144xbf16, #tpu.memory_space<vmem>>, vector<1x16x16xbf16>,
    %c0_56 = arith.constant 0 : index
    %c15_57 = arith.constant 15 : index
    %c128_58 = arith.constant 128 : index
    %39 = vector.load %arg9[%c0_56, %c15_57, %c128_58] : memref<16x16x144xbf16, #tpu.memory_space<vmem>>, vector<16x1x16xbf16>
    tpu.vector_store %arg9[%c0_56, %c15_57, %c128_58], %12 {strides = array<i32>} : memref<16x16x144xbf16, #tpu.memory_space<vmem>>, vector<16x1x16xbf16>,
    %40 = vector.extract_strided_slice %10 {offsets = [1, 1, 0], sizes = [15, 15, 16], strides = [1, 1, 1]} : vector<16x16x16xbf16> to vector<15x15x16xbf16>
    %c0_59 = arith.constant 0 : index
    %c0_60 = arith.constant 0 : index
    %c128_61 = arith.constant 128 : index
    %41 = vector.load %arg9[%c0_59, %c0_60, %c128_61] : memref<16x16x144xbf16, #tpu.memory_space<vmem>>, vector<15x15x16xbf16>
    tpu.vector_store %arg9[%c0_59, %c0_60, %c128_61], %40 {strides = array<i32>} : memref<16x16x144xbf16, #tpu.memory_space<vmem>>, vector<15x15x16xbf16>,
    %c0_62 = arith.constant 0 : index
    %c0_63 = arith.constant 0 : index
    %c0_64 = arith.constant 0 : index
    %42 = vector.load %arg9[%c0_62, %c0_63, %c0_64] : memref<16x16x144xbf16, #tpu.memory_space<vmem>>, vector<16x16x144xbf16>
    %43 = vector.shape_cast %42 : vector<16x16x144xbf16> to vector<256x144xbf16>
    %c0_65 = arith.constant 0 : index
    %c0_66 = arith.constant 0 : index
    %44 = vector.load %arg4[%c0_65, %c0_66] : memref<144x32xbf16, #tpu.memory_space<vmem>>, vector<144x32xbf16>
    %cst_67 = arith.constant dense<0.000000e+00> : vector<256x32xf32>
    %45 = tpu.matmul %43, %44, %cst_67 {dimension_numbers = #tpu.dot_dimension_numbers<[1], [0], [0], [1], [0, 0, 1, 1], [], []>} : vector<256x144xbf16>, vector<144x32xbf16>, vector<256x32xf32> -> vector<256x32xf32>
    %c0_68 = arith.constant 0 : index
    %c0_69 = arith.constant 0 : index
    %46 = vector.load %arg5[%c0_68, %c0_69] : memref<1x32xf32, #tpu.memory_space<vmem>>, vector<1x32xf32>
    %47 = vector.broadcast %46 : vector<1x32xf32> to vector<256x32xf32>
    %48 = arith.addf %45, %47 : vector<256x32xf32>
    %cst_70 = arith.constant 0.000000e+00 : f32
    %49 = vector.broadcast %cst_70 : f32 to vector<256x32xf32>
    %50 = arith.maximumf %48, %49 : vector<256x32xf32>
    %51 = arith.truncf %50 : vector<256x32xf32> to vector<256x32xbf16>
    %c0_71 = arith.constant 0 : index
    %c0_72 = arith.constant 0 : index
    %52 = vector.load %arg6[%c0_71, %c0_72] : memref<32x128xbf16, #tpu.memory_space<vmem>>, vector<32x128xbf16>
    %cst_73 = arith.constant dense<0.000000e+00> : vector<256x128xf32>
    %53 = tpu.matmul %51, %52, %cst_73 {dimension_numbers = #tpu.dot_dimension_numbers<[1], [0], [0], [1], [0, 0, 1, 1], [], []>} : vector<256x32xbf16>, vector<32x128xbf16>, vector<256x128xf32> -> vector<256x128xf32>
    %c0_74 = arith.constant 0 : index
    %c0_75 = arith.constant 0 : index
    %54 = vector.load %arg7[%c0_74, %c0_75] : memref<1x128xf32, #tpu.memory_space<vmem>>, vector<1x128xf32>
    %55 = vector.broadcast %54 : vector<1x128xf32> to vector<256x128xf32>
    %56 = arith.addf %53, %55 : vector<256x128xf32>
    %57 = tpu.iota {dimensions = array<i32: 1>} : vector<256x128xi32>
    %c3_i32 = arith.constant 3 : i32
    %58 = vector.broadcast %c3_i32 : i32 to vector<256x128xi32>
    %59 = arith.cmpi slt, %57, %58 : vector<256x128xi32>
    %60 = arith.negf %56 : vector<256x128xf32>
    %61 = math.exp %60 : vector<256x128xf32>
    %cst_76 = arith.constant 1.000000e+00 : f32
    %62 = vector.broadcast %cst_76 : f32 to vector<256x128xf32>
    %63 = arith.addf %62, %61 : vector<256x128xf32>
    %64 = arith.divf %62, %63 : vector<256x128xf32>
    %65 = arith.select %59, %64, %56 : vector<256x128xi1>, vector<256x128xf32>
    %c0_77 = arith.constant 0 : index
    %c0_78 = arith.constant 0 : index
    %c0_79 = arith.constant 0 : index
    %66 = vector.load %arg8[%c0_77, %c0_78, %c0_79] : memref<1x256x128xf32, #tpu.memory_space<vmem>>, vector<1x256x128xf32>
    %67 = vector.shape_cast %66 : vector<1x256x128xf32> to vector<256x128xf32>
    %68 = vector.shape_cast %65 : vector<256x128xf32> to vector<1x256x128xf32>
    tpu.vector_store %arg8[%c0_77, %c0_78, %c0_79], %68 {strides = array<i32>} : memref<1x256x128xf32, #tpu.memory_space<vmem>>, vector<1x256x128xf32>,
    return
  }
  func.func @transform_0(%arg0: i32) -> (i32, i32, i32) {
    %c0_i32 = arith.constant 0 : i32
    %c0_i32_0 = arith.constant 0 : i32
    %c0_i32_1 = arith.constant 0 : i32
    return %arg0, %c0_i32, %c0_i32_0 : i32, i32, i32
  }
  func.func @transform_1(%arg0: i32) -> (i32, i32) {
    %c0_i32 = arith.constant 0 : i32
    %c0_i32_0 = arith.constant 0 : i32
    %c0_i32_1 = arith.constant 0 : i32
    return %c0_i32, %c0_i32_0 : i32, i32
  }
  func.func @transform_2(%arg0: i32) -> (i32, i32) {
    %c0_i32 = arith.constant 0 : i32
    %c0_i32_0 = arith.constant 0 : i32
    %c0_i32_1 = arith.constant 0 : i32
    return %c0_i32, %c0_i32_0 : i32, i32
  }
  func.func @transform_3(%arg0: i32) -> (i32, i32) {
    %c0_i32 = arith.constant 0 : i32
    %c0_i32_0 = arith.constant 0 : i32
    %c0_i32_1 = arith.constant 0 : i32
    return %c0_i32, %c0_i32_0 : i32, i32
  }
  func.func @transform_4(%arg0: i32) -> (i32, i32) {
    %c0_i32 = arith.constant 0 : i32
    %c0_i32_0 = arith.constant 0 : i32
    %c0_i32_1 = arith.constant 0 : i32
    return %c0_i32, %c0_i32_0 : i32, i32
  }
  func.func @transform_5(%arg0: i32) -> (i32, i32) {
    %c0_i32 = arith.constant 0 : i32
    %c0_i32_0 = arith.constant 0 : i32
    %c0_i32_1 = arith.constant 0 : i32
    return %c0_i32, %c0_i32_0 : i32, i32
  }
  func.func @transform_6(%arg0: i32) -> (i32, i32) {
    %c0_i32 = arith.constant 0 : i32
    %c0_i32_0 = arith.constant 0 : i32
    %c0_i32_1 = arith.constant 0 : i32
    return %c0_i32, %c0_i32_0 : i32, i32
  }
  func.func @transform_7(%arg0: i32) -> (i32, i32, i32) {
    %c0_i32 = arith.constant 0 : i32
    %c0_i32_0 = arith.constant 0 : i32
    %c0_i32_1 = arith.constant 0 : i32
    return %arg0, %c0_i32, %c0_i32_0 : i32, i32, i32
  }
}

</mosaic_0001>

<bundles_post_ra>
// kernel: tpu_custom_call.1
= control target key start
LH: loop header
LB: loop body
LE: loop exit
PB: predicated region body
PF: predicated region fallthrough
CT: control target
= control target key end

     0   :  { %12 = vsyncpa [#allocation4], 0  ;;  %s4895_s0 = inlined_call_operand.vmem [shape: bf16[2,256,36], index: 0, kind: input, shape index: {}]   ;;  %s4896_s1 = inlined_call_operand.vmem [shape: bf16[36,16], index: 1, kind: input, shape index: {}]   ;;  %s4897_s2 = inlined_call_operand.vmem [shape: f32[1,16], index: 2, kind: input, shape index: {}]   ;;  %s4898_s3 = inlined_call_operand.vmem [shape: bf16[144,32], index: 3, kind: input, shape index: {}]   ;;  %s4899_s4 = inlined_call_operand.vmem [shape: f32[1,32], index: 4, kind: input, shape index: {}]   ;;  %s4900_s5 = inlined_call_operand.vmem [shape: bf16[32,128], index: 5, kind: input, shape index: {}]   ;;  %s4901_s6 = inlined_call_operand.vmem [shape: f32[1,128], index: 6, kind: input, shape index: {}]   ;;  %s4902_s7 = inlined_call_operand.hbm [shape: f32[2,256,128], index: 7, kind: output, shape index: {}]  }
   0x1   :  { %14 = vsyncpa [#allocation4 + $0x1], 0  ;;  %s3360_s24 = smov 0   ;;  %s3362_s25 = smov 0  }
   0x2   :  { %s3364_s26 = smov 0   ;;  %s3366_s27 = smov 0  }
   0x3 LB: > { %s3381_s28 = sadd.s32 4294967295, %s3307_s27   ;;  %s2780_s29 = sadd.s32 4294967294, %s3307_s27   ;;  %s3307_s27 = sphi %s3366_s27, %s4932_s27   ;;  %s3303_s26 = sphi %s3364_s26, %s4931_s26   ;;  %s3299_s25 = sphi %s3362_s25, %s4930_s25   ;;  %s3295_s24 = sphi %s3360_s24, %s4929_s24  }
   0x4   : > { %s3385_s30 = sadd.s32 1, %s3307_s27   ;;  %s179_s8 = sadd.s32 1, %s3303_s26 }
   0x5   : > { %s176_s9 = ssub.s32 %s3307_s27, %s3385_s30  ;;  %p189_p0 = scmp.ne.s32.totalorder %s3303_s26, %s3299_s25 }
   0x6   : > { %p177_p1 = scmp.eq.s32.totalorder %s176_s9, 0  ;;  %p190_p2 = scmp.eq.s32.totalorder %s3381_s28, 1 }
   0x7   : > { %p195_p3 = scmp.ne.s32.totalorder %s3299_s25, %s3295_s24  ;;  %p196_p4 = scmp.eq.s32.totalorder %s2780_s29, 1 }
   0x8   : > { %s3396_s10 = scalar_select %p177_p1, %s3303_s26, %s179_s8  }
   0x9   : > { %p3398_p5 = por %p190_p2, %p189_p0  ;;  %p3402_p6 = por %p196_p4, %p195_p3 }
   0xa   : > { %p2783_p7 = scmp.ge.s32.totalorder %s3307_s27, 1  ;;  %p240_p8 = scmp.lt.s32.totalorder %s3307_s27, 3 }
   0xc   : > { %p241_p9 = pnand %p2783_p7, %p240_p8 }
   0xd   : > { %v3086_v0 = vld [vmem:[%s4896_s1] sm:$0xff] (!%p241_p9)   ;;  %v3087_v1 = vld [vmem:[%s4896_s1 + $0x8] sm:$0xff] (!%p241_p9)   ;;  %p272_p10 = scmp.lt.s32.totalorder (!%p241_p9), %s3381_s28, 1  ;;  %v3088_v2 = vld [vmem:[%s4896_s1 + $0x10] ss:$0 sps:$4 sm:$0x33] (!%p241_p9)  }
   0xe   : > { %244 = sbr.rel (%p241_p9) target bundleno = 1081 (0x439), region = 48  ;;  %2944 = vmatprep.subr.bf16.mxu0 (!%p241_p9), %v3086_v0  ;;  %vm466_vm0 = vcmask (!%p241_p9), 1041408   ;;  %vm417_vm1 = vcmask (!%p241_p9), 293888   ;;  %vm981_vm2 = vsmask.f32 (!%p241_p9), 7966  ;;  %vm1733_vm3 = vcmask (!%p241_p9), 130055  }
   0xf   : > { %2945 = vmatpush3.bf16.msra.mxu0 (!%p241_p9), %v3086_v0  ;;  %v468_v4 = vsel (!%p241_p9), %vm466_vm0, %v3088_v2, 0  ;;  %vm681_vm4 = vcmask (!%p241_p9), 122880   ;;  %vm682_vm5 = vsmask.f32 (!%p241_p9), 256  ;;  %vm3457_vm6 = vmand (!%p241_p9), %vm1733_vm3, %vm981_vm2  ;;  %v1735_v21 = vld [vmem:[#allocation2 + $0x8] sm:$0x80] (!%p241_p9) }
  0x10   : > { %2946 = vmatprep.subr.bf16.mxu0 (!%p241_p9), %v3087_v1  ;;  %v690_v22 = vld [vmem:[#allocation2 + $0x20] sm:$0x1] (!%p241_p9)  ;;  %v1736_v23 = vsel (!%p241_p9), %vm3457_vm6, 0, %v1735_v21  ;;  %vm3464_vm7 = vmand (!%p241_p9), %vm681_vm4, %vm682_vm5  ;;  %v687_v25 = vld [vmem:[#allocation2 + $0x10] sm:$0x1] (!%p241_p9)  ;;  %vm679_vm8 = vcmask (!%p241_p9), 130048  }
  0x11   : > { %1737 = vst [vmem:[#allocation2 + $0x8] sm:$0x80] (!%p241_p9), %v1736_v23  ;;  %v691_v26 = vsel (!%p241_p9), %vm3464_vm7, 0, %v690_v22  ;;  %v688_v27 = vsel (!%p241_p9), %vm3464_vm7, 0, %v687_v25  ;;  %v1738_v28 = vld [vmem:[#allocation2 + $0x18] sm:$0x80] (!%p241_p9) }
  0x12   : > { %692 = vst [vmem:[#allocation2 + $0x20] sm:$0x1] (!%p241_p9), %v691_v26  ;;  %689 = vst [vmem:[#allocation2 + $0x10] sm:$0x1] (!%p241_p9), %v688_v27  ;;  %v1741_v29 = vld [vmem:[#allocation2 + $0x28] sm:$0x80] (!%p241_p9) }
  0x13   : > { %2947 = vmatpush3.bf16.msra.mxu0 (!%p241_p9), %v3087_v1  ;;  %v696_v30 = vld [vmem:[#allocation2 + $0x40] sm:$0x1] (!%p241_p9)  ;;  %v1739_v31 = vsel (!%p241_p9), %vm3457_vm6, 0, %v1738_v28  ;;  %v1742_v32 = vsel (!%p241_p9), %vm3457_vm6, 0, %v1741_v29  ;;  %v693_v34 = vld [vmem:[#allocation2 + $0x30] sm:$0x1] (!%p241_p9) }
  0x14   : > { %3036 = vmatprep.subr.msk.bf16.mxu0 (!%p241_p9), %vm466_vm0, %v3088_v2  ;;  %v697_v33 = vsel (!%p241_p9), %vm3464_vm7, 0, %v696_v30  ;;  %1740 = vst [vmem:[#allocation2 + $0x18] sm:$0x80] (!%p241_p9), %v1739_v31  ;;  %1743 = vst [vmem:[#allocation2 + $0x28] sm:$0x80] (!%p241_p9), %v1742_v32  ;;  %v694_v35 = vsel (!%p241_p9), %vm3464_vm7, 0, %v693_v34 }
  0x15   : > { %s273_s19 = scalar_select %p272_p10, %s3381_s28, 1  ;;  %698 = vst [vmem:[#allocation2 + $0x40] sm:$0x1] %v697_v33  ;;  %695 = vst [vmem:[#allocation2 + $0x30] sm:$0x1] %v694_v35  ;;  %v3309_v60 = vmov 0  }
  0x16   : > { %v1747_v36 = vld [vmem:[#allocation2 + $0x48] sm:$0x80]  ;;  %v1744_v37 = vld [vmem:[#allocation2 + $0x38] sm:$0x80]  ;;  %v702_v40 = vld [vmem:[#allocation2 + $0x60] sm:$0x1]  ;;  %3018 = vmatprep.subr.bf16.mxu1 %v3309_v60 }
  0x17   : > { %s2905_s20 = sshll.u32 %s273_s19, 7  ;;  %2949 = vmatpush3.bf16.msra.mxu0 %v468_v4  ;;  %v1748_v38 = vsel %vm3457_vm6, 0, %v1747_v36  ;;  %v1745_v39 = vsel %vm3457_vm6, 0, %v1744_v37  ;;  %v699_v41 = vld [vmem:[#allocation2 + $0x50] sm:$0x1]  ;;  %v703_v42 = vsel %vm3464_vm7, 0, %v702_v40 }
  0x18   : > { %s3422_s23 = scalar_lea.vmem %s4895_s0, %s2905_s20  ;;  %1749 = vst [vmem:[#allocation2 + $0x48] sm:$0x80] %v1748_v38  ;;  %1746 = vst [vmem:[#allocation2 + $0x38] sm:$0x80] %v1745_v39  ;;  %v700_v43 = vsel %vm3464_vm7, 0, %v699_v41  ;;  %2003 = vmatprep.subr.bf16.mxu0 %v3309_v60  ;;  %vm901_vm9 = vcmask 261248  }
  0x19   : > { %v3089_v3 = vld [vmem:[%s3422_s23] sm:$0xff]   ;;  %v3090_v5 = vld [vmem:[%s3422_s23 + $0x8] sm:$0xff]   ;;  %v3091_v6 = vld [vmem:[%s3422_s23 + $0x10] sm:$0xff]   ;;  %704 = vst [vmem:[#allocation2 + $0x60] sm:$0x1] %v703_v42  ;;  %vm978_vm10 = vcmask 392448  }
  0x1a   : > { %2950 = vmatprep.mubr.msk.bf16.mxu0 %vm417_vm1, %v3089_v3  ;;  %v3092_v7 = vld [vmem:[%s3422_s23 + $0x18] sm:$0xff]   ;;  %v3093_v8 = vld [vmem:[%s3422_s23 + $0x20] sm:$0xff]   ;;  %v3094_v9 = vld [vmem:[%s3422_s23 + $0x28] sm:$0xff]   ;;  %701 = vst [vmem:[#allocation2 + $0x50] sm:$0x1] %v700_v43  ;;  %vm980_vm11 = vcmask 392455  }
  0x1b   : > { %2951 = vmatmul.mubr.msk.bf16.vlgmr.msra.gmra.mrb[0].mxu0 %vm417_vm1, %v3090_v5  ;;  %v3095_v10 = vld [vmem:[%s3422_s23 + $0x30] sm:$0xff]   ;;  %v3096_v11 = vld [vmem:[%s3422_s23 + $0x38] sm:$0xff]   ;;  %v3097_v12 = vld [vmem:[%s3422_s23 + $0x40] sm:$0xff]   ;;  %680 = vst.msk [vmem:[#allocation2] sm:$0xff] %vm679_vm8, %v3309_v60  ;;  %vm1154_vm13 = vcmask 516480   ;;  %s3310_s9 = smov 64  }
  0x1c   : > { %2954 = vmatprep.mubr.msk.bf16.mxu0 %vm417_vm1, %v3091_v6  ;;  %v3098_v13 = vld [vmem:[%s3422_s23 + $0x48] sm:$0xff]   ;;  %v3099_v14 = vld [vmem:[%s3422_s23 + $0x50] sm:$0xff]   ;;  %v3100_v15 = vld [vmem:[%s3422_s23 + $0x58] sm:$0xff]   ;;  %1732 = vst.msk [vmem:[#allocation2 + $0xf8] sm:$0xff] %vm679_vm8, %v3309_v60  ;;  %vm1107_vm15 = vsmask.f32 7424 }
  0x1d   : > { %v3101_v16 = vld [vmem:[%s3422_s23 + $0x60] sm:$0xff]   ;;  %v3102_v17 = vld [vmem:[%s3422_s23 + $0x68] sm:$0xff]   ;;  %v3103_v18 = vld [vmem:[%s3422_s23 + $0x70] sm:$0xff]   ;;  %vm854_vm0 = vsmask.f32 7938  ;;  %s3311_s13 = smov 16  }
  0x1e   : > { %v3104_v19 = vld [vmem:[%s3422_s23 + $0x78] sm:$0xff]   ;;  %v1753_v44 = vld [vmem:[#allocation2 + $0x68] sm:$0x80]  ;;  %v705_v46 = vld [vmem:[#allocation2 + $0x70] sm:$0x1]  ;;  %s3312_s14 = smov 32  }
  0x1f   : > { %v1750_v45 = vld [vmem:[#allocation2 + $0x58] sm:$0x80]  ;;  %v1754_v47 = vsel %vm3457_vm6, 0, %v1753_v44  ;;  %v706_v49 = vsel %vm3464_vm7, 0, %v705_v46  ;;  %v708_v50 = vld [vmem:[#allocation2 + $0x80] sm:$0x1]  ;;  %vm3530_vm12 = vmand %vm980_vm11, %vm981_vm2 }
  0x20   : > { %v1751_v48 = vsel %vm3457_vm6, 0, %v1750_v45  ;;  %1755 = vst [vmem:[#allocation2 + $0x68] sm:$0x80] %v1754_v47  ;;  %707 = vst [vmem:[#allocation2 + $0x70] sm:$0x1] %v706_v49  ;;  %v709_v51 = vsel %vm3464_vm7, 0, %v708_v50 }
  0x21   : > { %1752 = vst [vmem:[#allocation2 + $0x58] sm:$0x80] %v1751_v48  ;;  %710 = vst [vmem:[#allocation2 + $0x80] sm:$0x1] %v709_v51  ;;  %v1756_v52 = vld [vmem:[#allocation2 + $0x78] sm:$0x80] }
  0x22   : > { %v1759_v53 = vld [vmem:[#allocation2 + $0x88] sm:$0x80]  ;;  %v711_v54 = vld [vmem:[#allocation2 + $0x90] sm:$0x1]  ;;  %v1757_v55 = vsel %vm3457_vm6, 0, %v1756_v52  ;;  %vm3537_vm14 = vmand %vm1154_vm13, %vm682_vm5  ;;  %s3313_s15 = smov 48  }
  0x23   : > { %2955 = vmatmul.mubr.msk.bf16.gmra.mrb[4].mxu0 %vm417_vm1, %v3092_v7  ;;  %v1760_v56 = vsel %vm3457_vm6, 0, %v1759_v53  ;;  %v712_v57 = vsel %vm3464_vm7, 0, %v711_v54  ;;  %v714_v58 = vld [vmem:[#allocation2 + $0xa0] sm:$0x1]  ;;  %1758 = vst [vmem:[#allocation2 + $0x78] sm:$0x80] %v1757_v55  ;;  %vm3573_vm3 = vmand %vm679_vm8, %vm854_vm0 }
  0x24   : > { %2958 = vmatprep.mubr.msk.bf16.mxu0 %vm417_vm1, %v3093_v8  ;;  %1761 = vst [vmem:[#allocation2 + $0x88] sm:$0x80] %v1760_v56  ;;  %713 = vst [vmem:[#allocation2 + $0x90] sm:$0x1] %v712_v57  ;;  %v715_v59 = vsel %vm3464_vm7, 0, %v714_v58  ;;  %v1799_v39 = vld [vmem:[#allocation2 + $0x8] sm:$0xff] }
  0x25   : > { %716 = vst [vmem:[#allocation2 + $0xa0] sm:$0x1] %v715_v59  ;;  %v684_v61 = vld [vmem:[#allocation2] sm:$0x1]  ;;  %v1765_v63 = vld [vmem:[#allocation2 + $0xa8] sm:$0x80]  ;;  %vm4002_vm11 = vmand %vm978_vm10, %vm1107_vm15 }
  0x26   : > { %v685_v62 = vsel %vm3464_vm7, 0, %v684_v61  ;;  %v1762_v0 = vld [vmem:[#allocation2 + $0x98] sm:$0x80]  ;;  %v1766_v1 = vsel %vm3457_vm6, 0, %v1765_v63  ;;  %v717_v3 = vld [vmem:[#allocation2 + $0xb0] sm:$0x1] }
  0x27   : > { %686 = vst [vmem:[#allocation2] sm:$0x1] %v685_v62  ;;  %v1763_v2 = vsel %vm3457_vm6, 0, %v1762_v0  ;;  %1767 = vst [vmem:[#allocation2 + $0xa8] sm:$0x80] %v1766_v1  ;;  %v718_v4 = vsel %vm3464_vm7, 0, %v717_v3 }
  0x28   : > { %902 = vst.msk [vmem:[#allocation2] sm:$0xff] %vm901_vm9, %v3309_v60  ;;  %1764 = vst [vmem:[#allocation2 + $0x98] sm:$0x80] %v1763_v2  ;;  %v720_v5 = vld [vmem:[#allocation2 + $0xc0] sm:$0x1]  ;;  %v856_v58 = vld [vmem:[#allocation2 + $0x10] sm:$0xff] }
  0x29   : > { %979 = vst.msk [vmem:[#allocation2] sm:$0xff] %vm978_vm10, %v3309_v60  ;;  %719 = vst [vmem:[#allocation2 + $0xb0] sm:$0x1] %v718_v4  ;;  %v721_v6 = vsel %vm3464_vm7, 0, %v720_v5  ;;  %v3527_v7 = vld [vmem:[%s4897_s2] ss:$0 sm:$0xff] }
  0x2a   : > { %722 = vst [vmem:[#allocation2 + $0xc0] sm:$0x1] %v721_v6  ;;  %v1771_v31 = vld [vmem:[#allocation2 + $0xc8] sm:$0x80]  ;;  %v1768_v48 = vld [vmem:[#allocation2 + $0xb8] sm:$0x80] }
  0x2b   : > { %2959 = vmatmul.mubr.msk.bf16.gmra.mrb[8].mxu0 %vm417_vm1, %v3094_v9  ;;  %v1772_v36 = vsel %vm3457_vm6, 0, %v1771_v31  ;;  %v859_v53 = vld [vmem:[#allocation2 + $0x20] sm:$0xff]  ;;  %v723_v54 = vld [vmem:[#allocation2 + $0xd0] sm:$0x1]  ;;  %v1769_v0 = vsel %vm3457_vm6, 0, %v1768_v48  ;;  %v1805_v31 = vld [vmem:[#allocation2 + $0x28] sm:$0xff] }
  0x2c   : > { %2962 = vmatprep.mubr.msk.bf16.mxu0 %vm417_vm1, %v3095_v10  ;;  %1773 = vst [vmem:[#allocation2 + $0xc8] sm:$0x80] %v1772_v36  ;;  %v726_v59 = vld [vmem:[#allocation2 + $0xe0] sm:$0x1]  ;;  %1770 = vst [vmem:[#allocation2 + $0xb8] sm:$0x80] %v1769_v0 }
  0x2d   : > { %v724_v4 = vsel %vm3464_vm7, 0, %v723_v54  ;;  %s3314_s16 = smov 80   ;;  %s3315_s17 = smov 112   ;;  %v3112_v45 = vld [vmem:[%s4898_s3 + $0x38] sm:$0xff]   ;;  %v3113_v52 = vld [vmem:[%s4898_s3 + $0x40] sm:$0xff]   ;;  %vm1259_vm4 = vcmask 523648  }
  0x2e   : > { %725 = vst [vmem:[#allocation2 + $0xd0] sm:$0x1] %v724_v4  ;;  %v1811_v4 = vld [vmem:[#allocation2 + $0x48] sm:$0xff]  ;;  %s3316_s20 = smov 96   ;;  %vm1358_vm13 = vcmask 654848   ;;  %vm1375_vm10 = vcmask 786055  }
  0x2f   : > { %s269_s29 = sand.u32 1, %s3299_s25   ;;  %s2906_s19 = sshll.u32 %s3381_s28, 12 }
  0x30   : > { %s2784_s8 = sshll.u32 %s269_s29, 8  ;;  %s4854_s28 = scalar_lea.sflag [#allocation4], %s269_s29 }
  0x31   : > { %s4651_s18 = scalar_lea.vmem [#allocation3], %s2784_s8 }
  0x32   : > { %s2718_s21 = sshll.u32 %s4651_s18, 4  ;;  %s4841_s21 = int_to_ptr.vmem [resolvable:$true] %s2718_s21 }
  0x33   : > { %2963 = vmatmul.mubr.msk.bf16.gmra.mrb[12].mxu0 %vm417_vm1, %v3096_v11 }
  0x34   : > { %2966 = vmatprep.mubr.msk.bf16.mxu0 %vm417_vm1, %v3097_v12 }
  0x3b   : > { %2967 = vmatmul.mubr.msk.bf16.gmra.mrb[16].mxu0 %vm417_vm1, %v3098_v13 }
  0x3c   : > { %2970 = vmatprep.mubr.msk.bf16.mxu0 %vm417_vm1, %v3099_v14 }
  0x43   : > { %2971 = vmatmul.mubr.msk.bf16.gmra.mrb[20].mxu0 %vm417_vm1, %v3100_v15  ;;  %v983_v15 = vld [vmem:[#allocation2] sm:$0x80] }
  0x44   : > { %2974 = vmatprep.mubr.msk.bf16.mxu0 %vm417_vm1, %v3101_v16  ;;  %v1156_v16 = vld [vmem:[#allocation2] sm:$0x1] }
  0x45   : > { %v1157_v21 = vsel %vm3537_vm14, 0, %v1156_v16 }
  0x46   : > { %1158 = vst [vmem:[#allocation2] sm:$0x1] %v1157_v21 }
  0x4b   : > { %2975 = vmatmul.mubr.msk.bf16.gmra.mrb[24].mxu0 %vm417_vm1, %v3102_v17 }
  0x4c   : > { %2978 = vmatprep.mubr.msk.bf16.mxu0 %vm417_vm1, %v3103_v18 }
  0x53   : > { %2979 = vmatmul.mubr.msk.bf16.gmra.mrb[28].mxu0 %vm417_vm1, %v3104_v19  ;;  %v984_v19 = vsel %vm3530_vm12, 0, %v983_v15  ;;  %vm3566_vm1 = vmand %vm679_vm8, %vm1107_vm15 }
  0x54   : > { %985 = vst [vmem:[#allocation2] sm:$0x80] %v984_v19 }
  0xee   : > { %v2952_v8 = vpop.f32.mrb[0].mxu0 }
  0xef   : > { %v513_v10 = vadd.f32 %v2952_v8, %v3527_v7  ;;  %v504_v11 = vpop.f32.mrb[1].mxu0 }
  0xf0   : > { %v505_v12 = vadd.f32 %v3527_v7, %v504_v11  ;;  %v2953_v13 = vpop.f32.mrb[2].mxu0 }
  0xf1   : > { %v516_v17 = vadd.f32 %v2953_v13, %v3527_v7  ;;  %v507_v18 = vpop.f32.mrb[3].mxu0  ;;  %v633_v23 = vmax.f32 %v513_v10, 0.0  ;;  %v727_v10 = vsel %vm3464_vm7, 0, %v726_v59 }
  0xf2   : > { %v508_v22 = vadd.f32 %v3527_v7, %v507_v18  ;;  %v631_v26 = vmax.f32 %v505_v12, 0.0  ;;  %728 = vst [vmem:[#allocation2 + $0xe0] sm:$0x1] %v727_v10 }
  0xf3   : > { %v634_v25 = vmax.f32 %v516_v17, 0.0 }
  0xf4   : > { %v632_v27 = vmax.f32 %v508_v22, 0.0 }
  0xf5   : > { %v3547_v28 = vpack.c.bf16 %v634_v25, %v633_v23 }
  0xf6   : > { %v3549_v29 = vpack.c.bf16 %v632_v27, %v631_v26  ;;  %v2956_v30 = vpop.f32.mrb[4].mxu0 }
  0xf7   : > { %1312 = vrot.lane.b32.xlu1 %v3547_v28, %s3310_s9  ;;  %920 = vrot.lane.b32.xlu0 %v3547_v28, %s3311_s13  ;;  %v529_v32 = vadd.f32 %v2956_v30, %v3527_v7  ;;  %v520_v33 = vpop.f32.mrb[5].mxu0  ;;  %v740_v34 = vshrl.u32 %v3547_v28, 16  ;;  %v743_v35 = vshll.u32 %v3547_v28, 16 }
  0xf8   : > { %v521_v37 = vadd.f32 %v3527_v7, %v520_v33  ;;  %v2957_v38 = vpop.f32.mrb[6].mxu0  ;;  %v733_v40 = vshrl.u32 %v3549_v29, 16  ;;  %v736_v41 = vshll.u32 %v3549_v29, 16 }
  0xf9   : > { %v637_v42 = vmax.f32 %v529_v32, 0.0  ;;  %v532_v43 = vadd.f32 %v2957_v38, %v3527_v7  ;;  %v1033_v44 = vrot.slane %v743_v35, 1  ;;  %v742_v46 = vrot.slane %v740_v34, 7  ;;  %v523_v47 = vpop.f32.mrb[7].mxu0 }
  0xfa   : > { %v635_v49 = vmax.f32 %v521_v37, 0.0  ;;  %v524_v50 = vadd.f32 %v3527_v7, %v523_v47  ;;  %v735_v51 = vrot.slane %v733_v40, 7  ;;  %v1031_v62 = vrot.slane %v736_v41, 1 }
  0xfb   : > { %1310 = vrot.lane.b32.xlu1 %v3549_v29, %s3310_s9  ;;  %918 = vrot.lane.b32.xlu0 %v3549_v29, %s3311_s13  ;;  %v638_v55 = vmax.f32 %v532_v43, 0.0  ;;  %v1034_v56 = vor.u32 %v1033_v44, %v740_v34  ;;  %v3581_v57 = vor.u32 %v743_v35, %v742_v46  ;;  %v865_v34 = vld [vmem:[#allocation2 + $0x40] sm:$0xff]  ;;  %v1802_v35 = vld [vmem:[#allocation2 + $0x18] sm:$0xff] }
  0xfc   : > { %v636_v61 = vmax.f32 %v524_v50, 0.0  ;;  %v738_v63 = vor.u32 %v736_v41, %v735_v51  ;;  %v1032_v18 = vor.u32 %v1031_v62, %v733_v40 }
  0xfd   : > { %v3585_v1 = vpack.c.bf16 %v638_v55, %v637_v42  ;;  %v1800_v2 = vsel %vm3566_vm1, %v1034_v56, %v1799_v39  ;;  %v860_v3 = vsel %vm3573_vm3, %v3581_v57, %v859_v53  ;;  %v862_v39 = vld [vmem:[#allocation2 + $0x30] sm:$0xff] }
  0xfe   : > { %1801 = vst [vmem:[#allocation2 + $0x8] sm:$0xff] %v1800_v2  ;;  %v3594_v5 = vpack.c.bf16 %v636_v61, %v635_v49  ;;  %2833 = vmatprep.mubr.msk.bf16.mxu0 %vm679_vm8, %v1800_v2  ;;  %v2960_v6 = vpop.f32.mrb[8].mxu0  ;;  %861 = vst [vmem:[#allocation2 + $0x20] sm:$0xff] %v860_v3  ;;  %v857_v8 = vsel %vm3573_vm3, %v738_v63, %v856_v58 }
  0xff   : > { %1063 = vrot.lane.b32.xlu1 %v1034_v56, %s3312_s14  ;;  %1213 = vrot.lane.b32.xlu0 %v3581_v57, %s3313_s15  ;;  %v754_v11 = vshrl.u32 %v3585_v1, 16  ;;  %v757_v12 = vshll.u32 %v3585_v1, 16  ;;  %v545_v13 = vadd.f32 %v2960_v6, %v3527_v7  ;;  %v536_v15 = vpop.f32.mrb[9].mxu0  ;;  %858 = vst [vmem:[#allocation2 + $0x10] sm:$0xff] %v857_v8 }
 0x100   : > { %v747_v16 = vshrl.u32 %v3594_v5, 16  ;;  %v750_v17 = vshll.u32 %v3594_v5, 16  ;;  %v537_v19 = vadd.f32 %v3527_v7, %v536_v15  ;;  %v2961_v21 = vpop.f32.mrb[10].mxu0 }
 0x101   : > { %v756_v22 = vrot.slane %v754_v11, 7  ;;  %v641_v23 = vmax.f32 %v545_v13, 0.0  ;;  %v548_v25 = vadd.f32 %v2961_v21, %v3527_v7  ;;  %v1037_v26 = vrot.slane %v757_v12, 1  ;;  %v539_v27 = vpop.f32.mrb[11].mxu0 }
 0x102   : > { %v1035_v29 = vrot.slane %v750_v17, 1  ;;  %v639_v30 = vmax.f32 %v537_v19, 0.0  ;;  %v540_v32 = vadd.f32 %v3527_v7, %v539_v27  ;;  %v749_v33 = vrot.slane %v747_v16, 7 }
 0x103   : > { %1429 = vrot.lane.b32.xlu0 %v1034_v56, %s3314_s16  ;;  %1061 = vrot.lane.b32.xlu1 %v1032_v18, %s3312_s14  ;;  %v3614_v36 = vor.u32 %v757_v12, %v756_v22  ;;  %v642_v37 = vmax.f32 %v548_v25, 0.0  ;;  %v3616_v38 = vor.u32 %v1037_v26, %v754_v11  ;;  %v871_v12 = vld [vmem:[#allocation2 + $0x60] sm:$0xff] }
 0x104   : > { %v3618_v40 = vor.u32 %v1035_v29, %v747_v16  ;;  %v640_v41 = vmax.f32 %v540_v32, 0.0  ;;  %v3620_v42 = vor.u32 %v750_v17, %v749_v33  ;;  %v1808_v17 = vld [vmem:[#allocation2 + $0x38] sm:$0xff] }
 0x105   : > { %v3622_v43 = vpack.c.bf16 %v642_v37, %v641_v23  ;;  %v1806_v44 = vsel %vm3566_vm1, %v3616_v38, %v1805_v31  ;;  %v866_v46 = vsel %vm3573_vm3, %v3614_v36, %v865_v34 }
 0x106   : > { %v1803_v47 = vsel %vm3566_vm1, %v3618_v40, %v1802_v35  ;;  %1807 = vst [vmem:[#allocation2 + $0x28] sm:$0xff] %v1806_v44  ;;  %v3633_v48 = vpack.c.bf16 %v640_v41, %v639_v30  ;;  %v2964_v49 = vpop.f32.mrb[12].mxu0  ;;  %867 = vst [vmem:[#allocation2 + $0x40] sm:$0xff] %v866_v46  ;;  %v863_v50 = vsel %vm3573_vm3, %v3620_v42, %v862_v39 }
 0x107   : > { %1804 = vst [vmem:[#allocation2 + $0x18] sm:$0xff] %v1803_v47  ;;  %1427 = vrot.lane.b32.xlu1 %v1032_v18, %s3314_s16  ;;  %1211 = vrot.lane.b32.xlu0 %v738_v63, %s3313_s15  ;;  %v768_v51 = vshrl.u32 %v3622_v43, 16  ;;  %v771_v53 = vshll.u32 %v3622_v43, 16  ;;  %v561_v54 = vadd.f32 %v2964_v49, %v3527_v7  ;;  %v552_v55 = vpop.f32.mrb[13].mxu0  ;;  %864 = vst [vmem:[#allocation2 + $0x30] sm:$0xff] %v863_v50  ;;  %v868_v18 = vld [vmem:[#allocation2 + $0x50] sm:$0xff] }
 0x108   : > { %2834 = vmatprep.mubr.msk.bf16.mxu1 %vm679_vm8, %v1803_v47  ;;  %v553_v56 = vadd.f32 %v3527_v7, %v552_v55  ;;  %v2965_v58 = vpop.f32.mrb[14].mxu0  ;;  %v761_v59 = vshrl.u32 %v3633_v48, 16  ;;  %v764_v61 = vshll.u32 %v3633_v48, 16 }
 0x109   : > { %v1041_v62 = vrot.slane %v771_v53, 1  ;;  %v645_v0 = vmax.f32 %v561_v54, 0.0  ;;  %v564_v63 = vadd.f32 %v2965_v58, %v3527_v7  ;;  %v555_v2 = vpop.f32.mrb[15].mxu0  ;;  %v770_v3 = vrot.slane %v768_v51, 7 }
 0x10a   : > { %v643_v6 = vmax.f32 %v553_v56, 0.0  ;;  %v556_v8 = vadd.f32 %v3527_v7, %v555_v2  ;;  %v1039_v10 = vrot.slane %v764_v61, 1  ;;  %v763_v11 = vrot.slane %v761_v59, 7  ;;  %v1814_v2 = vld [vmem:[#allocation2 + $0x58] sm:$0xff] }
 0x10b   : > { %1316 = vrot.lane.b32.xlu1 %v3585_v1, %s3310_s9  ;;  %924 = vrot.lane.b32.xlu0 %v3585_v1, %s3311_s13  ;;  %v3653_v13 = vor.u32 %v1041_v62, %v768_v51  ;;  %v646_v15 = vmax.f32 %v564_v63, 0.0  ;;  %v3655_v16 = vor.u32 %v771_v53, %v770_v3  ;;  %v1817_v53 = vld [vmem:[#allocation2 + $0x68] sm:$0xff] }
 0x10c   : > { %v644_v19 = vmax.f32 %v556_v8, 0.0  ;;  %v3657_v21 = vor.u32 %v1039_v10, %v761_v59  ;;  %v3659_v22 = vor.u32 %v764_v61, %v763_v11  ;;  %v877_v59 = vld [vmem:[#allocation2 + $0x80] sm:$0xff]  ;;  %v1777_v61 = vld [vmem:[#allocation2 + $0xe8] sm:$0x80] }
 0x10d   : > { %v1812_v23 = vsel %vm3566_vm1, %v3653_v13, %v1811_v4  ;;  %v3664_v25 = vpack.c.bf16 %v646_v15, %v645_v0  ;;  %v872_v26 = vsel %vm3573_vm3, %v3655_v16, %v871_v12  ;;  %v874_v4 = vld [vmem:[#allocation2 + $0x70] sm:$0xff] }
 0x10e   : > { %1813 = vst [vmem:[#allocation2 + $0x48] sm:$0xff] %v1812_v23  ;;  %v3669_v27 = vpack.c.bf16 %v644_v19, %v643_v6  ;;  %v1809_v29 = vsel %vm3566_vm1, %v3657_v21, %v1808_v17  ;;  %v2968_v30 = vpop.f32.mrb[16].mxu0  ;;  %873 = vst [vmem:[#allocation2 + $0x60] sm:$0xff] %v872_v26  ;;  %v869_v31 = vsel %vm3573_vm3, %v3659_v22, %v868_v18  ;;  %v729_v6 = vld [vmem:[#allocation2 + $0xf0] sm:$0x1]  ;;  %v1778_v18 = vsel %vm3457_vm6, 0, %v1777_v61 }
 0x10f   : > { %1676 = vrot.lane.b32.xlu1 %v3585_v1, %s3315_s17  ;;  %1674 = vrot.lane.b32.xlu0 %v3594_v5, %s3315_s17  ;;  %1810 = vst [vmem:[#allocation2 + $0x38] sm:$0xff] %v1809_v29  ;;  %v577_v32 = vadd.f32 %v2968_v30, %v3527_v7  ;;  %v568_v33 = vpop.f32.mrb[17].mxu0  ;;  %v782_v34 = vshrl.u32 %v3664_v25, 16  ;;  %v785_v35 = vshll.u32 %v3664_v25, 16  ;;  %870 = vst [vmem:[#allocation2 + $0x50] sm:$0xff] %v869_v31  ;;  %v730_v30 = vsel %vm3464_vm7, 0, %v729_v6 }
 0x110   : > { %v569_v37 = vadd.f32 %v3527_v7, %v568_v33  ;;  %v2969_v39 = vpop.f32.mrb[18].mxu0  ;;  %v775_v41 = vshrl.u32 %v3669_v27, 16  ;;  %v778_v44 = vshll.u32 %v3669_v27, 16  ;;  %v1774_v1 = vld [vmem:[#allocation2 + $0xd8] sm:$0x80]  ;;  %v3105_v61 = vld [vmem:[%s4898_s3] sm:$0xff]   ;;  %vm3992_vm7 = vmand %vm1259_vm4, %vm854_vm0 }
 0x111   : > { %v649_v46 = vmax.f32 %v577_v32, 0.0  ;;  %v580_v47 = vadd.f32 %v2969_v39, %v3527_v7  ;;  %v571_v49 = vpop.f32.mrb[19].mxu0  ;;  %v784_v50 = vrot.slane %v782_v34, 7  ;;  %v1045_v51 = vrot.slane %v785_v35, 1  ;;  %1779 = vst [vmem:[#allocation2 + $0xe8] sm:$0x80] %v1778_v18  ;;  %3027 = vmatpush1.bf16.msra.mxu1 %v3105_v61  ;;  %2004 = vmatpush1.bf16.msra.mxu0 %v3105_v61 }
 0x112   : > { %v647_v54 = vmax.f32 %v569_v37, 0.0  ;;  %v572_v55 = vadd.f32 %v3527_v7, %v571_v49  ;;  %v777_v56 = vrot.slane %v775_v41, 7  ;;  %v1043_v58 = vrot.slane %v778_v44, 1  ;;  %731 = vst [vmem:[#allocation2 + $0xf0] sm:$0x1] %v730_v30  ;;  %3019 = vmatprep.subr.bf16.mxu1 %v3309_v60  ;;  %2005 = vmatprep.subr.bf16.mxu0 %v3309_v60 }
 0x113   : > { %922 = vrot.lane.b32.xlu1 %v3594_v5, %s3311_s13  ;;  %1217 = vrot.lane.b32.xlu0 %v3614_v36, %s3313_s15  ;;  %v650_v62 = vmax.f32 %v580_v47, 0.0  ;;  %v3693_v0 = vor.u32 %v785_v35, %v784_v50  ;;  %v3695_v63 = vor.u32 %v1045_v51, %v782_v34  ;;  %v1775_v3 = vsel %vm3457_vm6, 0, %v1774_v1 }
 0x114   : > { %v648_v8 = vmax.f32 %v572_v55, 0.0  ;;  %v3699_v10 = vor.u32 %v778_v44, %v777_v56  ;;  %v3701_v11 = vor.u32 %v1043_v58, %v775_v41  ;;  %1776 = vst [vmem:[#allocation2 + $0xd8] sm:$0x80] %v1775_v3  ;;  %v1820_v58 = vld [vmem:[#allocation2 + $0x78] sm:$0xff] }
 0x115   : > { %v3703_v12 = vpack.c.bf16 %v650_v62, %v649_v46  ;;  %v1818_v15 = vsel %vm3566_vm1, %v3695_v63, %v1817_v53  ;;  %v878_v17 = vsel %vm3573_vm3, %v3693_v0, %v877_v59  ;;  %v1823_v53 = vld [vmem:[#allocation2 + $0x88] sm:$0xff]  ;;  %v880_v62 = vld [vmem:[#allocation2 + $0x90] sm:$0xff] }
 0x116   : > { %v3713_v19 = vpack.c.bf16 %v648_v8, %v647_v54  ;;  %1819 = vst [vmem:[#allocation2 + $0x68] sm:$0xff] %v1818_v15  ;;  %v1815_v23 = vsel %vm3566_vm1, %v3701_v11, %v1814_v2  ;;  %v2972_v26 = vpop.f32.mrb[20].mxu0  ;;  %v875_v29 = vsel %vm3573_vm3, %v3699_v10, %v874_v4  ;;  %879 = vst [vmem:[#allocation2 + $0x80] sm:$0xff] %v878_v17  ;;  %v883_v54 = vld [vmem:[#allocation2 + $0xa0] sm:$0xff] }
 0x117   : > { %1314 = vrot.lane.b32.xlu1 %v3594_v5, %s3310_s9  ;;  %1433 = vrot.lane.b32.xlu0 %v3616_v38, %s3314_s16  ;;  %1816 = vst [vmem:[#allocation2 + $0x58] sm:$0xff] %v1815_v23  ;;  %v796_v31 = vshrl.u32 %v3703_v12, 16  ;;  %v799_v32 = vshll.u32 %v3703_v12, 16  ;;  %v593_v33 = vadd.f32 %v2972_v26, %v3527_v7  ;;  %v584_v34 = vpop.f32.mrb[21].mxu0  ;;  %876 = vst [vmem:[#allocation2 + $0x70] sm:$0xff] %v875_v29 }
 0x118   : > { %v585_v35 = vadd.f32 %v3527_v7, %v584_v34  ;;  %v2973_v24 = vpop.f32.mrb[22].mxu0  ;;  %v789_v37 = vshrl.u32 %v3713_v19, 16  ;;  %v792_v5 = vshll.u32 %v3713_v19, 16 }
 0x119   : > { %v798_v39 = vrot.slane %v796_v31, 7  ;;  %v653_v41 = vmax.f32 %v593_v33, 0.0  ;;  %v596_v44 = vadd.f32 %v2973_v24, %v3527_v7  ;;  %v587_v1 = vpop.f32.mrb[23].mxu0  ;;  %v1049_v46 = vrot.slane %v799_v32, 1 }
 0x11a   : > { %v651_v47 = vmax.f32 %v585_v35, 0.0  ;;  %v588_v49 = vadd.f32 %v3527_v7, %v587_v1  ;;  %v1047_v50 = vrot.slane %v792_v5, 1  ;;  %v791_v51 = vrot.slane %v789_v37, 7  ;;  %v1829_v1 = vld [vmem:[#allocation2 + $0xa8] sm:$0xff] }
 0x11b   : > { %1067 = vrot.lane.b32.xlu1 %v3616_v38, %s3312_s14  ;;  %1215 = vrot.lane.b32.xlu0 %v3620_v42, %s3313_s15  ;;  %v3739_v55 = vor.u32 %v799_v32, %v798_v39  ;;  %v654_v56 = vmax.f32 %v596_v44, 0.0  ;;  %v3741_v59 = vor.u32 %v1049_v46, %v796_v31  ;;  %v3106_v32 = vld [vmem:[%s4898_s3 + $0x8] sm:$0xff]  }
 0x11c   : > { %v652_v2 = vmax.f32 %v588_v49, 0.0  ;;  %v3746_v3 = vor.u32 %v1047_v50, %v789_v37  ;;  %v3748_v4 = vor.u32 %v792_v5, %v791_v51  ;;  %3028 = vmatpush1.bf16.msra.mxu1 %v3106_v32  ;;  %2006 = vmatpush1.bf16.msra.mxu0 %v3106_v32  ;;  %v889_v49 = vld [vmem:[#allocation2 + $0xc0] sm:$0xff] }
 0x11d   : > { %v3750_v38 = vpack.c.bf16 %v654_v56, %v653_v41  ;;  %v1824_v6 = vsel %vm3566_vm1, %v3741_v59, %v1823_v53  ;;  %v884_v8 = vsel %vm3573_vm3, %v3739_v55, %v883_v54  ;;  %3020 = vmatprep.subr.bf16.mxu1 %v3309_v60  ;;  %2007 = vmatprep.subr.bf16.mxu0 %v3309_v60  ;;  %v1826_v54 = vld [vmem:[#allocation2 + $0x98] sm:$0xff]  ;;  %v3107_v56 = vld [vmem:[%s4898_s3 + $0x10] sm:$0xff]  }
 0x11e   : > { %v3758_v15 = vpack.c.bf16 %v652_v2, %v651_v47  ;;  %v1821_v17 = vsel %vm3566_vm1, %v3746_v3, %v1820_v58  ;;  %1825 = vst [vmem:[#allocation2 + $0x88] sm:$0xff] %v1824_v6  ;;  %v2976_v18 = vpop.f32.mrb[24].mxu0  ;;  %v881_v23 = vsel %vm3573_vm3, %v3748_v4, %v880_v62  ;;  %885 = vst [vmem:[#allocation2 + $0xa0] sm:$0xff] %v884_v8  ;;  %v886_v58 = vld [vmem:[#allocation2 + $0xb0] sm:$0xff] }
 0x11f   : > { %1582 = vrot.lane.b32.xlu1 %v3614_v36, %s3316_s20  ;;  %1580 = vrot.lane.b32.xlu0 %v3620_v42, %s3316_s20  ;;  %1822 = vst [vmem:[#allocation2 + $0x78] sm:$0xff] %v1821_v17  ;;  %v609_v26 = vadd.f32 %v2976_v18, %v3527_v7  ;;  %v600_v29 = vpop.f32.mrb[25].mxu0  ;;  %v810_v30 = vshrl.u32 %v3750_v38, 16  ;;  %v813_v31 = vshll.u32 %v3750_v38, 16  ;;  %882 = vst [vmem:[#allocation2 + $0x90] sm:$0xff] %v881_v23 }
 0x120   : > { %v601_v33 = vadd.f32 %v3527_v7, %v600_v29  ;;  %v2977_v34 = vpop.f32.mrb[26].mxu0  ;;  %v803_v36 = vshrl.u32 %v3758_v15, 16  ;;  %v806_v42 = vshll.u32 %v3758_v15, 16  ;;  %3029 = vmatpush1.bf16.msra.mxu1 %v3107_v56  ;;  %2008 = vmatpush1.bf16.msra.mxu0 %v3107_v56 }
 0x121   : > { %v657_v35 = vmax.f32 %v609_v26, 0.0  ;;  %v612_v24 = vadd.f32 %v2977_v34, %v3527_v7  ;;  %v603_v37 = vpop.f32.mrb[27].mxu0  ;;  %v812_v5 = vrot.slane %v810_v30, 7  ;;  %v1053_v39 = vrot.slane %v813_v31, 1  ;;  %3021 = vmatprep.subr.bf16.mxu1 %v3309_v60  ;;  %2009 = vmatprep.subr.bf16.mxu0 %v3309_v60  ;;  %v3108_v34 = vld [vmem:[%s4898_s3 + $0x18] sm:$0xff]  }
 0x122   : > { %v655_v41 = vmax.f32 %v601_v33, 0.0  ;;  %v604_v44 = vadd.f32 %v3527_v7, %v603_v37  ;;  %v1051_v46 = vrot.slane %v806_v42, 1  ;;  %v805_v47 = vrot.slane %v803_v36, 7 }
 0x123   : > { %1065 = vrot.lane.b32.xlu1 %v3618_v40, %s3312_s14  ;;  %928 = vrot.lane.b32.xlu0 %v3622_v43, %s3311_s13  ;;  %v658_v50 = vmax.f32 %v612_v24, 0.0  ;;  %v3789_v51 = vor.u32 %v813_v31, %v812_v5  ;;  %v3791_v53 = vor.u32 %v1053_v39, %v810_v30 }
 0x124   : > { %v656_v61 = vmax.f32 %v604_v44, 0.0  ;;  %v3796_v62 = vor.u32 %v1051_v46, %v803_v36  ;;  %v3798_v2 = vor.u32 %v806_v42, %v805_v47  ;;  %3030 = vmatpush1.bf16.msra.mxu1 %v3108_v34  ;;  %2010 = vmatpush1.bf16.msra.mxu0 %v3108_v34  ;;  %v1835_v44 = vld [vmem:[#allocation2 + $0xc8] sm:$0xff] }
 0x125   : > { %v3800_v6 = vpack.c.bf16 %v658_v50, %v657_v35  ;;  %v1830_v8 = vsel %vm3566_vm1, %v3791_v53, %v1829_v1  ;;  %v890_v17 = vsel %vm3573_vm3, %v3789_v51, %v889_v49  ;;  %3022 = vmatprep.subr.bf16.mxu1 %v3309_v60  ;;  %v895_v50 = vld [vmem:[#allocation2 + $0xe0] sm:$0xff]  ;;  %2011 = vmatprep.subr.bf16.mxu0 %v3309_v60 }
 0x126   : > { %v3808_v18 = vpack.c.bf16 %v656_v61, %v655_v41  ;;  %1831 = vst [vmem:[#allocation2 + $0xa8] sm:$0xff] %v1830_v8  ;;  %v1827_v23 = vsel %vm3566_vm1, %v3796_v62, %v1826_v54  ;;  %v2980_v26 = vpop.f32.mrb[28].mxu0  ;;  %v887_v29 = vsel %vm3573_vm3, %v3798_v2, %v886_v58  ;;  %891 = vst [vmem:[#allocation2 + $0xc0] sm:$0xff] %v890_v17  ;;  %v1832_v58 = vld [vmem:[#allocation2 + $0xb8] sm:$0xff]  ;;  %v892_v8 = vld [vmem:[#allocation2 + $0xd0] sm:$0xff] }
 0x127   : > { %1431 = vrot.lane.b32.xlu1 %v3618_v40, %s3314_s16  ;;  %926 = vrot.lane.b32.xlu0 %v3633_v48, %s3311_s13  ;;  %1828 = vst [vmem:[#allocation2 + $0x98] sm:$0xff] %v1827_v23  ;;  %v824_v30 = vshrl.u32 %v3800_v6, 16  ;;  %v827_v31 = vshll.u32 %v3800_v6, 16  ;;  %v625_v32 = vadd.f32 %v2980_v26, %v3527_v7  ;;  %v616_v33 = vpop.f32.mrb[29].mxu0  ;;  %888 = vst [vmem:[#allocation2 + $0xb0] sm:$0xff] %v887_v29 }
 0x128   : > { %v617_v36 = vadd.f32 %v3527_v7, %v616_v33  ;;  %v2981_v42 = vpop.f32.mrb[30].mxu0  ;;  %v817_v40 = vshrl.u32 %v3808_v18, 16  ;;  %v820_v35 = vshll.u32 %v3808_v18, 16 }
 0x129   : > { %v1057_v24 = vrot.slane %v827_v31, 1  ;;  %v661_v37 = vmax.f32 %v625_v32, 0.0  ;;  %v628_v5 = vadd.f32 %v2981_v42, %v3527_v7  ;;  %v619_v39 = vpop.f32.mrb[31].mxu0  ;;  %v826_v41 = vrot.slane %v824_v30, 7  ;;  %v3110_v42 = vld [vmem:[%s4898_s3 + $0x28] sm:$0xff]  }
 0x12a   : > { %v659_v1 = vmax.f32 %v617_v36, 0.0  ;;  %v620_v46 = vadd.f32 %v3527_v7, %v619_v39  ;;  %v1055_v47 = vrot.slane %v820_v35, 1  ;;  %v819_v49 = vrot.slane %v817_v40, 7  ;;  %v3109_v7 = vld [vmem:[%s4898_s3 + $0x20] sm:$0xff]  }
 0x12b   : > { %1320 = vrot.lane.b32.xlu1 %v3622_v43, %s3310_s9  ;;  %1318 = vrot.lane.b32.xlu0 %v3633_v48, %s3310_s9  ;;  %v3839_v54 = vor.u32 %v1057_v24, %v824_v30  ;;  %v662_v56 = vmax.f32 %v628_v5, 0.0  ;;  %v3841_v61 = vor.u32 %v827_v31, %v826_v41  ;;  %v1841_v41 = vld [vmem:[#allocation2 + $0xe8] sm:$0xff] }
 0x12c   : > { %v660_v17 = vmax.f32 %v620_v46, 0.0  ;;  %v3846_v23 = vor.u32 %v1055_v47, %v817_v40  ;;  %v3848_v26 = vor.u32 %v820_v35, %v819_v49  ;;  %3031 = vmatpush1.bf16.msra.mxu1 %v3109_v7  ;;  %2012 = vmatpush1.bf16.msra.mxu0 %v3109_v7  ;;  %v898_v49 = vld [vmem:[#allocation2 + $0xf0] sm:$0xff] }
 0x12d   : > { %v1836_v29 = vsel %vm3566_vm1, %v3839_v54, %v1835_v44  ;;  %v3853_v30 = vpack.c.bf16 %v662_v56, %v661_v37  ;;  %v896_v31 = vsel %vm3573_vm3, %v3841_v61, %v895_v50  ;;  %3023 = vmatprep.subr.bf16.mxu1 %v3309_v60  ;;  %2013 = vmatprep.subr.bf16.mxu0 %v3309_v60  ;;  %v1838_v44 = vld [vmem:[#allocation2 + $0xd8] sm:$0xff] }
 0x12e   : > { %1837 = vst [vmem:[#allocation2 + $0xc8] sm:$0xff] %v1836_v29  ;;  %v3858_v32 = vpack.c.bf16 %v660_v17, %v659_v1  ;;  %v1833_v33 = vsel %vm3566_vm1, %v3846_v23, %v1832_v58  ;;  %v893_v34 = vsel %vm3573_vm3, %v3848_v26, %v892_v8  ;;  %897 = vst [vmem:[#allocation2 + $0xe0] sm:$0xff] %v896_v31  ;;  %v3111_v1 = vld [vmem:[%s4898_s3 + $0x30] sm:$0xff]   ;;  %v1261_v29 = vld [vmem:[#allocation2] sm:$0xff] }
 0x12f   : > { %1680 = vrot.lane.b32.xlu1 %v3622_v43, %s3315_s17  ;;  %1071 = vrot.lane.b32.xlu0 %v3653_v13, %s3312_s14  ;;  %v1205_v36 = vshrl.u32 %v3853_v30, 16  ;;  %1834 = vst [vmem:[#allocation2 + $0xb8] sm:$0xff] %v1833_v33  ;;  %v1208_v40 = vshll.u32 %v3853_v30, 16  ;;  %894 = vst [vmem:[#allocation2 + $0xd0] sm:$0xff] %v893_v34 }
 0x130   : > { %v831_v35 = vshrl.u32 %v3858_v32, 16  ;;  %v834_v24 = vshll.u32 %v3858_v32, 16  ;;  %3032 = vmatpush1.bf16.msra.mxu1 %v3110_v42  ;;  %2014 = vmatpush1.bf16.msra.mxu0 %v3110_v42 }
 0x131   : > { %v1207_v37 = vrot.slane %v1205_v36, 7  ;;  %v1425_v43 = vrot.slane %v1208_v40, 1  ;;  %3024 = vmatprep.subr.bf16.mxu1 %v3309_v60  ;;  %2015 = vmatprep.subr.bf16.mxu0 %v3309_v60 }
 0x132   : > { %v1059_v5 = vrot.slane %v834_v24, 1  ;;  %v833_v39 = vrot.slane %v831_v35, 7 }
 0x133   : > { %1678 = vrot.lane.b32.xlu1 %v3633_v48, %s3315_s17  ;;  %1221 = vrot.lane.b32.xlu0 %v3655_v16, %s3313_s15  ;;  %v3888_v46 = vor.u32 %v1208_v40, %v1207_v37  ;;  %v3890_v47 = vor.u32 %v1425_v43, %v1205_v36 }
 0x134   : > { %v3892_v50 = vor.u32 %v1059_v5, %v831_v35  ;;  %v3894_v56 = vor.u32 %v834_v24, %v833_v39  ;;  %3033 = vmatpush1.bf16.msra.mxu1 %v3111_v1  ;;  %2016 = vmatpush1.bf16.msra.mxu0 %v3111_v1 }
 0x135   : > { %v1842_v48 = vsel %vm3566_vm1, %v3890_v47, %v1841_v41  ;;  %3025 = vmatprep.subr.bf16.mxu1 %v3309_v60  ;;  %2017 = vmatprep.subr.bf16.mxu0 %v3309_v60 }
 0x136   : > { %v1839_v58 = vsel %vm3566_vm1, %v3892_v50, %v1838_v44  ;;  %1843 = vst [vmem:[#allocation2 + $0xe8] sm:$0xff] %v1842_v48  ;;  %v899_v7 = vsel %vm3573_vm3, %v3894_v56, %v898_v49  ;;  %vm4025_vm1 = vmand %vm1375_vm10, %vm981_vm2  ;;  %vm1475_vm2 = vcmask 786048  }
 0x137   : > { %1586 = vrot.lane.b32.xlu1 %v3655_v16, %s3316_s20  ;;  %1437 = vrot.lane.b32.xlu0 %v3653_v13, %s3314_s16  ;;  %1840 = vst [vmem:[#allocation2 + $0xd8] sm:$0xff] %v1839_v58  ;;  %900 = vst [vmem:[#allocation2 + $0xf0] sm:$0xff] %v899_v7 }
 0x138   : > { %3034 = vmatpush1.bf16.msra.mxu1 %v3112_v45  ;;  %2018 = vmatpush1.bf16.msra.mxu0 %v3112_v45  ;;  %vm4055_vm3 = vmand %vm1475_vm2, %vm1107_vm15  ;;  %vm1528_vm15 = vcmask 910080   ;;  %vm1670_vm2 = vcmask 1048448  }
 0x139   : > { %3026 = vmatprep.subr.bf16.mxu1 %v3309_v60  ;;  %2019 = vmatprep.subr.bf16.mxu0 %v3309_v60  ;;  %vm4086_vm4 = vmand %vm1528_vm15, %vm682_vm5  ;;  %vm1526_vm5 = vcmask 917248  }
 0x13a   : > { %vm4176_vm10 = vmand %vm1526_vm5, %vm854_vm0 }
 0x13b   : > { %1069 = vrot.lane.b32.xlu1 %v3657_v21, %s3312_s14  ;;  %1584 = vrot.lane.b32.xlu0 %v3659_v22, %s3316_s20 }
 0x13c   : > { %3035 = vmatpush1.bf16.msra.mxu1 %v3113_v52  ;;  %2020 = vmatpush1.bf16.msra.mxu0 %v3113_v52 }
 0x13f   : > { %1219 = vrot.lane.b32.xlu1 %v3659_v22, %s3313_s15  ;;  %930 = vrot.lane.b32.xlu0 %v3669_v27, %s3311_s13 }
 0x143   : > { %1435 = vrot.lane.b32.xlu1 %v3657_v21, %s3314_s16  ;;  %1322 = vrot.lane.b32.xlu0 %v3669_v27, %s3310_s9 }
 0x147   : > { %932 = vrot.lane.b32.xlu1 %v3664_v25, %s3311_s13  ;;  %1682 = vrot.lane.b32.xlu0 %v3669_v27, %s3315_s17 }
 0x14b   : > { %1324 = vrot.lane.b32.xlu1 %v3664_v25, %s3310_s9  ;;  %1225 = vrot.lane.b32.xlu0 %v3693_v0, %s3313_s15 }
 0x14f   : > { %1684 = vrot.lane.b32.xlu1 %v3664_v25, %s3315_s17  ;;  %1441 = vrot.lane.b32.xlu0 %v3695_v63, %s3314_s16 }
 0x153   : > { %1075 = vrot.lane.b32.xlu1 %v3695_v63, %s3312_s14  ;;  %1588 = vrot.lane.b32.xlu0 %v3699_v10, %s3316_s20 }
 0x157   : > { %1590 = vrot.lane.b32.xlu1 %v3693_v0, %s3316_s20  ;;  %934 = vrot.lane.b32.xlu0 %v3713_v19, %s3311_s13 }
 0x15b   : > { %1073 = vrot.lane.b32.xlu1 %v3701_v11, %s3312_s14  ;;  %1326 = vrot.lane.b32.xlu0 %v3713_v19, %s3310_s9 }
 0x15f   : > { %1223 = vrot.lane.b32.xlu1 %v3699_v10, %s3313_s15  ;;  %1229 = vrot.lane.b32.xlu0 %v3739_v55, %s3313_s15 }
 0x163   : > { %1439 = vrot.lane.b32.xlu1 %v3701_v11, %s3314_s16  ;;  %1077 = vrot.lane.b32.xlu0 %v3746_v3, %s3312_s14 }
 0x167   : > { %936 = vrot.lane.b32.xlu1 %v3703_v12, %s3311_s13  ;;  %1227 = vrot.lane.b32.xlu0 %v3748_v4, %s3313_s15 }
 0x169   : > { %v3967_v13 = vpop.permute.xlu1 %1312  ;;  %v921_v16 = vpop.permute.xlu0 %920 }
 0x16a   : > { %964 = vst.msk [vmem:[#allocation2 + $0x20] sm:$0xff] %vm901_vm9, %v921_v16 }
 0x16b   : > { %1328 = vrot.lane.b32.xlu1 %v3703_v12, %s3310_s9  ;;  %1443 = vrot.lane.b32.xlu0 %v3746_v3, %s3314_s16 }
 0x16d   : > { %v1311_v21 = vpop.permute.xlu1 %1310  ;;  %v919_v22 = vpop.permute.xlu0 %918 }
 0x16e   : > { %963 = vst.msk [vmem:[#allocation2 + $0x10] sm:$0xff] %vm901_vm9, %v919_v22 }
 0x16f   : > { %1079 = vrot.lane.b32.xlu1 %v3741_v59, %s3312_s14  ;;  %938 = vrot.lane.b32.xlu0 %v3758_v15, %s3311_s13 }
 0x171   : > { %v989_v25 = vld [vmem:[#allocation2 + $0x20] sm:$0x80]  ;;  %v1064_v27 = vpop.permute.xlu1 %1063  ;;  %v3979_v0 = vpop.permute.xlu0 %1213 }
 0x172   : > { %v990_v63 = vsel %vm3530_vm12, 0, %v989_v25 }
 0x173   : > { %991 = vst [vmem:[#allocation2 + $0x20] sm:$0x80] %v990_v63  ;;  %940 = vrot.lane.b32.xlu1 %v3750_v38, %s3311_s13  ;;  %1330 = vrot.lane.b32.xlu0 %v3758_v15, %s3310_s9 }
 0x175   : > { %v986_v10 = vld [vmem:[#allocation2 + $0x10] sm:$0x80]  ;;  %v3987_v11 = vpop.permute.xlu0 %1429  ;;  %v1062_v3 = vpop.permute.xlu1 %1061 }
 0x176   : > { %v987_v8 = vsel %vm3530_vm12, 0, %v986_v10 }
 0x177   : > { %988 = vst [vmem:[#allocation2 + $0x10] sm:$0x80] %v987_v8  ;;  %1332 = vrot.lane.b32.xlu1 %v3750_v38, %s3310_s9  ;;  %1233 = vrot.lane.b32.xlu0 %v3789_v51, %s3313_s15 }
 0x179   : > { %v1428_v33 = vpop.permute.xlu1 %1427  ;;  %v1212_v34 = vpop.permute.xlu0 %1211 }
 0x17a   : > { %v1112_v36 = vld [vmem:[#allocation2 + $0x20] sm:$0xff]  ;;  %v1262_v42 = vsel %vm3992_vm7, %v1212_v34, %v1261_v29 }
 0x17b   : > { %v1113_v40 = vsel %vm4002_vm11, %v1064_v27, %v1112_v36  ;;  %1263 = vst [vmem:[#allocation2] sm:$0xff] %v1262_v42  ;;  %1083 = vrot.lane.b32.xlu1 %v3791_v53, %s3312_s14  ;;  %1081 = vrot.lane.b32.xlu0 %v3796_v62, %s3312_s14 }
 0x17c   : > { %1114 = vst [vmem:[#allocation2 + $0x20] sm:$0xff] %v1113_v40  ;;  %1359 = vst.msk [vmem:[#allocation2] sm:$0xff] %vm1358_vm13, %v1311_v21 }
 0x17d   : > { %v4015_v35 = vpop.permute.xlu1 %1316  ;;  %v925_v24 = vpop.permute.xlu0 %924 }
 0x17e   : > { %v1109_v37 = vld [vmem:[#allocation2 + $0x10] sm:$0xff]  ;;  %966 = vst.msk [vmem:[#allocation2 + $0x40] sm:$0xff] %vm901_vm9, %v925_v24 }
 0x17f   : > { %v1110_v43 = vsel %vm4002_vm11, %v1062_v3, %v1109_v37  ;;  %1231 = vrot.lane.b32.xlu1 %v3798_v2, %s3313_s15  ;;  %942 = vrot.lane.b32.xlu0 %v3808_v18, %s3311_s13 }
 0x180   : > { %1111 = vst [vmem:[#allocation2 + $0x10] sm:$0xff] %v1110_v43 }
 0x181   : > { %v4029_v39 = vpop.permute.xlu1 %1676  ;;  %v4031_v41 = vpop.permute.xlu0 %1674 }
 0x183   : > { %v1162_v44 = vld [vmem:[#allocation2 + $0x20] sm:$0x1]  ;;  %v1377_v1 = vld [vmem:[#allocation2] sm:$0x80]  ;;  %944 = vrot.lane.b32.xlu1 %v3800_v6, %s3311_s13  ;;  %1445 = vrot.lane.b32.xlu0 %v3741_v59, %s3314_s16 }
 0x184   : > { %v1163_v49 = vsel %vm3537_vm14, 0, %v1162_v44  ;;  %v1378_v48 = vsel %vm4025_vm1, 0, %v1377_v1 }
 0x185   : > { %1164 = vst [vmem:[#allocation2 + $0x20] sm:$0x1] %v1163_v49  ;;  %1379 = vst [vmem:[#allocation2] sm:$0x80] %v1378_v48  ;;  %v995_v58 = vld [vmem:[#allocation2 + $0x40] sm:$0x80]  ;;  %v923_v7 = vpop.permute.xlu1 %922  ;;  %v4041_v45 = vpop.permute.xlu0 %1217 }
 0x186   : > { %v996_v52 = vsel %vm3530_vm12, 0, %v995_v58  ;;  %965 = vst.msk [vmem:[#allocation2 + $0x30] sm:$0xff] %vm901_vm9, %v923_v7 }
 0x187   : > { %v1159_v16 = vld [vmem:[#allocation2 + $0x10] sm:$0x1]  ;;  %997 = vst [vmem:[#allocation2 + $0x40] sm:$0x80] %v996_v52  ;;  %1087 = vrot.lane.b32.xlu1 %v3839_v54, %s3312_s14  ;;  %1592 = vrot.lane.b32.xlu0 %v3748_v4, %s3316_s20 }
 0x188   : > { %v1160_v59 = vsel %vm3537_vm14, 0, %v1159_v16 }
 0x189   : > { %1161 = vst [vmem:[#allocation2 + $0x10] sm:$0x1] %v1160_v59  ;;  %v1315_v21 = vpop.permute.xlu1 %1314  ;;  %v4052_v22 = vpop.permute.xlu0 %1433 }
 0x18b   : > { %1447 = vrot.lane.b32.xlu1 %v3796_v62, %s3314_s16  ;;  %1686 = vrot.lane.b32.xlu0 %v3713_v19, %s3315_s17 }
 0x18c   : > { %v1477_v27 = vld [vmem:[#allocation2] sm:$0xff] }
 0x18d   : > { %v1267_v4 = vld [vmem:[#allocation2 + $0x20] sm:$0xff]  ;;  %v1478_v63 = vsel %vm4055_vm3, %v1428_v33, %v1477_v27  ;;  %v992_v10 = vld [vmem:[#allocation2 + $0x30] sm:$0x80]  ;;  %v1068_v3 = vpop.permute.xlu1 %1067  ;;  %v1216_v8 = vpop.permute.xlu0 %1215 }
 0x18e   : > { %1479 = vst [vmem:[#allocation2] sm:$0xff] %v1478_v63  ;;  %v993_v29 = vsel %vm3530_vm12, 0, %v992_v10  ;;  %v1118_v34 = vld [vmem:[#allocation2 + $0x40] sm:$0xff]  ;;  %v1268_v36 = vsel %vm3992_vm7, %v1216_v8, %v1267_v4 }
 0x18f   : > { %994 = vst [vmem:[#allocation2 + $0x30] sm:$0x80] %v993_v29  ;;  %v1119_v19 = vsel %vm4002_vm11, %v1068_v3, %v1118_v34  ;;  %1269 = vst [vmem:[#allocation2 + $0x20] sm:$0xff] %v1268_v36  ;;  %1594 = vrot.lane.b32.xlu1 %v3739_v55, %s3316_s20  ;;  %1085 = vrot.lane.b32.xlu0 %v3846_v23, %s3312_s14  ;;  %v3115_v55 = vld [vmem:[%s4900_s5 + $0x8] sm:$0xff]  }
 0x190   : > { %v1264_v62 = vld [vmem:[#allocation2 + $0x10] sm:$0xff]  ;;  %1120 = vst [vmem:[#allocation2 + $0x40] sm:$0xff] %v1119_v19  ;;  %1361 = vst.msk [vmem:[#allocation2 + $0x20] sm:$0xff] %vm1358_vm13, %v1315_v21 }
 0x191   : > { %v1265_v33 = vsel %vm3992_vm7, %v3979_v0, %v1264_v62  ;;  %v4079_v42 = vpop.permute.xlu1 %1582  ;;  %v4081_v40 = vpop.permute.xlu0 %1580 }
 0x192   : > { %1266 = vst [vmem:[#allocation2 + $0x10] sm:$0xff] %v1265_v33 }
 0x193   : > { %1360 = vst.msk [vmem:[#allocation2 + $0x10] sm:$0xff] %vm1358_vm13, %v3967_v13  ;;  %1235 = vrot.lane.b32.xlu1 %v3848_v26, %s3313_s15  ;;  %1334 = vrot.lane.b32.xlu0 %v3808_v18, %s3310_s9 }
 0x195   : > { %v1530_v0 = vld [vmem:[#allocation2] sm:$0x1]  ;;  %v1066_v24 = vpop.permute.xlu1 %1065  ;;  %v929_v37 = vpop.permute.xlu0 %928 }
 0x196   : > { %v1531_v43 = vsel %vm4086_vm4, 0, %v1530_v0  ;;  %v1115_v44 = vld [vmem:[#allocation2 + $0x30] sm:$0xff]  ;;  %968 = vst.msk [vmem:[#allocation2 + $0x60] sm:$0xff] %vm901_vm9, %v929_v37 }
 0x197   : > { %1532 = vst [vmem:[#allocation2] sm:$0x1] %v1531_v43  ;;  %v1168_v13 = vld [vmem:[#allocation2 + $0x40] sm:$0x1]  ;;  %v1383_v1 = vld [vmem:[#allocation2 + $0x20] sm:$0x80]  ;;  %v1116_v49 = vsel %vm4002_vm11, %v1066_v24, %v1115_v44  ;;  %946 = vrot.lane.b32.xlu1 %v3858_v32, %s3311_s13  ;;  %1578 = vrot.lane.b32.xlu0 %v3581_v57, %s3316_s20  ;;  %s4839_s13 = scalar_lea.hbm %s4902_s7, %s2906_s19 }
 0x198   : > { %v1169_v48 = vsel %vm3537_vm14, 0, %v1168_v13  ;;  %v1384_v58 = vsel %vm4025_vm1, 0, %v1383_v1  ;;  %1117 = vst [vmem:[#allocation2 + $0x30] sm:$0xff] %v1116_v49 }
 0x199   : > { %1170 = vst [vmem:[#allocation2 + $0x40] sm:$0x1] %v1169_v48  ;;  %1385 = vst [vmem:[#allocation2 + $0x20] sm:$0x80] %v1384_v58  ;;  %v1432_v7 = vpop.permute.xlu1 %1431  ;;  %v927_v52 = vpop.permute.xlu0 %926 }
 0x19a   : > { %v1380_v16 = vld [vmem:[#allocation2 + $0x10] sm:$0x80]  ;;  %967 = vst.msk [vmem:[#allocation2 + $0x50] sm:$0xff] %vm901_vm9, %v927_v52 }
 0x19b   : > { %v1381_v59 = vsel %vm4025_vm1, 0, %v1380_v16  ;;  %1688 = vrot.lane.b32.xlu1 %v3703_v12, %s3315_s17  ;;  %1672 = vrot.lane.b32.xlu0 %v3547_v28, %s3315_s17 }
 0x19c   : > { %1382 = vst [vmem:[#allocation2 + $0x10] sm:$0x80] %v1381_v59 }
 0x19d   : > { %v1001_v57 = vld [vmem:[#allocation2 + $0x60] sm:$0x80]  ;;  %v4114_v21 = vpop.permute.xlu1 %1320  ;;  %v4116_v27 = vpop.permute.xlu0 %1318 }
 0x19e   : > { %v1002_v4 = vsel %vm3530_vm12, 0, %v1001_v57 }
 0x19f   : > { %v1165_v63 = vld [vmem:[#allocation2 + $0x30] sm:$0x1]  ;;  %1003 = vst [vmem:[#allocation2 + $0x60] sm:$0x80] %v1002_v4  ;;  %1336 = vrot.lane.b32.xlu1 %v3800_v6, %s3310_s9  ;;  %1237 = vrot.lane.b32.xlu0 %v3841_v61, %s3313_s15 }
 0x1a0   : > { %v1166_v28 = vsel %vm3537_vm14, 0, %v1165_v63  ;;  %v1483_v12 = vld [vmem:[#allocation2 + $0x20] sm:$0xff] }
 0x1a1   : > { %1167 = vst [vmem:[#allocation2 + $0x30] sm:$0x1] %v1166_v28  ;;  %v1484_v10 = vsel %vm4055_vm3, %v1432_v7, %v1483_v12  ;;  %v998_v3 = vld [vmem:[#allocation2 + $0x50] sm:$0x80]  ;;  %v4128_v8 = vpop.permute.xlu1 %1680  ;;  %v1072_v29 = vpop.permute.xlu0 %1071  ;;  %v1273_v16 = vld [vmem:[#allocation2 + $0x40] sm:$0xff] }
 0x1a2   : > { %1485 = vst [vmem:[#allocation2 + $0x20] sm:$0xff] %v1484_v10  ;;  %v999_v34 = vsel %vm3530_vm12, 0, %v998_v3 }
 0x1a3   : > { %v1480_v36 = vld [vmem:[#allocation2 + $0x10] sm:$0xff]  ;;  %1000 = vst [vmem:[#allocation2 + $0x50] sm:$0x80] %v999_v34  ;;  %1596 = vrot.lane.b32.xlu1 %v3798_v2, %s3316_s20  ;;  %1449 = vrot.lane.b32.xlu0 %v3791_v53, %s3314_s16 }
 0x1a4   : > { %v1481_v19 = vsel %vm4055_vm3, %v3987_v11, %v1480_v36 }
 0x1a5   : > { %1482 = vst [vmem:[#allocation2 + $0x10] sm:$0xff] %v1481_v19  ;;  %v4139_v62 = vpop.permute.xlu1 %1678  ;;  %v4141_v33 = vpop.permute.xlu0 %1221 }
 0x1a6   : > { %v1124_v0 = vld [vmem:[#allocation2 + $0x60] sm:$0xff] }
 0x1a7   : > { %v1125_v24 = vsel %vm4002_vm11, %v1072_v29, %v1124_v0  ;;  %1690 = vrot.lane.b32.xlu1 %v3758_v15, %s3315_s17  ;;  %1089 = vrot.lane.b32.xlu0 %v3892_v50, %s3312_s14  ;;  %s3245_s14 = scalar_lea.vmem %s4841_s21, 4096 }
 0x1a8   : > { %v1270_v53 = vld [vmem:[#allocation2 + $0x30] sm:$0xff]  ;;  %1126 = vst [vmem:[#allocation2 + $0x60] sm:$0xff] %v1125_v24  ;;  %v1849_v24 = vld [vmem:[#allocation2 + $0x28] sm:$0xff]  ;;  %p3246_p11 = scmp.ne.s32.totalorder %s4841_s21, %s3245_s14 }
 0x1a9   : > { %v1271_v2 = vsel %vm3992_vm7, %v4041_v45, %v1270_v53  ;;  %v1536_v11 = vld [vmem:[#allocation2 + $0x20] sm:$0x1]  ;;  %v4152_v37 = vpop.permute.xlu1 %1586  ;;  %v4154_v43 = vpop.permute.xlu0 %1437 }
 0x1aa   : > { %1272 = vst [vmem:[#allocation2 + $0x30] sm:$0xff] %v1271_v2  ;;  %v1537_v44 = vsel %vm4086_vm4, 0, %v1536_v11  ;;  %v1121_v1 = vld [vmem:[#allocation2 + $0x50] sm:$0xff]  ;;  %p3247_p12 = pnand %p3246_p11, %p3398_p5 }
 0x1ab   : > { %1362 = vst.msk [vmem:[#allocation2 + $0x30] sm:$0xff] %vm1358_vm13, %v4015_v35  ;;  %1538 = vst [vmem:[#allocation2 + $0x20] sm:$0x1] %v1537_v44  ;;  %1338 = vrot.lane.b32.xlu1 %v3858_v32, %s3310_s9  ;;  %1239 = vrot.lane.b32.xlu0 %v3894_v56, %s3313_s15 }
 0x1ac   : > { %v1533_v15 = vld [vmem:[#allocation2 + $0x10] sm:$0x1]  ;;  %p3248_p13 = pneg %p3247_p12 }
 0x1ad   : > { %v1534_v45 = vsel %vm4086_vm4, 0, %v1533_v15  ;;  %v1070_v13 = vpop.permute.xlu1 %1069  ;;  %v4166_v49 = vpop.permute.xlu0 %1584 }
 0x1ae   : > { %1535 = vst [vmem:[#allocation2 + $0x10] sm:$0x1] %v1534_v45  ;;  %v1122_v35 = vsel %vm4002_vm11, %v1070_v13, %v1121_v1 }
 0x1af   : > { %v1174_v48 = vld [vmem:[#allocation2 + $0x60] sm:$0x1]  ;;  %1123 = vst [vmem:[#allocation2 + $0x50] sm:$0xff] %v1122_v35  ;;  %1598 = vrot.lane.b32.xlu1 %v3789_v51, %s3316_s20  ;;  %1451 = vrot.lane.b32.xlu0 %v3846_v23, %s3314_s16 }
 0x1b0   : > { %v1175_v7 = vsel %vm3537_vm14, 0, %v1174_v48 }
 0x1b1   : > { %1176 = vst [vmem:[#allocation2 + $0x60] sm:$0x1] %v1175_v7  ;;  %v1220_v52 = vpop.permute.xlu1 %1219  ;;  %v931_v59 = vpop.permute.xlu0 %930 }
 0x1b2   : > { %v1386_v57 = vld [vmem:[#allocation2 + $0x30] sm:$0x80]  ;;  %v1631_v4 = vld [vmem:[#allocation2 + $0x20] sm:$0xff]  ;;  %v1274_v51 = vsel %vm3992_vm7, %v1220_v52, %v1273_v16  ;;  %969 = vst.msk [vmem:[#allocation2 + $0x70] sm:$0xff] %vm901_vm9, %v931_v59 }
 0x1b3   : > { %v1387_v23 = vsel %vm4025_vm1, 0, %v1386_v57  ;;  %v1632_v63 = vsel %vm4176_vm10, %v4079_v42, %v1631_v4  ;;  %1275 = vst [vmem:[#allocation2 + $0x40] sm:$0xff] %v1274_v51  ;;  %1453 = vrot.lane.b32.xlu1 %v3839_v54, %s3314_s16  ;;  %1692 = vrot.lane.b32.xlu0 %v3750_v38, %s3315_s17 }
 0x1b4   : > { %1388 = vst [vmem:[#allocation2 + $0x30] sm:$0x80] %v1387_v23  ;;  %1633 = vst [vmem:[#allocation2 + $0x20] sm:$0xff] %v1632_v63 }
 0x1b5   : > { %1363 = vst.msk [vmem:[#allocation2 + $0x40] sm:$0xff] %vm1358_vm13, %v4116_v27  ;;  %v1628_v28 = vld [vmem:[#allocation2 + $0x10] sm:$0xff]  ;;  %v1436_v12 = vpop.permute.xlu1 %1435  ;;  %v4198_v10 = vpop.permute.xlu0 %1322 }
 0x1b6   : > { %1719 = vst.msk [vmem:[#allocation2 + $0x20] sm:$0xff] %vm1670_vm2, %v4029_v39  ;;  %v1629_v42 = vsel %vm4176_vm10, %v4081_v40, %v1628_v28  ;;  %v1171_v54 = vld [vmem:[#allocation2 + $0x50] sm:$0x1] }
 0x1b7   : > { %1630 = vst [vmem:[#allocation2 + $0x10] sm:$0xff] %v1629_v42  ;;  %v1172_v38 = vsel %vm3537_vm14, 0, %v1171_v54  ;;  %1694 = vrot.lane.b32.xlu1 %v3808_v18, %s3315_s17  ;;  %1600 = vrot.lane.b32.xlu0 %v3848_v26, %s3316_s20 }
 0x1b8   : > { %1718 = vst.msk [vmem:[#allocation2 + $0x10] sm:$0xff] %vm1670_vm2, %v4031_v41  ;;  %1173 = vst [vmem:[#allocation2 + $0x50] sm:$0x1] %v1172_v38  ;;  %v1279_v28 = vld [vmem:[#allocation2 + $0x60] sm:$0xff] }
 0x1b9   : > { %v1004_v39 = vld [vmem:[#allocation2 + $0x70] sm:$0x80]  ;;  %v933_v27 = vpop.permute.xlu1 %932  ;;  %v4211_v3 = vpop.permute.xlu0 %1682 }
 0x1ba   : > { %v1005_v40 = vsel %vm3530_vm12, 0, %v1004_v39  ;;  %970 = vst.msk [vmem:[#allocation2 + $0x80] sm:$0xff] %vm901_vm9, %v933_v27 }
 0x1bb   : > { %v1486_v29 = vld [vmem:[#allocation2 + $0x30] sm:$0xff]  ;;  %1006 = vst [vmem:[#allocation2 + $0x70] sm:$0x80] %v1005_v40  ;;  %1340 = vrot.lane.b32.xlu1 %v3853_v30, %s3310_s9  ;;  %1241 = vrot.lane.b32.xlu0 %v3888_v46, %s3313_s15  ;;  %s3317_s15 = smov [#allocation3]  }
 0x1bc   : > { %v1389_v34 = vld [vmem:[#allocation2 + $0x40] sm:$0x80]  ;;  %v1487_v18 = vsel %vm4055_vm3, %v4052_v22, %v1486_v29 }
 0x1bd   : > { %v1390_v26 = vsel %vm4025_vm1, 0, %v1389_v34  ;;  %1488 = vst [vmem:[#allocation2 + $0x30] sm:$0xff] %v1487_v18  ;;  %v4225_v41 = vpop.permute.xlu1 %1324  ;;  %v4227_v36 = vpop.permute.xlu0 %1225 }
 0x1be   : > { %1391 = vst [vmem:[#allocation2 + $0x40] sm:$0x80] %v1390_v26 }
 0x1bf   : > { %v1276_v19 = vld [vmem:[#allocation2 + $0x50] sm:$0xff]  ;;  %1602 = vrot.lane.b32.xlu1 %v3841_v61, %s3316_s20  ;;  %1455 = vrot.lane.b32.xlu0 %v3892_v50, %s3314_s16 }
 0x1c0   : > { %v1846_v0 = vld [vmem:[#allocation2 + $0x10] sm:$0xff]  ;;  %v1277_v22 = vsel %vm3992_vm7, %v4141_v33, %v1276_v19  ;;  %v1853_v19 = vld [vmem:[#allocation2 + $0x48] sm:$0xff] }
 0x1c1   : > { %2044 = vmatmul.mubr.bf16.vlgmr.msra.gmra.mrb[0].mxu1 %v1846_v0  ;;  %1278 = vst [vmem:[#allocation2 + $0x50] sm:$0xff] %v1277_v22  ;;  %v1007_v53 = vld [vmem:[#allocation2 + $0x80] sm:$0x80]  ;;  %v4236_v2 = vpop.permute.xlu1 %1684  ;;  %v4238_v11 = vpop.permute.xlu0 %1441 }
 0x1c2   : > { %2835 = vmatprep.mubr.msk.bf16.mxu1 %vm679_vm8, %v1849_v24  ;;  %1364 = vst.msk [vmem:[#allocation2 + $0x50] sm:$0xff] %vm1358_vm13, %v4114_v21  ;;  %v1008_v61 = vsel %vm3530_vm12, 0, %v1007_v53  ;;  %v1127_v4 = vld [vmem:[#allocation2 + $0x70] sm:$0xff] }
 0x1c3   : > { %1009 = vst [vmem:[#allocation2 + $0x80] sm:$0x80] %v1008_v61  ;;  %1604 = vrot.lane.b32.xlu1 %v3894_v56, %s3316_s20  ;;  %1696 = vrot.lane.b32.xlu0 %v3800_v6, %s3315_s17  ;;  %v1848_v6 = vld [vmem:[#allocation2 + $0x20] sm:$0xff]  ;;  %v1851_v56 = vld [vmem:[#allocation2 + $0x38] sm:$0xff] }
 0x1c4   : > { %v1539_v50 = vld [vmem:[#allocation2 + $0x30] sm:$0x1] }
 0x1c5   : > { %v1489_v33 = vld [vmem:[#allocation2 + $0x40] sm:$0xff]  ;;  %v1540_v44 = vsel %vm4086_vm4, 0, %v1539_v50  ;;  %v1076_v45 = vpop.permute.xlu1 %1075  ;;  %v4253_v21 = vpop.permute.xlu0 %1588 }
 0x1c6   : > { %v1490_v15 = vsel %vm4055_vm3, %v1436_v12, %v1489_v33  ;;  %1541 = vst [vmem:[#allocation2 + $0x30] sm:$0x1] %v1540_v44 }
 0x1c7   : > { %1491 = vst [vmem:[#allocation2 + $0x40] sm:$0xff] %v1490_v15  ;;  %1457 = vrot.lane.b32.xlu1 %v3890_v47, %s3314_s16  ;;  %1698 = vrot.lane.b32.xlu0 %v3858_v32, %s3315_s17  ;;  %v1780_v32 = vld [vmem:[#allocation2 + $0xf8] sm:$0x80]  ;;  %s3249_s16 = sshll.u32 %s3317_s15, 4  ;;  %s3250_s16 = int_to_ptr.vmem [resolvable:$false] %s3249_s16 }
 0x1c8   : > { %v1781_v52 = vsel %vm3457_vm6, 0, %v1780_v32  ;;  %vm2235_vm6 = vcmask 261120   ;;  %p3252_p0 = scmp.lt.s32.totalorder %s4841_s21, %s3250_s16 }
 0x1c9   : > { %2052 = vmatmul.mubr.bf16.gmra.mrb[4].mxu1 %v1848_v6  ;;  %v1392_v13 = vld [vmem:[#allocation2 + $0x50] sm:$0x80]  ;;  %v4259_v1 = vpop.permute.xlu1 %1590  ;;  %v935_v35 = vpop.permute.xlu0 %934  ;;  %1782 = vst [vmem:[#allocation2 + $0xf8] sm:$0x80] %v1781_v52 }
 0x1ca   : > { %2836 = vmatprep.mubr.msk.bf16.mxu1 %vm679_vm8, %v1851_v56  ;;  %v1393_v48 = vsel %vm4025_vm1, 0, %v1392_v13  ;;  %v1130_v7 = vld [vmem:[#allocation2 + $0x80] sm:$0xff]  ;;  %971 = vst.msk [vmem:[#allocation2 + $0x90] sm:$0xff] %vm901_vm9, %v935_v35 }
 0x1cb   : > { %1394 = vst [vmem:[#allocation2 + $0x50] sm:$0x80] %v1393_v48  ;;  %v1131_v47 = vsel %vm4002_vm11, %v1076_v45, %v1130_v7  ;;  %1700 = vrot.lane.b32.xlu1 %v3853_v30, %s3315_s17  ;;  %1606 = vrot.lane.b32.xlu0 %v3888_v46, %s3316_s20  ;;  %v1855_v7 = vld [vmem:[#allocation2 + $0x58] sm:$0xff]  ;;  %s3251_s17 = scalar_lea.vmem %s3250_s16, 8192 }
 0x1cc   : > { %1132 = vst [vmem:[#allocation2 + $0x80] sm:$0xff] %v1131_v47  ;;  %p3253_p1 = scmp.lt.s32.totalorder %s3251_s17, %s3245_s14 }
 0x1cd   : > { %v1634_v16 = vld [vmem:[#allocation2 + $0x30] sm:$0xff]  ;;  %v1074_v57 = vpop.permute.xlu1 %1073  ;;  %v1327_v51 = vpop.permute.xlu0 %1326 }
 0x1ce   : > { %v1542_v59 = vld [vmem:[#allocation2 + $0x40] sm:$0x1]  ;;  %v1635_v23 = vsel %vm4176_vm10, %v4166_v49, %v1634_v16  ;;  %v1128_v46 = vsel %vm4002_vm11, %v1074_v57, %v1127_v4  ;;  %p3254_p2 = por %p3253_p1, %p3252_p0 }
 0x1cf   : > { %v1543_v30 = vsel %vm4086_vm4, 0, %v1542_v59  ;;  %1636 = vst [vmem:[#allocation2 + $0x30] sm:$0xff] %v1635_v23  ;;  %1129 = vst [vmem:[#allocation2 + $0x70] sm:$0xff] %v1128_v46 }
 0x1d0   : > { %1544 = vst [vmem:[#allocation2 + $0x40] sm:$0x1] %v1543_v30  ;;  %1720 = vst.msk [vmem:[#allocation2 + $0x30] sm:$0xff] %vm1670_vm2, %v4139_v62  ;;  %p3255_p3 = pnand %p3254_p2, %p3248_p13 }
 0x1d1   : > { %v1010_v20 = vld [vmem:[#allocation2 + $0x90] sm:$0x80]  ;;  %v1224_v63 = vpop.permute.xlu1 %1223  ;;  %v4282_v12 = vpop.permute.xlu0 %1229 }
 0x1d2   : > { %v1492_v42 = vld [vmem:[#allocation2 + $0x50] sm:$0xff]  ;;  %v1011_v49 = vsel %vm3530_vm12, 0, %v1010_v20  ;;  %v1280_v54 = vsel %vm3992_vm7, %v1224_v63, %v1279_v28 }
 0x1d3   : > { %v1180_v38 = vld [vmem:[#allocation2 + $0x80] sm:$0x1]  ;;  %v1493_v39 = vsel %vm4055_vm3, %v4154_v43, %v1492_v42  ;;  %1012 = vst [vmem:[#allocation2 + $0x90] sm:$0x80] %v1011_v49  ;;  %1281 = vst [vmem:[#allocation2 + $0x60] sm:$0xff] %v1280_v54 }
 0x1d4   : > { %v1181_v62 = vsel %vm3537_vm14, 0, %v1180_v38  ;;  %1494 = vst [vmem:[#allocation2 + $0x50] sm:$0xff] %v1493_v39  ;;  %1365 = vst.msk [vmem:[#allocation2 + $0x60] sm:$0xff] %vm1358_vm13, %v4198_v10 }
 0x1d5   : > { %1182 = vst [vmem:[#allocation2 + $0x80] sm:$0x1] %v1181_v62  ;;  %v1440_v27 = vpop.permute.xlu1 %1439  ;;  %v1078_v40 = vpop.permute.xlu0 %1077 }
 0x1d6   : > { %v1177_v34 = vld [vmem:[#allocation2 + $0x70] sm:$0x1] }
 0x1d7   : > { %v1637_v29 = vld [vmem:[#allocation2 + $0x40] sm:$0xff]  ;;  %v1178_v43 = vsel %vm3537_vm14, 0, %v1177_v34  ;;  %v1850_v26 = vld [vmem:[#allocation2 + $0x30] sm:$0xff] }
 0x1d8   : > { %v1638_v18 = vsel %vm4176_vm10, %v4152_v37, %v1637_v29  ;;  %1179 = vst [vmem:[#allocation2 + $0x70] sm:$0x1] %v1178_v43  ;;  %2060 = vmatmul.mubr.bf16.gmra.mrb[8].mxu1 %v1850_v26  ;;  %v1857_v43 = vld [vmem:[#allocation2 + $0x68] sm:$0xff] }
 0x1d9   : > { %1639 = vst [vmem:[#allocation2 + $0x40] sm:$0xff] %v1638_v18  ;;  %v937_v10 = vpop.permute.xlu1 %936  ;;  %v1228_v0 = vpop.permute.xlu0 %1227  ;;  %2837 = vmatprep.mubr.msk.bf16.mxu1 %vm679_vm8, %v1853_v19 }
 0x1da   : > { %1721 = vst.msk [vmem:[#allocation2 + $0x40] sm:$0xff] %vm1670_vm2, %v4128_v8  ;;  %v1133_v22 = vld [vmem:[#allocation2 + $0x90] sm:$0xff] }
 0x1db   : > { %972 = vst.msk [vmem:[#allocation2 + $0xa0] sm:$0xff] %vm901_vm9, %v937_v10  ;;  %v1545_v24 = vld [vmem:[#allocation2 + $0x50] sm:$0x1]  ;;  %v1395_v37 = vld [vmem:[#allocation2 + $0x60] sm:$0x80]  ;;  %v1134_v53 = vsel %vm4002_vm11, %v1078_v40, %v1133_v22 }
 0x1dc   : > { %v1546_v61 = vsel %vm4086_vm4, 0, %v1545_v24  ;;  %v1396_v50 = vsel %vm4025_vm1, 0, %v1395_v37  ;;  %1135 = vst [vmem:[#allocation2 + $0x90] sm:$0xff] %v1134_v53  ;;  %v1285_v8 = vld [vmem:[#allocation2 + $0x80] sm:$0xff] }
 0x1dd   : > { %1547 = vst [vmem:[#allocation2 + $0x50] sm:$0x1] %v1546_v61  ;;  %1397 = vst [vmem:[#allocation2 + $0x60] sm:$0x80] %v1396_v50  ;;  %v1286_v33 = vsel %vm3992_vm7, %v1228_v0, %v1285_v8  ;;  %v1329_v44 = vpop.permute.xlu1 %1328  ;;  %v1444_v15 = vpop.permute.xlu0 %1443 }
 0x1de   : > { %1287 = vst [vmem:[#allocation2 + $0x80] sm:$0xff] %v1286_v33 }
 0x1df   : > { %v1282_v45 = vld [vmem:[#allocation2 + $0x70] sm:$0xff]  ;;  %1367 = vst.msk [vmem:[#allocation2 + $0x80] sm:$0xff] %vm1358_vm13, %v1327_v51 }
 0x1e0   : > { %v1283_v6 = vsel %vm3992_vm7, %v4227_v36, %v1282_v45 }
 0x1e1   : > { %v1852_v56 = vld [vmem:[#allocation2 + $0x40] sm:$0xff]  ;;  %1284 = vst [vmem:[#allocation2 + $0x70] sm:$0xff] %v1283_v6  ;;  %v1080_v35 = vpop.permute.xlu1 %1079  ;;  %v939_v48 = vpop.permute.xlu0 %938 }
 0x1e2   : > { %v1013_v13 = vld [vmem:[#allocation2 + $0xa0] sm:$0x80]  ;;  %2068 = vmatmul.mubr.bf16.gmra.mrb[12].mxu1 %v1852_v56  ;;  %1366 = vst.msk [vmem:[#allocation2 + $0x70] sm:$0xff] %vm1358_vm13, %v4225_v41 }
 0x1e3   : > { %v1014_v47 = vsel %vm3530_vm12, 0, %v1013_v13  ;;  %973 = vst.msk [vmem:[#allocation2 + $0xb0] sm:$0xff] %vm901_vm9, %v939_v48  ;;  %2838 = vmatprep.mubr.msk.bf16.mxu1 %vm679_vm8, %v1855_v7  ;;  %v1183_v32 = vld [vmem:[#allocation2 + $0x90] sm:$0x1] }
 0x1e4   : > { %1015 = vst [vmem:[#allocation2 + $0xa0] sm:$0x80] %v1014_v47  ;;  %v1640_v36 = vld [vmem:[#allocation2 + $0x50] sm:$0xff]  ;;  %v1495_v52 = vld [vmem:[#allocation2 + $0x60] sm:$0xff]  ;;  %v1184_v16 = vsel %vm3537_vm14, 0, %v1183_v32 }
 0x1e5   : > { %v1641_v59 = vsel %vm4176_vm10, %v4253_v21, %v1640_v36  ;;  %v1496_v41 = vsel %vm4055_vm3, %v1440_v27, %v1495_v52  ;;  %1185 = vst [vmem:[#allocation2 + $0x90] sm:$0x1] %v1184_v16  ;;  %v941_v57 = vpop.permute.xlu1 %940  ;;  %v4329_v4 = vpop.permute.xlu0 %1330 }
 0x1e6   : > { %1642 = vst [vmem:[#allocation2 + $0x50] sm:$0xff] %v1641_v59  ;;  %1497 = vst [vmem:[#allocation2 + $0x60] sm:$0xff] %v1496_v41  ;;  %v1401_v51 = vld [vmem:[#allocation2 + $0x80] sm:$0x80] }
 0x1e7   : > { %974 = vst.msk [vmem:[#allocation2 + $0xc0] sm:$0xff] %vm901_vm9, %v941_v57  ;;  %v1402_v23 = vsel %vm4025_vm1, 0, %v1401_v51 }
 0x1e8   : > { %1722 = vst.msk [vmem:[#allocation2 + $0x50] sm:$0xff] %vm1670_vm2, %v4211_v3  ;;  %1403 = vst [vmem:[#allocation2 + $0x80] sm:$0x80] %v1402_v23 }
 0x1e9   : > { %v1398_v21 = vld [vmem:[#allocation2 + $0x70] sm:$0x80]  ;;  %v4336_v46 = vpop.permute.xlu1 %1332  ;;  %v4338_v20 = vpop.permute.xlu0 %1233 }
 0x1ea   : > { %v1016_v30 = vld [vmem:[#allocation2 + $0xb0] sm:$0x80]  ;;  %v1399_v63 = vsel %vm4025_vm1, 0, %v1398_v21 }
 0x1eb   : > { %v1136_v28 = vld [vmem:[#allocation2 + $0xa0] sm:$0xff]  ;;  %v1017_v42 = vsel %vm3530_vm12, 0, %v1016_v30  ;;  %1400 = vst [vmem:[#allocation2 + $0x70] sm:$0x80] %v1399_v63 }
 0x1ec   : > { %v1137_v3 = vsel %vm4002_vm11, %v1080_v35, %v1136_v28  ;;  %1018 = vst [vmem:[#allocation2 + $0xb0] sm:$0x80] %v1017_v42  ;;  %v1288_v49 = vld [vmem:[#allocation2 + $0x90] sm:$0xff] }
 0x1ed   : > { %1138 = vst [vmem:[#allocation2 + $0xa0] sm:$0xff] %v1137_v3  ;;  %v1548_v54 = vld [vmem:[#allocation2 + $0x60] sm:$0x1]  ;;  %v1289_v38 = vsel %vm3992_vm7, %v4282_v12, %v1288_v49  ;;  %v1084_v62 = vpop.permute.xlu1 %1083  ;;  %v1082_v27 = vpop.permute.xlu0 %1081  ;;  %v1859_v49 = vld [vmem:[#allocation2 + $0x78] sm:$0xff] }
 0x1ee   : > { %v1019_v39 = vld [vmem:[#allocation2 + $0xc0] sm:$0x80]  ;;  %v1549_v40 = vsel %vm4086_vm4, 0, %v1548_v54  ;;  %1290 = vst [vmem:[#allocation2 + $0x90] sm:$0xff] %v1289_v38 }
 0x1ef   : > { %v1020_v29 = vsel %vm3530_vm12, 0, %v1019_v39  ;;  %v1854_v34 = vld [vmem:[#allocation2 + $0x50] sm:$0xff]  ;;  %1550 = vst [vmem:[#allocation2 + $0x60] sm:$0x1] %v1549_v40  ;;  %1368 = vst.msk [vmem:[#allocation2 + $0x90] sm:$0xff] %vm1358_vm13, %v1329_v44  ;;  %v1501_v18 = vld [vmem:[#allocation2 + $0x80] sm:$0xff] }
 0x1f0   : > { %1021 = vst [vmem:[#allocation2 + $0xc0] sm:$0x80] %v1020_v29  ;;  %2076 = vmatmul.mubr.bf16.gmra.mrb[16].mxu1 %v1854_v34  ;;  %v1502_v12 = vsel %vm4055_vm3, %v1444_v15, %v1501_v18 }
 0x1f1   : > { %2839 = vmatprep.mubr.msk.bf16.mxu1 %vm679_vm8, %v1857_v43  ;;  %1503 = vst [vmem:[#allocation2 + $0x80] sm:$0xff] %v1502_v12  ;;  %v1232_v26 = vpop.permute.xlu1 %1231  ;;  %v943_v19 = vpop.permute.xlu0 %942 }
 0x1f2   : > { %v1498_v10 = vld [vmem:[#allocation2 + $0x70] sm:$0xff]  ;;  %975 = vst.msk [vmem:[#allocation2 + $0xd0] sm:$0xff] %vm901_vm9, %v943_v19 }
 0x1f3   : > { %v1139_v0 = vld [vmem:[#allocation2 + $0xb0] sm:$0xff]  ;;  %v1499_v22 = vsel %vm4055_vm3, %v4238_v11, %v1498_v10 }
 0x1f4   : > { %v1186_v24 = vld [vmem:[#allocation2 + $0xa0] sm:$0x1]  ;;  %v1140_v37 = vsel %vm4002_vm11, %v1082_v27, %v1139_v0  ;;  %1500 = vst [vmem:[#allocation2 + $0x70] sm:$0xff] %v1499_v22 }
 0x1f5   : > { %v1187_v53 = vsel %vm3537_vm14, 0, %v1186_v24  ;;  %1141 = vst [vmem:[#allocation2 + $0xb0] sm:$0xff] %v1140_v37  ;;  %v945_v61 = vpop.permute.xlu1 %944  ;;  %v1446_v50 = vpop.permute.xlu0 %1445 }
 0x1f6   : > { %1188 = vst [vmem:[#allocation2 + $0xa0] sm:$0x1] %v1187_v53  ;;  %v1643_v8 = vld [vmem:[#allocation2 + $0x60] sm:$0xff]  ;;  %v1404_v33 = vld [vmem:[#allocation2 + $0x90] sm:$0x80]  ;;  %976 = vst.msk [vmem:[#allocation2 + $0xe0] sm:$0xff] %vm901_vm9, %v945_v61 }
 0x1f7   : > { %v1142_v44 = vld [vmem:[#allocation2 + $0xc0] sm:$0xff]  ;;  %v1644_v11 = vsel %vm4176_vm10, %v4259_v1, %v1643_v8  ;;  %v1405_v15 = vsel %vm4025_vm1, 0, %v1404_v33 }
 0x1f8   : > { %v1143_v45 = vsel %vm4002_vm11, %v1084_v62, %v1142_v44  ;;  %1645 = vst [vmem:[#allocation2 + $0x60] sm:$0xff] %v1644_v11  ;;  %1406 = vst [vmem:[#allocation2 + $0x90] sm:$0x80] %v1405_v15  ;;  %v1554_v6 = vld [vmem:[#allocation2 + $0x80] sm:$0x1] }
 0x1f9   : > { %1144 = vst [vmem:[#allocation2 + $0xc0] sm:$0xff] %v1143_v45  ;;  %1723 = vst.msk [vmem:[#allocation2 + $0x60] sm:$0xff] %vm1670_vm2, %v4236_v2  ;;  %v1555_v56 = vsel %vm4086_vm4, 0, %v1554_v6  ;;  %v1022_v13 = vld [vmem:[#allocation2 + $0xd0] sm:$0x80]  ;;  %v1088_v35 = vpop.permute.xlu1 %1087  ;;  %v1593_v48 = vpop.permute.xlu0 %1592  ;;  %v1861_v45 = vld [vmem:[#allocation2 + $0x88] sm:$0xff] }
 0x1fa   : > { %1556 = vst [vmem:[#allocation2 + $0x80] sm:$0x1] %v1555_v56  ;;  %v1023_v1 = vsel %vm3530_vm12, 0, %v1022_v13 }
 0x1fb   : > { %v1551_v7 = vld [vmem:[#allocation2 + $0x70] sm:$0x1]  ;;  %1024 = vst [vmem:[#allocation2 + $0xd0] sm:$0x80] %v1023_v1 }
 0x1fc   : > { %v1189_v47 = vld [vmem:[#allocation2 + $0xb0] sm:$0x1]  ;;  %v1552_v32 = vsel %vm4086_vm4, 0, %v1551_v7 }
 0x1fd   : > { %v1190_v36 = vsel %vm3537_vm14, 0, %v1189_v47  ;;  %v1291_v2 = vld [vmem:[#allocation2 + $0xa0] sm:$0xff]  ;;  %1553 = vst [vmem:[#allocation2 + $0x70] sm:$0x1] %v1552_v32  ;;  %v4385_v59 = vpop.permute.xlu1 %1447  ;;  %v1687_v41 = vpop.permute.xlu0 %1686 }
 0x1fe   : > { %1191 = vst [vmem:[#allocation2 + $0xb0] sm:$0x1] %v1190_v36  ;;  %v1292_v52 = vsel %vm3992_vm7, %v1232_v26, %v1291_v2  ;;  %v1025_v16 = vld [vmem:[#allocation2 + $0xe0] sm:$0x80] }
 0x1ff   : > { %1293 = vst [vmem:[#allocation2 + $0xa0] sm:$0xff] %v1292_v52  ;;  %v1026_v57 = vsel %vm3530_vm12, 0, %v1025_v16  ;;  %v1504_v23 = vld [vmem:[#allocation2 + $0x90] sm:$0xff] }
 0x200   : > { %v1192_v51 = vld [vmem:[#allocation2 + $0xc0] sm:$0x1]  ;;  %1369 = vst.msk [vmem:[#allocation2 + $0xa0] sm:$0xff] %vm1358_vm13, %v4329_v4  ;;  %1027 = vst [vmem:[#allocation2 + $0xe0] sm:$0x80] %v1026_v57  ;;  %v1505_v30 = vsel %vm4055_vm3, %v1446_v50, %v1504_v23  ;;  %v1863_v23 = vld [vmem:[#allocation2 + $0x98] sm:$0xff] }
 0x201   : > { %v1193_v21 = vsel %vm3537_vm14, 0, %v1192_v51  ;;  %v1856_v63 = vld [vmem:[#allocation2 + $0x60] sm:$0xff]  ;;  %1506 = vst [vmem:[#allocation2 + $0x90] sm:$0xff] %v1505_v30  ;;  %v1595_v28 = vpop.permute.xlu1 %1594  ;;  %v1086_v3 = vpop.permute.xlu0 %1085 }
 0x202   : > { %1194 = vst [vmem:[#allocation2 + $0xc0] sm:$0x1] %v1193_v21  ;;  %v1649_v42 = vld [vmem:[#allocation2 + $0x80] sm:$0xff]  ;;  %2084 = vmatmul.mubr.bf16.gmra.mrb[20].mxu1 %v1856_v63  ;;  %v1145_v4 = vld [vmem:[#allocation2 + $0xd0] sm:$0xff] }
 0x203   : > { %v1650_v54 = vsel %vm4176_vm10, %v1595_v28, %v1649_v42  ;;  %2840 = vmatprep.mubr.msk.bf16.mxu1 %vm679_vm8, %v1859_v49  ;;  %v1146_v38 = vsel %vm4002_vm11, %v1086_v3, %v1145_v4 }
 0x204   : > { %1651 = vst [vmem:[#allocation2 + $0x80] sm:$0xff] %v1650_v54  ;;  %v1646_v62 = vld [vmem:[#allocation2 + $0x70] sm:$0xff]  ;;  %1147 = vst [vmem:[#allocation2 + $0xd0] sm:$0xff] %v1146_v38 }
 0x205   : > { %v1294_v39 = vld [vmem:[#allocation2 + $0xb0] sm:$0xff]  ;;  %v1647_v40 = vsel %vm4176_vm10, %v1593_v48, %v1646_v62  ;;  %v1236_v29 = vpop.permute.xlu1 %1235  ;;  %v1335_v34 = vpop.permute.xlu0 %1334 }
 0x206   : > { %v1295_v27 = vsel %vm3992_vm7, %v4338_v20, %v1294_v39  ;;  %1648 = vst [vmem:[#allocation2 + $0x70] sm:$0xff] %v1647_v40 }
 0x207   : > { %1296 = vst [vmem:[#allocation2 + $0xb0] sm:$0xff] %v1295_v27  ;;  %v1407_v18 = vld [vmem:[#allocation2 + $0xa0] sm:$0x80]  ;;  %1724 = vst.msk [vmem:[#allocation2 + $0x70] sm:$0xff] %vm1670_vm2, %v1687_v41 }
 0x208   : > { %v1148_v43 = vld [vmem:[#allocation2 + $0xe0] sm:$0xff]  ;;  %1370 = vst.msk [vmem:[#allocation2 + $0xb0] sm:$0xff] %vm1358_vm13, %v4336_v46  ;;  %v1408_v12 = vsel %vm4025_vm1, 0, %v1407_v18  ;;  %v1557_v20 = vld [vmem:[#allocation2 + $0x90] sm:$0x1] }
 0x209   : > { %v1149_v26 = vsel %vm4002_vm11, %v1088_v35, %v1148_v43  ;;  %1409 = vst [vmem:[#allocation2 + $0xa0] sm:$0x80] %v1408_v12  ;;  %v1297_v19 = vld [vmem:[#allocation2 + $0xc0] sm:$0xff]  ;;  %v1558_v10 = vsel %vm4086_vm4, 0, %v1557_v20  ;;  %v947_v22 = vpop.permute.xlu1 %946  ;;  %v1579_v24 = vpop.permute.xlu0 %1578 }
 0x20a   : > { %1150 = vst [vmem:[#allocation2 + $0xe0] sm:$0xff] %v1149_v26  ;;  %v1298_v0 = vsel %vm3992_vm7, %v1236_v29, %v1297_v19  ;;  %v1625_v46 = vld [vmem:[#allocation2] sm:$0xff]  ;;  %1559 = vst [vmem:[#allocation2 + $0x90] sm:$0x1] %v1558_v10  ;;  %v1865_v19 = vld [vmem:[#allocation2 + $0xa8] sm:$0xff] }
 0x20b   : > { %1299 = vst [vmem:[#allocation2 + $0xc0] sm:$0xff] %v1298_v0  ;;  %977 = vst.msk [vmem:[#allocation2 + $0xf0] sm:$0xff] %vm901_vm9, %v947_v22  ;;  %v1626_v37 = vsel %vm4176_vm10, %v1579_v24, %v1625_v46  ;;  %v1195_v53 = vld [vmem:[#allocation2 + $0xd0] sm:$0x1] }
 0x20c   : > { %1371 = vst.msk [vmem:[#allocation2 + $0xc0] sm:$0xff] %vm1358_vm13, %v1335_v34  ;;  %1627 = vst [vmem:[#allocation2] sm:$0xff] %v1626_v37  ;;  %v1196_v61 = vsel %vm3537_vm14, 0, %v1195_v53 }
 0x20d   : > { %1197 = vst [vmem:[#allocation2 + $0xd0] sm:$0x1] %v1196_v61  ;;  %v1689_v50 = vpop.permute.xlu1 %1688  ;;  %v1673_v8 = vpop.permute.xlu0 %1672 }
 0x20e   : > { %1725 = vst.msk [vmem:[#allocation2 + $0x80] sm:$0xff] %vm1670_vm2, %v1689_v50  ;;  %1717 = vst.msk [vmem:[#allocation2] sm:$0xff] %vm1670_vm2, %v1673_v8  ;;  %v1858_v33 = vld [vmem:[#allocation2 + $0x70] sm:$0xff] }
 0x20f   : > { %v1410_v44 = vld [vmem:[#allocation2 + $0xb0] sm:$0x80]  ;;  %2092 = vmatmul.mubr.bf16.gmra.mrb[24].mxu1 %v1858_v33 }
 0x210   : > { %v1507_v15 = vld [vmem:[#allocation2 + $0xa0] sm:$0xff]  ;;  %v1411_v6 = vsel %vm4025_vm1, 0, %v1410_v44  ;;  %2841 = vmatprep.mubr.msk.bf16.mxu1 %vm679_vm8, %v1861_v45 }
 0x211   : > { %v1198_v11 = vld [vmem:[#allocation2 + $0xe0] sm:$0x1]  ;;  %v1508_v13 = vsel %vm4055_vm3, %v4385_v59, %v1507_v15  ;;  %1412 = vst [vmem:[#allocation2 + $0xb0] sm:$0x80] %v1411_v6  ;;  %v1337_v48 = vpop.permute.xlu1 %1336  ;;  %v1238_v1 = vpop.permute.xlu0 %1237  ;;  %v1652_v16 = vld [vmem:[#allocation2 + $0x90] sm:$0xff] }
 0x212   : > { %v1199_v56 = vsel %vm3537_vm14, 0, %v1198_v11  ;;  %1509 = vst [vmem:[#allocation2 + $0xa0] sm:$0xff] %v1508_v13  ;;  %v1028_v35 = vld [vmem:[#allocation2 + $0xf0] sm:$0x80] }
 0x213   : > { %1200 = vst [vmem:[#allocation2 + $0xe0] sm:$0x1] %v1199_v56  ;;  %v1413_v7 = vld [vmem:[#allocation2 + $0xc0] sm:$0x80]  ;;  %v1029_v47 = vsel %vm3530_vm12, 0, %v1028_v35  ;;  %v1867_v35 = vld [vmem:[#allocation2 + $0xb8] sm:$0xff] }
 0x214   : > { %v1414_v32 = vsel %vm4025_vm1, 0, %v1413_v7  ;;  %1030 = vst [vmem:[#allocation2 + $0xf0] sm:$0x80] %v1029_v47  ;;  %v1300_v36 = vld [vmem:[#allocation2 + $0xd0] sm:$0xff] }
 0x215   : > { %1415 = vst [vmem:[#allocation2 + $0xc0] sm:$0x80] %v1414_v32  ;;  %v1301_v2 = vsel %vm3992_vm7, %v1238_v1, %v1300_v36  ;;  %v1597_v52 = vpop.permute.xlu1 %1596  ;;  %v1450_v59 = vpop.permute.xlu0 %1449  ;;  %v1844_v41 = vld [vmem:[#allocation2] sm:$0xff] }
 0x216   : > { %v1860_v57 = vld [vmem:[#allocation2 + $0x80] sm:$0xff]  ;;  %1302 = vst [vmem:[#allocation2 + $0xd0] sm:$0xff] %v1301_v2  ;;  %v1653_v51 = vsel %vm4176_vm10, %v1597_v52, %v1652_v16  ;;  %2036 = vmatmul.mubr.bf16.vlgmr.msra.gmra.mrb[32].mxu0 %v1844_v41 }
 0x217   : > { %1372 = vst.msk [vmem:[#allocation2 + $0xd0] sm:$0xff] %vm1358_vm13, %v1337_v48  ;;  %1654 = vst [vmem:[#allocation2 + $0x90] sm:$0xff] %v1653_v51  ;;  %2100 = vmatmul.mubr.bf16.gmra.mrb[28].mxu1 %v1860_v57 }
 0x218   : > { %v1510_v9 = vld [vmem:[#allocation2 + $0xb0] sm:$0xff]  ;;  %2842 = vmatprep.mubr.msk.bf16.mxu1 %vm679_vm8, %v1863_v23 }
 0x219   : > { %v1560_v21 = vld [vmem:[#allocation2 + $0xa0] sm:$0x1]  ;;  %v1511_v30 = vsel %vm4055_vm3, %v1450_v59, %v1510_v9  ;;  %v1691_v28 = vpop.permute.xlu1 %1690  ;;  %v1090_v42 = vpop.permute.xlu0 %1089  ;;  %v1869_v59 = vld [vmem:[#allocation2 + $0xc8] sm:$0xff] }
 0x21a   : > { %v1561_v63 = vsel %vm4086_vm4, 0, %v1560_v21  ;;  %1512 = vst [vmem:[#allocation2 + $0xb0] sm:$0xff] %v1511_v30  ;;  %1726 = vst.msk [vmem:[#allocation2 + $0x90] sm:$0xff] %vm1670_vm2, %v1691_v28  ;;  %v1303_v4 = vld [vmem:[#allocation2 + $0xe0] sm:$0xff] }
 0x21b   : > { %1562 = vst [vmem:[#allocation2 + $0xa0] sm:$0x1] %v1561_v63  ;;  %v1151_v3 = vld [vmem:[#allocation2 + $0xf0] sm:$0xff] }
 0x21c   : > { %v1152_v49 = vsel %vm4002_vm11, %v1090_v42, %v1151_v3  ;;  %v1513_v18 = vld [vmem:[#allocation2 + $0xc0] sm:$0xff]  ;;  %v1871_v42 = vld [vmem:[#allocation2 + $0xd8] sm:$0xff] }
 0x21d   : > { %1153 = vst [vmem:[#allocation2 + $0xf0] sm:$0xff] %v1152_v49  ;;  %v1339_v54 = vpop.permute.xlu1 %1338  ;;  %v1240_v38 = vpop.permute.xlu0 %1239 }
 0x21e   : > { %v1416_v39 = vld [vmem:[#allocation2 + $0xd0] sm:$0x80]  ;;  %v1304_v62 = vsel %vm3992_vm7, %v1240_v38, %v1303_v4 }
 0x21f   : > { %v1417_v27 = vsel %vm4025_vm1, 0, %v1416_v39  ;;  %1305 = vst [vmem:[#allocation2 + $0xe0] sm:$0xff] %v1304_v62 }
 0x220   : > { %1418 = vst [vmem:[#allocation2 + $0xd0] sm:$0x80] %v1417_v27  ;;  %1373 = vst.msk [vmem:[#allocation2 + $0xe0] sm:$0xff] %vm1358_vm13, %v1339_v54  ;;  %v3244_v27 = vld [vmem:[#allocation2 + $0xe8] sm:$0xff] }
 0x221   : > { %v1563_v40 = vld [vmem:[#allocation2 + $0xb0] sm:$0x1]  ;;  %v1599_v29 = vpop.permute.xlu1 %1598  ;;  %v1452_v43 = vpop.permute.xlu0 %1451 }
 0x222   : > { %v1564_v31 = vsel %vm4086_vm4, 0, %v1563_v40  ;;  %v1655_v34 = vld [vmem:[#allocation2 + $0xa0] sm:$0xff]  ;;  %v1862_v12 = vld [vmem:[#allocation2 + $0x90] sm:$0xff]  ;;  %v1514_v20 = vsel %vm4055_vm3, %v1452_v43, %v1513_v18 }
 0x223   : > { %1565 = vst [vmem:[#allocation2 + $0xb0] sm:$0x1] %v1564_v31  ;;  %v1656_v26 = vsel %vm4176_vm10, %v1599_v29, %v1655_v34  ;;  %2108 = vmatmul.mubr.bf16.gmra.mrb[32].mxu1 %v1862_v12  ;;  %1515 = vst [vmem:[#allocation2 + $0xc0] sm:$0xff] %v1514_v20  ;;  %v1875_v31 = vld [vmem:[#allocation2 + $0xf8] sm:$0xff]  ;;  %v3114_v34 = vld [vmem:[%s4900_s5] sm:$0xff]  }
 0x224   : > { %v1201_v10 = vld [vmem:[#allocation2 + $0xf0] sm:$0x1]  ;;  %1657 = vst [vmem:[#allocation2 + $0xa0] sm:$0xff] %v1656_v26  ;;  %2843 = vmatprep.mubr.msk.bf16.mxu1 %vm679_vm8, %v1865_v19  ;;  %2982 = vmatprep.subr.bf16.mxu0 %v3114_v34 }
 0x225   : > { %v1202_v0 = vsel %vm3537_vm14, 0, %v1201_v10  ;;  %v1454_v22 = vpop.permute.xlu1 %1453  ;;  %v1693_v46 = vpop.permute.xlu0 %1692  ;;  %2983 = vmatpush3.bf16.msra.mxu0 %v3114_v34 }
 0x226   : > { %1203 = vst [vmem:[#allocation2 + $0xf0] sm:$0x1] %v1202_v0  ;;  %1727 = vst.msk [vmem:[#allocation2 + $0xa0] sm:$0xff] %vm1670_vm2, %v1693_v46  ;;  %2984 = vmatprep.subr.bf16.mxu0 %v3115_v55 }
 0x227   : > { %v1419_v24 = vld [vmem:[#allocation2 + $0xe0] sm:$0x80]  ;;  %v1516_v37 = vld [vmem:[#allocation2 + $0xd0] sm:$0xff] }
 0x228   : > { %v1420_v53 = vsel %vm4025_vm1, 0, %v1419_v24  ;;  %v1517_v61 = vsel %vm4055_vm3, %v1454_v22, %v1516_v37 }
 0x229   : > { %1421 = vst [vmem:[#allocation2 + $0xe0] sm:$0x80] %v1420_v53  ;;  %1518 = vst [vmem:[#allocation2 + $0xd0] sm:$0xff] %v1517_v61  ;;  %v1695_v50 = vpop.permute.xlu1 %1694  ;;  %v1601_v33 = vpop.permute.xlu0 %1600  ;;  %2985 = vmatpush3.bf16.msra.mxu0 %v3115_v55 }
 0x22a   : > { %v1658_v8 = vld [vmem:[#allocation2 + $0xb0] sm:$0xff]  ;;  %v1566_v14 = vld [vmem:[#allocation2 + $0xc0] sm:$0x1] }
 0x22b   : > { %v1659_v44 = vsel %vm4176_vm10, %v1601_v33, %v1658_v8  ;;  %v1567_v11 = vsel %vm4086_vm4, 0, %v1566_v14 }
 0x22c   : > { %1660 = vst [vmem:[#allocation2 + $0xb0] sm:$0xff] %v1659_v44  ;;  %1568 = vst [vmem:[#allocation2 + $0xc0] sm:$0x1] %v1567_v11 }
 0x22d   : > { %1728 = vst.msk [vmem:[#allocation2 + $0xb0] sm:$0xff] %vm1670_vm2, %v1695_v50  ;;  %v1306_v15 = vld [vmem:[#allocation2 + $0xf0] sm:$0xff]  ;;  %v1341_v45 = vpop.permute.xlu1 %1340  ;;  %v1242_v6 = vpop.permute.xlu0 %1241  ;;  %v1864_v56 = vld [vmem:[#allocation2 + $0xa0] sm:$0xff] }
 0x22e   : > { %v1307_v13 = vsel %vm3992_vm7, %v1242_v6, %v1306_v15  ;;  %2116 = vmatmul.mubr.bf16.gmra.mrb[36].mxu1 %v1864_v56 }
 0x22f   : > { %1308 = vst [vmem:[#allocation2 + $0xf0] sm:$0xff] %v1307_v13  ;;  %2844 = vmatprep.mubr.msk.bf16.mxu1 %vm679_vm8, %v1867_v35 }
 0x230   : > { %v1569_v48 = vld [vmem:[#allocation2 + $0xd0] sm:$0x1]  ;;  %1374 = vst.msk [vmem:[#allocation2 + $0xf0] sm:$0xff] %vm1358_vm13, %v1341_v45  ;;  %v1519_v1 = vld [vmem:[#allocation2 + $0xe0] sm:$0xff] }
 0x231   : > { %v1570_v7 = vsel %vm4086_vm4, 0, %v1569_v48  ;;  %v1456_v47 = vpop.permute.xlu0 %1455  ;;  %v1603_v36 = vpop.permute.xlu1 %1602 }
 0x232   : > { %1571 = vst [vmem:[#allocation2 + $0xd0] sm:$0x1] %v1570_v7  ;;  %v1520_v32 = vsel %vm4055_vm3, %v1456_v47, %v1519_v1 }
 0x233   : > { %v1661_v17 = vld [vmem:[#allocation2 + $0xc0] sm:$0xff]  ;;  %1521 = vst [vmem:[#allocation2 + $0xe0] sm:$0xff] %v1520_v32 }
 0x234   : > { %v1662_v2 = vsel %vm4176_vm10, %v1603_v36, %v1661_v17  ;;  %v1866_v16 = vld [vmem:[#allocation2 + $0xb0] sm:$0xff] }
 0x235   : > { %1663 = vst [vmem:[#allocation2 + $0xc0] sm:$0xff] %v1662_v2  ;;  %v1697_v52 = vpop.permute.xlu0 %1696  ;;  %v1605_v51 = vpop.permute.xlu1 %1604 }
 0x236   : > { %1729 = vst.msk [vmem:[#allocation2 + $0xc0] sm:$0xff] %vm1670_vm2, %v1697_v52  ;;  %2124 = vmatmul.mubr.bf16.gmra.mrb[40].mxu1 %v1866_v16 }
 0x237   : > { %v1422_v41 = vld [vmem:[#allocation2 + $0xf0] sm:$0x80]  ;;  %2845 = vmatprep.mubr.msk.bf16.mxu1 %vm679_vm8, %v1869_v59 }
 0x238   : > { %v1423_v57 = vsel %vm4025_vm1, 0, %v1422_v41 }
 0x239   : > { %1424 = vst [vmem:[#allocation2 + $0xf0] sm:$0x80] %v1423_v57  ;;  %v1664_v9 = vld [vmem:[#allocation2 + $0xd0] sm:$0xff]  ;;  %v1699_v63 = vpop.permute.xlu0 %1698  ;;  %v1458_v5 = vpop.permute.xlu1 %1457 }
 0x23a   : > { %v1572_v23 = vld [vmem:[#allocation2 + $0xe0] sm:$0x1]  ;;  %v1665_v21 = vsel %vm4176_vm10, %v1605_v51, %v1664_v9 }
 0x23b   : > { %v1573_v30 = vsel %vm4086_vm4, 0, %v1572_v23  ;;  %1666 = vst [vmem:[#allocation2 + $0xd0] sm:$0xff] %v1665_v21 }
 0x23c   : > { %1574 = vst [vmem:[#allocation2 + $0xe0] sm:$0x1] %v1573_v30  ;;  %1730 = vst.msk [vmem:[#allocation2 + $0xd0] sm:$0xff] %vm1670_vm2, %v1699_v63 }
 0x23d   : > { %v1868_v28 = vld [vmem:[#allocation2 + $0xc0] sm:$0xff]  ;;  %v1607_v4 = vpop.permute.xlu0 %1606  ;;  %v1701_v39 = vpop.permute.xlu1 %1700 }
 0x23e   : > { %2132 = vmatmul.mubr.bf16.gmra.mrb[44].mxu1 %v1868_v28 }
 0x23f   : > { %2846 = vmatprep.mubr.msk.bf16.mxu1 %vm679_vm8, %v1871_v42 }
 0x240   : > { %v1522_v3 = vld [vmem:[#allocation2 + $0xf0] sm:$0xff] }
 0x241   : > { %v1523_v49 = vsel %vm4055_vm3, %v1458_v5, %v1522_v3 }
 0x242   : > { %1524 = vst [vmem:[#allocation2 + $0xf0] sm:$0xff] %v1523_v49 }
 0x243   : > { %1527 = vst.msk [vmem:[#allocation2 + $0xf0] sm:$0xff] %vm1526_vm5, %v3309_v60  ;;  %v1667_v54 = vld [vmem:[#allocation2 + $0xe0] sm:$0xff]  ;;  %v1870_v62 = vld [vmem:[#allocation2 + $0xd0] sm:$0xff] }
 0x244   : > { %v1668_v38 = vsel %vm4176_vm10, %v1607_v4, %v1667_v54 }
 0x245   : > { %1669 = vst [vmem:[#allocation2 + $0xe0] sm:$0xff] %v1668_v38 }
 0x246   : > { %1731 = vst.msk [vmem:[#allocation2 + $0xe0] sm:$0xff] %vm1670_vm2, %v1701_v39  ;;  %2140 = vmatmul.mubr.bf16.gmra.mrb[48].mxu1 %v1870_v62 }
 0x247   : > { %2847 = vmatprep.mubr.msk.bf16.mxu1 %vm679_vm8, %v3244_v27 }
 0x24a   : > { %v1575_v25 = vld [vmem:[#allocation2 + $0xf0] sm:$0x1] }
 0x24b   : > { %v1576_v40 = vsel %vm4086_vm4, 0, %v1575_v25 }
 0x24c   : > { %1577 = vst [vmem:[#allocation2 + $0xf0] sm:$0x1] %v1576_v40 }
 0x24d   : > { %1671 = vst.msk [vmem:[#allocation2 + $0xf0] sm:$0xff] %vm1670_vm2, %v3309_v60  ;;  %v1872_v58 = vld [vmem:[#allocation2 + $0xe0] sm:$0xff] }
 0x24e   : > { %2148 = vmatmul.mubr.bf16.gmra.mrb[52].mxu1 %v1872_v58  ;;  %v4515_v60 = vld [vmem:[%s4899_s4] ss:$0 sm:$0xff] }
 0x24f   : > { %2848 = vmatprep.mubr.msk.bf16.mxu1 %vm679_vm8, %v1875_v31 }
 0x254   : > { %v1874_v29 = vld [vmem:[#allocation2 + $0xf0] sm:$0xff] }
 0x256   : > { %2156 = vmatmul.mubr.bf16.gmra.mrb[56].mxu1 %v1874_v29 }
 0x294   : > { %v2045_v18 = vpop.f32.mrb[0].mxu1 }
 0x295   : > { %v2046_v43 = vadd.f32 %v4515_v60, %v2045_v18  ;;  %v2047_v12 = vpop.f32.mrb[1].mxu1 }
 0x296   : > { %v2048_v26 = vpop.f32.mrb[2].mxu1 }
 0x297   : > { %v2049_v20 = vadd.f32 %v4515_v60, %v2048_v26  ;;  %v2050_v19 = vpop.f32.mrb[3].mxu1  ;;  %v2166_v10 = vmax.f32 %v2046_v43, 0.0 }
 0x299   : > { %v2167_v0 = vmax.f32 %v2049_v20, 0.0 }
 0x29b   : > { %v4519_v22 = vpack.c.bf16 %v2167_v0, %v2166_v10 }
 0x29c   : > { %v2053_v46 = vpop.f32.mrb[4].mxu1 }
 0x29d   : > { %v2054_v24 = vadd.f32 %v4515_v60, %v2053_v46  ;;  %v2055_v37 = vpop.f32.mrb[5].mxu1 }
 0x29e   : > { %v2056_v53 = vpop.f32.mrb[6].mxu1 }
 0x29f   : > { %v2057_v61 = vadd.f32 %v4515_v60, %v2056_v53  ;;  %v2058_v50 = vpop.f32.mrb[7].mxu1  ;;  %v2168_v8 = vmax.f32 %v2054_v24, 0.0 }
 0x2a1   : > { %v2169_v33 = vmax.f32 %v2057_v61, 0.0 }
 0x2a3   : > { %v4523_v14 = vpack.c.bf16 %v2169_v33, %v2168_v8 }
 0x2ab   : > { %v2061_v44 = vpop.f32.mrb[8].mxu1 }
 0x2ac   : > { %v2062_v11 = vadd.f32 %v4515_v60, %v2061_v44  ;;  %v2063_v15 = vpop.f32.mrb[9].mxu1 }
 0x2ad   : > { %v2064_v45 = vpop.f32.mrb[10].mxu1 }
 0x2ae   : > { %v2065_v6 = vadd.f32 %v4515_v60, %v2064_v45  ;;  %v2066_v56 = vpop.f32.mrb[11].mxu1  ;;  %v2170_v13 = vmax.f32 %v2062_v11, 0.0 }
 0x2b0   : > { %v2171_v35 = vmax.f32 %v2065_v6, 0.0 }
 0x2b2   : > { %v4527_v48 = vpack.c.bf16 %v2171_v35, %v2170_v13 }
 0x2b5   : > { %v2069_v1 = vpop.f32.mrb[12].mxu1 }
 0x2b6   : > { %v2070_v7 = vadd.f32 %v4515_v60, %v2069_v1  ;;  %v2071_v47 = vpop.f32.mrb[13].mxu1 }
 0x2b7   : > { %v2072_v32 = vpop.f32.mrb[14].mxu1 }
 0x2b8   : > { %v2073_v36 = vadd.f32 %v4515_v60, %v2072_v32  ;;  %v2074_v17 = vpop.f32.mrb[15].mxu1  ;;  %v2172_v2 = vmax.f32 %v2070_v7, 0.0 }
 0x2ba   : > { %v2173_v52 = vmax.f32 %v2073_v36, 0.0 }
 0x2bc   : > { %v2200_v16 = vpack.c.bf16 %v2173_v52, %v2172_v2 }
 0x2c3   : > { %v2077_v59 = vpop.f32.mrb[16].mxu1 }
 0x2c4   : > { %v2078_v41 = vadd.f32 %v4515_v60, %v2077_v59  ;;  %v2079_v57 = vpop.f32.mrb[17].mxu1 }
 0x2c5   : > { %v2080_v51 = vpop.f32.mrb[18].mxu1 }
 0x2c6   : > { %v2081_v9 = vadd.f32 %v4515_v60, %v2080_v51  ;;  %v2082_v23 = vpop.f32.mrb[19].mxu1  ;;  %v2174_v21 = vmax.f32 %v2078_v41, 0.0 }
 0x2c8   : > { %v2175_v30 = vmax.f32 %v2081_v9, 0.0 }
 0x2ca   : > { %v2201_v63 = vpack.c.bf16 %v2175_v30, %v2174_v21 }
 0x2d5   : > { %v2085_v28 = vpop.f32.mrb[20].mxu1 }
 0x2d6   : > { %v2086_v42 = vadd.f32 %v4515_v60, %v2085_v28  ;;  %v2087_v5 = vpop.f32.mrb[21].mxu1 }
 0x2d7   : > { %v2088_v3 = vpop.f32.mrb[22].mxu1 }
 0x2d8   : > { %v2089_v49 = vadd.f32 %v4515_v60, %v2088_v3  ;;  %v2090_v54 = vpop.f32.mrb[23].mxu1  ;;  %v2176_v4 = vmax.f32 %v2086_v42, 0.0 }
 0x2da   : > { %v2177_v38 = vmax.f32 %v2089_v49, 0.0 }
 0x2dc   : > { %v2202_v39 = vpack.c.bf16 %v2177_v38, %v2176_v4 }
 0x2e2   : > { %v2093_v62 = vpop.f32.mrb[24].mxu1 }
 0x2e3   : > { %v2094_v27 = vadd.f32 %v4515_v60, %v2093_v62  ;;  %v2095_v25 = vpop.f32.mrb[25].mxu1 }
 0x2e4   : > { %v2096_v40 = vpop.f32.mrb[26].mxu1 }
 0x2e5   : > { %v2097_v31 = vadd.f32 %v4515_v60, %v2096_v40  ;;  %v2098_v58 = vpop.f32.mrb[27].mxu1  ;;  %v2178_v29 = vmax.f32 %v2094_v27, 0.0 }
 0x2e7   : > { %v2179_v34 = vmax.f32 %v2097_v31, 0.0 }
 0x2e9   : > { %v2203_v55 = vpack.c.bf16 %v2179_v34, %v2178_v29  ;;  %v2037_v18 = vpop.f32.mrb[32].mxu0 }
 0x2ea   : > { %v2038_v43 = vadd.f32 %v4515_v60, %v2037_v18  ;;  %v2039_v12 = vpop.f32.mrb[33].mxu0  ;;  %v2101_v26 = vpop.f32.mrb[28].mxu1 }
 0x2eb   : > { %v2102_v20 = vadd.f32 %v4515_v60, %v2101_v26  ;;  %v2040_v19 = vpop.f32.mrb[34].mxu0  ;;  %v2103_v10 = vpop.f32.mrb[29].mxu1 }
 0x2ec   : > { %v2041_v0 = vadd.f32 %v4515_v60, %v2040_v19  ;;  %v2042_v46 = vpop.f32.mrb[35].mxu0  ;;  %v2104_v24 = vpop.f32.mrb[30].mxu1  ;;  %v2164_v61 = vmax.f32 %v2038_v43, 0.0 }
 0x2ed   : > { %v2105_v37 = vadd.f32 %v4515_v60, %v2104_v24  ;;  %v2106_v53 = vpop.f32.mrb[31].mxu1  ;;  %v2180_v8 = vmax.f32 %v2102_v20, 0.0 }
 0x2ee   : > { %v2165_v50 = vmax.f32 %v2041_v0, 0.0 }
 0x2ef   : > { %v2181_v33 = vmax.f32 %v2105_v37, 0.0 }
 0x2f0   : > { %v2196_v44 = vpack.c.bf16 %v2165_v50, %v2164_v61 }
 0x2f1   : > { %v2204_v11 = vpack.c.bf16 %v2181_v33, %v2180_v8 }
 0x2f2   : > { %2986 = vmatprep.mubr.msk.bf16.mxu0 %vm2235_vm6, %v2196_v44 }
 0x2f3   : > { %2987 = vmatmul.mubr.msk.bf16.vlgmr.msra.gmra.mrb[36].mxu0 %vm2235_vm6, %v4519_v22 }
 0x2f4   : > { %2990 = vmatprep.mubr.msk.bf16.mxu0 %vm2235_vm6, %v4523_v14 }
 0x2f6   : > { %v2109_v15 = vpop.f32.mrb[32].mxu1 }
 0x2f7   : > { %v2110_v45 = vadd.f32 %v4515_v60, %v2109_v15  ;;  %v2111_v6 = vpop.f32.mrb[33].mxu1  ;;  %v4577_v15 = vld [vmem:[%s4901_s6] ss:$0 sm:$0xff] }
 0x2f8   : > { %v2112_v56 = vpop.f32.mrb[34].mxu1 }
 0x2f9   : > { %v2113_v13 = vadd.f32 %v4515_v60, %v2112_v56  ;;  %v2114_v35 = vpop.f32.mrb[35].mxu1  ;;  %v2182_v1 = vmax.f32 %v2110_v45, 0.0 }
 0x2fb   : > { %v2183_v7 = vmax.f32 %v2113_v13, 0.0  ;;  %2991 = vmatmul.mubr.msk.bf16.gmra.mrb[40].mxu0 %vm2235_vm6, %v4527_v48 }
 0x2fc   : > { %2994 = vmatprep.mubr.msk.bf16.mxu0 %vm2235_vm6, %v2200_v16 }
 0x2fd   : > { %v2205_v47 = vpack.c.bf16 %v2183_v7, %v2182_v1 }
 0x301   : > { %v2117_v22 = vpop.f32.mrb[36].mxu1 }
 0x302   : > { %v2118_v32 = vadd.f32 %v4515_v60, %v2117_v22  ;;  %v2119_v14 = vpop.f32.mrb[37].mxu1 }
 0x303   : > { %v2120_v36 = vpop.f32.mrb[38].mxu1  ;;  %2995 = vmatmul.mubr.msk.bf16.gmra.mrb[44].mxu0 %vm2235_vm6, %v2201_v63 }
 0x304   : > { %v2121_v17 = vadd.f32 %v4515_v60, %v2120_v36  ;;  %v2122_v2 = vpop.f32.mrb[39].mxu1  ;;  %2998 = vmatprep.mubr.msk.bf16.mxu0 %vm2235_vm6, %v2202_v39  ;;  %v2184_v52 = vmax.f32 %v2118_v32, 0.0 }
 0x306   : > { %v2185_v59 = vmax.f32 %v2121_v17, 0.0 }
 0x308   : > { %v2206_v41 = vpack.c.bf16 %v2185_v59, %v2184_v52 }
 0x309   : > { %v2125_v57 = vpop.f32.mrb[40].mxu1 }
 0x30a   : > { %v2126_v48 = vadd.f32 %v4515_v60, %v2125_v57  ;;  %v2127_v51 = vpop.f32.mrb[41].mxu1 }
 0x30b   : > { %v2128_v16 = vpop.f32.mrb[42].mxu1  ;;  %2999 = vmatmul.mubr.msk.bf16.gmra.mrb[48].mxu0 %vm2235_vm6, %v2203_v55 }
 0x30c   : > { %v2129_v9 = vadd.f32 %v4515_v60, %v2128_v16  ;;  %v2130_v23 = vpop.f32.mrb[43].mxu1  ;;  %3002 = vmatprep.mubr.msk.bf16.mxu0 %vm2235_vm6, %v2204_v11  ;;  %v2186_v21 = vmax.f32 %v2126_v48, 0.0 }
 0x30e   : > { %v2187_v30 = vmax.f32 %v2129_v9, 0.0 }
 0x310   : > { %v2207_v63 = vpack.c.bf16 %v2187_v30, %v2186_v21 }
 0x311   : > { %v2133_v28 = vpop.f32.mrb[44].mxu1 }
 0x312   : > { %v2134_v42 = vadd.f32 %v4515_v60, %v2133_v28  ;;  %v2135_v5 = vpop.f32.mrb[45].mxu1 }
 0x313   : > { %v2136_v3 = vpop.f32.mrb[46].mxu1  ;;  %3003 = vmatmul.mubr.msk.bf16.gmra.mrb[52].mxu0 %vm2235_vm6, %v2205_v47 }
 0x314   : > { %v2137_v49 = vadd.f32 %v4515_v60, %v2136_v3  ;;  %v2138_v54 = vpop.f32.mrb[47].mxu1  ;;  %3006 = vmatprep.mubr.msk.bf16.mxu0 %vm2235_vm6, %v2206_v41  ;;  %v2188_v4 = vmax.f32 %v2134_v42, 0.0 }
 0x316   : > { %v2189_v38 = vmax.f32 %v2137_v49, 0.0 }
 0x318   : > { %v2208_v39 = vpack.c.bf16 %v2189_v38, %v2188_v4  ;;  %v2445_v4 = vlaneseq }
 0x319   : > { %v2141_v62 = vpop.f32.mrb[48].mxu1 }
 0x31a   : > { %v2142_v27 = vadd.f32 %v4515_v60, %v2141_v62  ;;  %v2143_v25 = vpop.f32.mrb[49].mxu1 }
 0x31b   : > { %v2144_v40 = vpop.f32.mrb[50].mxu1  ;;  %3007 = vmatmul.mubr.msk.bf16.gmra.mrb[56].mxu0 %vm2235_vm6, %v2207_v63 }
 0x31c   : > { %v2145_v31 = vadd.f32 %v4515_v60, %v2144_v40  ;;  %v2146_v58 = vpop.f32.mrb[51].mxu1  ;;  %3010 = vmatprep.mubr.msk.bf16.mxu0 %vm2235_vm6, %v2208_v39  ;;  %v2190_v29 = vmax.f32 %v2142_v27, 0.0 }
 0x31e   : > { %v2191_v34 = vmax.f32 %v2145_v31, 0.0 }
 0x320   : > { %v2209_v55 = vpack.c.bf16 %v2191_v34, %v2190_v29 }
 0x321   : > { %v2149_v18 = vpop.f32.mrb[52].mxu1 }
 0x322   : > { %v2150_v43 = vadd.f32 %v4515_v60, %v2149_v18  ;;  %v2151_v12 = vpop.f32.mrb[53].mxu1 }
 0x323   : > { %v2152_v26 = vpop.f32.mrb[54].mxu1  ;;  %3011 = vmatmul.mubr.msk.bf16.gmra.mrb[60].mxu0 %vm2235_vm6, %v2209_v55  ;;  %v4627_v55 = vand.u32 127, %v2445_v4 }
 0x324   : > { %v2153_v20 = vadd.f32 %v4515_v60, %v2152_v26  ;;  %v2154_v19 = vpop.f32.mrb[55].mxu1  ;;  %v2192_v10 = vmax.f32 %v2150_v43, 0.0 }
 0x325   : > { %vm2447_vm8 = vcmp.lt.s32.totalorder %v4627_v55, 3 }
 0x326   : > { %v2193_v0 = vmax.f32 %v2153_v20, 0.0 }
 0x328   : > { %v2210_v46 = vpack.c.bf16 %v2193_v0, %v2192_v10 }
 0x329   : > { %v2157_v24 = vpop.f32.mrb[56].mxu1 }
 0x32a   : > { %v2158_v37 = vadd.f32 %v4515_v60, %v2157_v24  ;;  %v2159_v53 = vpop.f32.mrb[57].mxu1  ;;  %3014 = vmatprep.mubr.msk.bf16.mxu0 %vm2235_vm6, %v2210_v46 }
 0x32b   : > { %v2160_v61 = vpop.f32.mrb[58].mxu1 }
 0x32c   : > { %v2161_v50 = vadd.f32 %v4515_v60, %v2160_v61  ;;  %v2162_v8 = vpop.f32.mrb[59].mxu1  ;;  %v2194_v33 = vmax.f32 %v2158_v37, 0.0 }
 0x32e   : > { %v2195_v44 = vmax.f32 %v2161_v50, 0.0 }
 0x330   : > { %v2211_v11 = vpack.c.bf16 %v2195_v44, %v2194_v33 }
 0x332   : > { %3015 = vmatmul.mubr.msk.bf16.gmra.mrb[64].mxu0 %vm2235_vm6, %v2211_v11 }
 0x3c6   : > { %v2988_v45 = vpop.f32.mrb[36].mxu0 }
 0x3c7   : > { %v4580_v6 = vadd.f32 %v2988_v45, %v4577_v15  ;;  %v2318_v56 = vpop.f32.mrb[37].mxu0 }
 0x3c8   : > { %v4583_v13 = vadd.f32 %v4577_v15, %v2318_v56  ;;  %v2989_v60 = vpop.f32.mrb[38].mxu0 }
 0x3c9   : > { %v2870_v35 = vmul.f32 -1.442695, %v4580_v6  ;;  %v4587_v1 = vadd.f32 %v2989_v60, %v4577_v15  ;;  %v2321_v7 = vpop.f32.mrb[39].mxu0 }
 0x3ca   : > { %v2868_v47 = vmul.f32 -1.442695, %v4583_v13  ;;  %v4591_v22 = vadd.f32 %v4577_v15, %v2321_v7 }
 0x3cb   : > { %3116 = vpow2.f32 %v2870_v35  ;;  %v2871_v32 = vmul.f32 -1.442695, %v4587_v1 }
 0x3cc   : > { %3118 = vpow2.f32 %v2868_v47  ;;  %v2869_v14 = vmul.f32 -1.442695, %v4591_v22 }
 0x3cd   : > { %3120 = vpow2.f32 %v2871_v32 }
 0x3ce   : > { %3122 = vpow2.f32 %v2869_v14  ;;  %v2992_v36 = vpop.f32.mrb[40].mxu0 }
 0x3cf   : > { %v4596_v17 = vadd.f32 %v2992_v36, %v4577_v15  ;;  %v2334_v2 = vpop.f32.mrb[41].mxu0 }
 0x3d0   : > { %v4599_v52 = vadd.f32 %v4577_v15, %v2334_v2  ;;  %v2993_v59 = vpop.f32.mrb[42].mxu0 }
 0x3d1   : > { %v2874_v41 = vmul.f32 -1.442695, %v4596_v17  ;;  %v4603_v57 = vadd.f32 %v2993_v59, %v4577_v15  ;;  %v2337_v48 = vpop.f32.mrb[43].mxu0 }
 0x3d2   : > { %v2872_v51 = vmul.f32 -1.442695, %v4599_v52  ;;  %v4607_v16 = vadd.f32 %v4577_v15, %v2337_v48 }
 0x3d3   : > { %3124 = vpow2.f32 %v2874_v41  ;;  %v2875_v9 = vmul.f32 -1.442695, %v4603_v57 }
 0x3d4   : > { %3126 = vpow2.f32 %v2872_v51  ;;  %v2873_v23 = vmul.f32 -1.442695, %v4607_v16 }
 0x3d5   : > { %v3117_v21 = vpop.eup %3116  ;;  %3128 = vpow2.f32 %v2875_v9 }
 0x3d6   : > { %v3119_v30 = vpop.eup %3118  ;;  %v2546_v63 = vadd.f32 1.0, %v3117_v21  ;;  %3130 = vpow2.f32 %v2873_v23  ;;  %v2996_v28 = vpop.f32.mrb[44].mxu0 }
 0x3d7   : > { %v3121_v42 = vpop.eup %3120  ;;  %v2544_v5 = vadd.f32 1.0, %v3119_v30  ;;  %v4612_v3 = vadd.f32 %v2996_v28, %v4577_v15  ;;  %v2350_v49 = vpop.f32.mrb[45].mxu0 }
 0x3d8   : > { %v3123_v54 = vpop.eup %3122  ;;  %3132 = vrcp.f32 %v2546_v63  ;;  %v2547_v38 = vadd.f32 1.0, %v3121_v42  ;;  %v4615_v39 = vadd.f32 %v4577_v15, %v2350_v49  ;;  %v2997_v62 = vpop.f32.mrb[46].mxu0 }
 0x3d9   : > { %3134 = vrcp.f32 %v2544_v5  ;;  %v2545_v27 = vadd.f32 1.0, %v3123_v54  ;;  %v2878_v25 = vmul.f32 -1.442695, %v4612_v3  ;;  %v4619_v40 = vadd.f32 %v2997_v62, %v4577_v15  ;;  %v2353_v31 = vpop.f32.mrb[47].mxu0 }
 0x3da   : > { %3136 = vrcp.f32 %v2547_v38  ;;  %v2876_v58 = vmul.f32 -1.442695, %v4615_v39  ;;  %v4623_v29 = vadd.f32 %v4577_v15, %v2353_v31 }
 0x3db   : > { %3138 = vrcp.f32 %v2545_v27  ;;  %v2879_v34 = vmul.f32 -1.442695, %v4619_v40 }
 0x3dc   : > { %3140 = vpow2.f32 %v2878_v25  ;;  %v2877_v18 = vmul.f32 -1.442695, %v4623_v29 }
 0x3dd   : > { %v3125_v43 = vpop.eup %3124  ;;  %3142 = vpow2.f32 %v2876_v58 }
 0x3de   : > { %v3127_v12 = vpop.eup %3126  ;;  %v2550_v26 = vadd.f32 1.0, %v3125_v43  ;;  %3144 = vpow2.f32 %v2879_v34  ;;  %v3000_v20 = vpop.f32.mrb[48].mxu0 }
 0x3df   : > { %v3129_v19 = vpop.eup %3128  ;;  %v2548_v10 = vadd.f32 1.0, %v3127_v12  ;;  %3146 = vpow2.f32 %v2877_v18  ;;  %v4633_v0 = vadd.f32 %v3000_v20, %v4577_v15  ;;  %v2366_v46 = vpop.f32.mrb[49].mxu0 }
 0x3e0   : > { %v3131_v24 = vpop.eup %3130  ;;  %3148 = vrcp.f32 %v2550_v26  ;;  %v2551_v37 = vadd.f32 1.0, %v3129_v19  ;;  %v4637_v53 = vadd.f32 %v4577_v15, %v2366_v46  ;;  %v3001_v61 = vpop.f32.mrb[50].mxu0 }
 0x3e1   : > { %3150 = vrcp.f32 %v2548_v10  ;;  %v2549_v50 = vadd.f32 1.0, %v3131_v24  ;;  %v2882_v8 = vmul.f32 -1.442695, %v4633_v0  ;;  %v4641_v33 = vadd.f32 %v3001_v61, %v4577_v15  ;;  %v2369_v44 = vpop.f32.mrb[51].mxu0 }
 0x3e2   : > { %v3133_v11 = vpop.eup %3132  ;;  %3152 = vrcp.f32 %v2551_v37  ;;  %v2880_v45 = vmul.f32 -1.442695, %v4637_v53  ;;  %v4645_v56 = vadd.f32 %v4577_v15, %v2369_v44 }
 0x3e3   : > { %v3135_v60 = vpop.eup %3134  ;;  %v2642_v35 = vsel %vm2447_vm8, %v3133_v11, %v4580_v6  ;;  %3154 = vrcp.f32 %v2549_v50  ;;  %v2883_v7 = vmul.f32 -1.442695, %v4641_v33 }
 0x3e4   : > { %v3137_v47 = vpop.eup %3136  ;;  %2674 = vst [vmem:[%s4651_s18 + $0x10] sm:$0xff] %v2642_v35  ;;  %v2640_v32 = vsel %vm2447_vm8, %v3135_v60, %v4583_v13  ;;  %3156 = vpow2.f32 %v2882_v8  ;;  %v2881_v14 = vmul.f32 -1.442695, %v4645_v56 }
 0x3e5   : > { %v3139_v36 = vpop.eup %3138  ;;  %2672 = vst [vmem:[%s4651_s18] sm:$0xff] %v2640_v32  ;;  %v2643_v6 = vsel %vm2447_vm8, %v3137_v47, %v4587_v1  ;;  %3158 = vpow2.f32 %v2880_v45 }
 0x3e6   : > { %v3141_v2 = vpop.eup %3140  ;;  %2675 = vst [vmem:[%s4651_s18 + $0x18] sm:$0xff] %v2643_v6  ;;  %v2641_v59 = vsel %vm2447_vm8, %v3139_v36, %v4591_v22  ;;  %3160 = vpow2.f32 %v2883_v7  ;;  %v3004_v41 = vpop.f32.mrb[52].mxu0 }
 0x3e7   : > { %v3143_v48 = vpop.eup %3142  ;;  %2673 = vst [vmem:[%s4651_s18 + $0x8] sm:$0xff] %v2641_v59  ;;  %v2554_v13 = vadd.f32 1.0, %v3141_v2  ;;  %3162 = vpow2.f32 %v2881_v14  ;;  %v4668_v51 = vadd.f32 %v3004_v41, %v4577_v15  ;;  %v2382_v9 = vpop.f32.mrb[53].mxu0 }
 0x3e8   : > { %v3145_v23 = vpop.eup %3144  ;;  %v2552_v21 = vadd.f32 1.0, %v3143_v48  ;;  %v4671_v1 = vadd.f32 %v4577_v15, %v2382_v9  ;;  %v3005_v30 = vpop.f32.mrb[54].mxu0 }
 0x3e9   : > { %v3147_v63 = vpop.eup %3146  ;;  %3164 = vrcp.f32 %v2554_v13  ;;  %v2555_v22 = vadd.f32 1.0, %v3145_v23  ;;  %v2886_v28 = vmul.f32 -1.442695, %v4668_v51  ;;  %v4675_v42 = vadd.f32 %v3005_v30, %v4577_v15  ;;  %v2385_v5 = vpop.f32.mrb[55].mxu0 }
 0x3ea   : > { %v3149_v49 = vpop.eup %3148  ;;  %3166 = vrcp.f32 %v2552_v21  ;;  %v2553_v54 = vadd.f32 1.0, %v3147_v63  ;;  %v2884_v4 = vmul.f32 -1.442695, %v4671_v1  ;;  %v4679_v38 = vadd.f32 %v4577_v15, %v2385_v5 }
 0x3eb   : > { %v3151_v62 = vpop.eup %3150  ;;  %v2646_v27 = vsel %vm2447_vm8, %v3149_v49, %v4596_v17  ;;  %3168 = vrcp.f32 %v2555_v22  ;;  %v2887_v25 = vmul.f32 -1.442695, %v4675_v42 }
 0x3ec   : > { %v3153_v31 = vpop.eup %3152  ;;  %2678 = vst [vmem:[%s4651_s18 + $0x30] sm:$0xff] %v2646_v27  ;;  %v2644_v58 = vsel %vm2447_vm8, %v3151_v62, %v4599_v52  ;;  %3170 = vrcp.f32 %v2553_v54  ;;  %v2885_v34 = vmul.f32 -1.442695, %v4679_v38 }
 0x3ed   : > { %v3155_v18 = vpop.eup %3154  ;;  %2676 = vst [vmem:[%s4651_s18 + $0x20] sm:$0xff] %v2644_v58  ;;  %v2647_v43 = vsel %vm2447_vm8, %v3153_v31, %v4603_v57  ;;  %3172 = vpow2.f32 %v2886_v28 }
 0x3ee   : > { %v3157_v17 = vpop.eup %3156  ;;  %2679 = vst [vmem:[%s4651_s18 + $0x38] sm:$0xff] %v2647_v43  ;;  %v2645_v12 = vsel %vm2447_vm8, %v3155_v18, %v4607_v16  ;;  %3174 = vpow2.f32 %v2884_v4  ;;  %v3008_v26 = vpop.f32.mrb[56].mxu0 }
 0x3ef   : > { %v3159_v20 = vpop.eup %3158  ;;  %2677 = vst [vmem:[%s4651_s18 + $0x28] sm:$0xff] %v2645_v12  ;;  %v2558_v52 = vadd.f32 1.0, %v3157_v17  ;;  %3176 = vpow2.f32 %v2887_v25  ;;  %v4700_v19 = vadd.f32 %v3008_v26, %v4577_v15  ;;  %v2398_v10 = vpop.f32.mrb[57].mxu0 }
 0x3f0   : > { %v3161_v46 = vpop.eup %3160  ;;  %v2556_v24 = vadd.f32 1.0, %v3159_v20  ;;  %3178 = vpow2.f32 %v2885_v34  ;;  %v4703_v57 = vadd.f32 %v4577_v15, %v2398_v10  ;;  %v3009_v37 = vpop.f32.mrb[58].mxu0 }
 0x3f1   : > { %v3163_v61 = vpop.eup %3162  ;;  %3180 = vrcp.f32 %v2558_v52  ;;  %v2559_v16 = vadd.f32 1.0, %v3161_v46  ;;  %v2890_v50 = vmul.f32 -1.442695, %v4700_v19  ;;  %v4707_v8 = vadd.f32 %v3009_v37, %v4577_v15  ;;  %v2401_v44 = vpop.f32.mrb[59].mxu0 }
 0x3f2   : > { %3182 = vrcp.f32 %v2556_v24  ;;  %v2557_v11 = vadd.f32 1.0, %v3163_v61  ;;  %v2888_v45 = vmul.f32 -1.442695, %v4703_v57  ;;  %v4711_v60 = vadd.f32 %v4577_v15, %v2401_v44 }
 0x3f3   : > { %v3165_v35 = vpop.eup %3164  ;;  %3184 = vrcp.f32 %v2559_v16  ;;  %v2891_v7 = vmul.f32 -1.442695, %v4707_v8 }
 0x3f4   : > { %v3167_v47 = vpop.eup %3166  ;;  %v2650_v32 = vsel %vm2447_vm8, %v3165_v35, %v4612_v3  ;;  %3186 = vrcp.f32 %v2557_v11  ;;  %v2889_v14 = vmul.f32 -1.442695, %v4711_v60 }
 0x3f5   : > { %v3169_v36 = vpop.eup %3168  ;;  %2682 = vst [vmem:[%s4651_s18 + $0x50] sm:$0xff] %v2650_v32  ;;  %v2648_v6 = vsel %vm2447_vm8, %v3167_v47, %v4615_v39  ;;  %3188 = vpow2.f32 %v2890_v50 }
 0x3f6   : > { %v3171_v2 = vpop.eup %3170  ;;  %2680 = vst [vmem:[%s4651_s18 + $0x40] sm:$0xff] %v2648_v6  ;;  %v2651_v59 = vsel %vm2447_vm8, %v3169_v36, %v4619_v40  ;;  %3190 = vpow2.f32 %v2888_v45  ;;  %v3012_v41 = vpop.f32.mrb[60].mxu0 }
 0x3f7   : > { %v3173_v3 = vpop.eup %3172  ;;  %2683 = vst [vmem:[%s4651_s18 + $0x58] sm:$0xff] %v2651_v59  ;;  %v2649_v48 = vsel %vm2447_vm8, %v3171_v2, %v4623_v29  ;;  %3192 = vpow2.f32 %v2891_v7  ;;  %v4731_v13 = vadd.f32 %v3012_v41, %v4577_v15  ;;  %v2414_v39 = vpop.f32.mrb[61].mxu0 }
 0x3f8   : > { %v3175_v9 = vpop.eup %3174  ;;  %2681 = vst [vmem:[%s4651_s18 + $0x48] sm:$0xff] %v2649_v48  ;;  %v2562_v23 = vadd.f32 1.0, %v3173_v3  ;;  %3194 = vpow2.f32 %v2889_v14  ;;  %v4735_v21 = vadd.f32 %v4577_v15, %v2414_v39  ;;  %v3013_v40 = vpop.f32.mrb[62].mxu0 }
 0x3f9   : > { %v3177_v30 = vpop.eup %3176  ;;  %v2560_v63 = vadd.f32 1.0, %v3175_v9  ;;  %v4738_v22 = vadd.f32 %v3013_v40, %v4577_v15  ;;  %v2417_v29 = vpop.f32.mrb[63].mxu0  ;;  %v2894_v49 = vmul.f32 -1.442695, %v4731_v13 }
 0x3fa   : > { %v3179_v28 = vpop.eup %3178  ;;  %3196 = vrcp.f32 %v2562_v23  ;;  %v2563_v5 = vadd.f32 1.0, %v3177_v30  ;;  %v4742_v54 = vadd.f32 %v4577_v15, %v2417_v29  ;;  %v2892_v27 = vmul.f32 -1.442695, %v4735_v21 }
 0x3fb   : > { %v3181_v4 = vpop.eup %3180  ;;  %3198 = vrcp.f32 %v2560_v63  ;;  %v2561_v62 = vadd.f32 1.0, %v3179_v28  ;;  %v2895_v58 = vmul.f32 -1.442695, %v4738_v22 }
 0x3fc   : > { %v3183_v25 = vpop.eup %3182  ;;  %v2654_v31 = vsel %vm2447_vm8, %v3181_v4, %v4633_v0  ;;  %3200 = vrcp.f32 %v2563_v5  ;;  %v2893_v43 = vmul.f32 -1.442695, %v4742_v54 }
 0x3fd   : > { %v3185_v34 = vpop.eup %3184  ;;  %2686 = vst [vmem:[%s4651_s18 + $0x70] sm:$0xff] %v2654_v31  ;;  %v2652_v18 = vsel %vm2447_vm8, %v3183_v25, %v4637_v53  ;;  %3202 = vrcp.f32 %v2561_v62 }
 0x3fe   : > { %v3187_v17 = vpop.eup %3186  ;;  %2684 = vst [vmem:[%s4651_s18 + $0x60] sm:$0xff] %v2652_v18  ;;  %v2655_v12 = vsel %vm2447_vm8, %v3185_v34, %v4641_v33  ;;  %3204 = vpow2.f32 %v2894_v49 }
 0x3ff   : > { %v3189_v0 = vpop.eup %3188  ;;  %2687 = vst [vmem:[%s4651_s18 + $0x78] sm:$0xff] %v2655_v12  ;;  %v2653_v26 = vsel %vm2447_vm8, %v3187_v17, %v4645_v56  ;;  %3206 = vpow2.f32 %v2892_v27 }
 0x400   : > { %v3191_v20 = vpop.eup %3190  ;;  %2685 = vst [vmem:[%s4651_s18 + $0x68] sm:$0xff] %v2653_v26  ;;  %v2566_v53 = vadd.f32 1.0, %v3189_v0  ;;  %3208 = vpow2.f32 %v2895_v58 }
 0x401   : > { %v3193_v52 = vpop.eup %3192  ;;  %v2564_v10 = vadd.f32 1.0, %v3191_v20  ;;  %3210 = vpow2.f32 %v2893_v43 }
 0x402   : > { %v3195_v46 = vpop.eup %3194  ;;  %3212 = vrcp.f32 %v2566_v53  ;;  %v2567_v33 = vadd.f32 1.0, %v3193_v52 }
 0x403   : > { %3214 = vrcp.f32 %v2564_v10  ;;  %v2565_v24 = vadd.f32 1.0, %v3195_v46 }
 0x404   : > { %v3197_v37 = vpop.eup %3196  ;;  %3216 = vrcp.f32 %v2567_v33 }
 0x405   : > { %v3199_v61 = vpop.eup %3198  ;;  %v2658_v56 = vsel %vm2447_vm8, %v3197_v37, %v4668_v51  ;;  %3218 = vrcp.f32 %v2565_v24  ;;  %v3016_v16 = vpop.f32.mrb[64].mxu0 }
 0x406   : > { %v3201_v50 = vpop.eup %3200  ;;  %2690 = vst [vmem:[%s4651_s18 + $0x90] sm:$0xff] %v2658_v56  ;;  %v2656_v44 = vsel %vm2447_vm8, %v3199_v61, %v4671_v1  ;;  %v4771_v11 = vadd.f32 %v3016_v16, %v4577_v15  ;;  %v2430_v45 = vpop.f32.mrb[65].mxu0 }
 0x407   : > { %v3203_v35 = vpop.eup %3202  ;;  %2688 = vst [vmem:[%s4651_s18 + $0x80] sm:$0xff] %v2656_v44  ;;  %v2659_v7 = vsel %vm2447_vm8, %v3201_v50, %v4675_v42  ;;  %v4778_v51 = vadd.f32 %v4577_v15, %v2430_v45  ;;  %v3017_v47 = vpop.f32.mrb[66].mxu0 }
 0x408   : > { %v3205_v32 = vpop.eup %3204  ;;  %2691 = vst [vmem:[%s4651_s18 + $0x98] sm:$0xff] %v2659_v7  ;;  %v2657_v1 = vsel %vm2447_vm8, %v3203_v35, %v4679_v38  ;;  %v2898_v14 = vmul.f32 -1.442695, %v4771_v11  ;;  %v4786_v36 = vadd.f32 %v3017_v47, %v4577_v15  ;;  %v2433_v6 = vpop.f32.mrb[67].mxu0 }
 0x409   : > { %v3207_v2 = vpop.eup %3206  ;;  %2689 = vst [vmem:[%s4651_s18 + $0x88] sm:$0xff] %v2657_v1  ;;  %v2570_v59 = vadd.f32 1.0, %v3205_v32  ;;  %v4790_v42 = vadd.f32 %v4577_v15, %v2433_v6  ;;  %v2896_v39 = vmul.f32 -1.442695, %v4778_v51 }
 0x40a   : > { %v3209_v41 = vpop.eup %3208  ;;  %v2568_v3 = vadd.f32 1.0, %v3207_v2  ;;  %3220 = vpow2.f32 %v2898_v14  ;;  %v2899_v40 = vmul.f32 -1.442695, %v4786_v36 }
 0x40b   : > { %v3211_v48 = vpop.eup %3210  ;;  %3222 = vrcp.f32 %v2570_v59  ;;  %v2571_v38 = vadd.f32 1.0, %v3209_v41  ;;  %v2897_v63 = vmul.f32 -1.442695, %v4790_v42 }
 0x40c   : > { %v3213_v9 = vpop.eup %3212  ;;  %3224 = vrcp.f32 %v2568_v3  ;;  %v2569_v23 = vadd.f32 1.0, %v3211_v48 }
 0x40d   : > { %v3215_v30 = vpop.eup %3214  ;;  %v2662_v15 = vsel %vm2447_vm8, %v3213_v9, %v4700_v19  ;;  %3226 = vrcp.f32 %v2571_v38 }
 0x40e   : > { %v3217_v29 = vpop.eup %3216  ;;  %2694 = vst [vmem:[%s4651_s18 + $0xb0] sm:$0xff] %v2662_v15  ;;  %v2660_v28 = vsel %vm2447_vm8, %v3215_v30, %v4703_v57  ;;  %3228 = vrcp.f32 %v2569_v23 }
 0x40f   : > { %v3219_v5 = vpop.eup %3218  ;;  %2692 = vst [vmem:[%s4651_s18 + $0xa0] sm:$0xff] %v2660_v28  ;;  %v2663_v49 = vsel %vm2447_vm8, %v3217_v29, %v4707_v8  ;;  %3230 = vpow2.f32 %v2896_v39 }
 0x410   : > { %2695 = vst [vmem:[%s4651_s18 + $0xb8] sm:$0xff] %v2663_v49  ;;  %v2661_v19 = vsel %vm2447_vm8, %v3219_v5, %v4711_v60  ;;  %3232 = vpow2.f32 %v2899_v40 }
 0x411   : > { %2693 = vst [vmem:[%s4651_s18 + $0xa8] sm:$0xff] %v2661_v19  ;;  %3234 = vpow2.f32 %v2897_v63 }
 0x414   : > { %v3221_v57 = vpop.eup %3220 }
 0x415   : > { %v3223_v4 = vpop.eup %3222  ;;  %v2574_v62 = vadd.f32 1.0, %v3221_v57 }
 0x416   : > { %v3225_v27 = vpop.eup %3224  ;;  %v2666_v8 = vsel %vm2447_vm8, %v3223_v4, %v4731_v13 }
 0x417   : > { %v3227_v25 = vpop.eup %3226  ;;  %2698 = vst [vmem:[%s4651_s18 + $0xd0] sm:$0xff] %v2666_v8  ;;  %v2664_v31 = vsel %vm2447_vm8, %v3225_v27, %v4735_v21  ;;  %3236 = vrcp.f32 %v2574_v62 }
 0x418   : > { %v3229_v60 = vpop.eup %3228  ;;  %2696 = vst [vmem:[%s4651_s18 + $0xc0] sm:$0xff] %v2664_v31  ;;  %v2667_v58 = vsel %vm2447_vm8, %v3227_v25, %v4738_v22 }
 0x419   : > { %v3231_v34 = vpop.eup %3230  ;;  %2699 = vst [vmem:[%s4651_s18 + $0xd8] sm:$0xff] %v2667_v58  ;;  %v2665_v13 = vsel %vm2447_vm8, %v3229_v60, %v4742_v54 }
 0x41a   : > { %v3233_v18 = vpop.eup %3232  ;;  %2697 = vst [vmem:[%s4651_s18 + $0xc8] sm:$0xff] %v2665_v13  ;;  %v2572_v43 = vadd.f32 1.0, %v3231_v34 }
 0x41b   : > { %v3235_v21 = vpop.eup %3234  ;;  %v2575_v17 = vadd.f32 1.0, %v3233_v18 }
 0x41c   : > { %3238 = vrcp.f32 %v2572_v43  ;;  %v2573_v12 = vadd.f32 1.0, %v3235_v21 }
 0x41d   : > { %3240 = vrcp.f32 %v2575_v17 }
 0x41e   : > { %3242 = vrcp.f32 %v2573_v12 }
 0x421   : > { %v3237_v22 = vpop.eup %3236 }
 0x422   : > { %v2670_v0 = vsel %vm2447_vm8, %v3237_v22, %v4771_v11 }
 0x423   : > { %2702 = vst [vmem:[%s4651_s18 + $0xf0] sm:$0xff] %v2670_v0 }
 0x426   : > { %v3239_v54 = vpop.eup %3238 }
 0x427   : > { %v3241_v26 = vpop.eup %3240  ;;  %v2668_v20 = vsel %vm2447_vm8, %v3239_v54, %v4778_v51 }
 0x428   : > { %v3243_v53 = vpop.eup %3242  ;;  %2700 = vst [vmem:[%s4651_s18 + $0xe0] sm:$0xff] %v2668_v20  ;;  %v2671_v52 = vsel %vm2447_vm8, %v3241_v26, %v4786_v36 }
 0x429   : > { %2703 = vst [vmem:[%s4651_s18 + $0xf8] sm:$0xff] %v2671_v52  ;;  %v2669_v10 = vsel %vm2447_vm8, %v3243_v53, %v4790_v42 }
 0x42a   : > { %2701 = vst [vmem:[%s4651_s18 + $0xe8] sm:$0xff] %v2669_v10 }
 0x42b   : > { %3258 = shalt.err (!%p3255_p3)
}
 0x42c   : > { %s3259_s20 = scalar_lea.hbm %s4839_s13, 4096  ;;  %s3263_s8 = scalar_lea.hbm %s4902_s7, 8192 }
 0x42d   : > { %p3260_p4 = scmp.ne.s32.totalorder %s4839_s13, %s3259_s20  ;;  %p3264_p9 = scmp.lt.u32.totalorder %s4839_s13, %s4902_s7 }
 0x42e   : > { %p3265_p10 = scmp.lt.u32.totalorder %s3263_s8, %s3259_s20  ;;  %p3267_p12 = scmp.lt.u32.totalorder %s3259_s20, %s4839_s13 }
 0x42f   : > { %p3261_p7 = pnand %p3260_p4, %p3398_p5 }
 0x430   : > { %p3266_p11 = por %p3265_p10, %p3264_p9 }
 0x431   : > { %p3262_p8 = pneg %p3261_p7 }
 0x432   : > { %p3268_p13 = por %p3267_p12, %p3266_p11 }
 0x434   : > { %p3269_p0 = pnand %p3268_p13, %p3262_p8 }
 0x436   : > { %3272 = shalt.err (!%p3269_p0)
}
 0x437   : > { %s3318_s22 = smov 128   ;;  %s3319_s9 = smov 8  }
 0x438   : > { %3037 = dma.vmem_to_hbm [thread:$0]  (%p3398_p5), %s4841_s21, 4096, %s4839_s13, %s4854_s28, %s3318_s22, %s3318_s22, %s3319_s9  }
 0x439 PF: > { %p3043_p1 = scmp.ge.s32.totalorder %s3307_s27, 2  ;;  %s2733_s14 = sand.u32 1, %s3295_s24  }
 0x43a   : > { %s2734_s15 = scalar_lea.sflag [#allocation4], %s2733_s14 }
 0x43b   : > { %p3040_p2 = pnand %p3043_p1, %p3402_p6 }
 0x43d   : > { %3290 = dma.done.wait (!%p3040_p2), %s2734_s15, 4096  }
 0x43e   : > { %3292 = vsyncadd (!%p3040_p2), %s2734_s15, 4294963200  ;;  %p17_p3 = scmp.ge.s32.totalorder %s3385_s30, 4   ;;  %s4929_s24 = smov %s3299_s25 }
 0x43f   : > { %s4930_s25 = smov %s3303_s26  ;;  %s4931_s26 = smov %s3396_s10 }
 0x440   : > { %s4932_s27 = smov %s3385_s30  ;;  %19 = sbr.rel (!%p17_p3) target bundleno = 3 (0x3), region = 85 }
 0x447   :  { %2739 = vsyncpa [#allocation4], 1 }
 0x448   :  { %2741 = vsyncpa [#allocation4 + $0x1], 1 }

</bundles_post_ra>
